<compile_context>
chip_gen: v7x
topology: tpu7x:2x2x1
jax: 0.10.0
libtpu: 0.0.40
codegen_flags: <defaults>
</compile_context>

<pallas_src>
import jax
import jax.numpy as jnp
from jax.experimental import pallas as pl
from jax.experimental.pallas import tpu as pltpu

BN_EPS = 1e-5
CPAD = 128            # every channel / output dim is zero-padded to 128 lanes


# ----------------------------- Pallas kernels -----------------------------

def _bn_train(y, gamma, beta):
    # Training-mode BatchNorm (biased variance, like the PyTorch forward),
    # computed two-pass (mean, then centered variance) to avoid the
    # E[y^2] - E[y]^2 cancellation.
    mean = jnp.mean(y, axis=0, keepdims=True)
    diff = y - mean
    var = jnp.mean(diff * diff, axis=0, keepdims=True)
    return diff * jax.lax.rsqrt(var + BN_EPS) * gamma + beta


def _conv_pool_relu_bn(q_ref, w_ref, bgb_ref):
    # Shared body: conv (im2col matmul over the 4 stacked pool taps) ->
    # 2x2 max-pool -> +bias -> ReLU -> BatchNorm.  Conv results stay in VMEM.
    # (bias is per-channel, so adding it after the max is equivalent.)
    w = w_ref[...]
    taps = [jnp.dot(q_ref[i], w, preferred_element_type=jnp.float32)
            for i in range(4)]
    m = jnp.maximum(jnp.maximum(taps[0], taps[1]),
                    jnp.maximum(taps[2], taps[3])) + bgb_ref[0:1, :]
    y = jnp.maximum(m, 0.0)
    return _bn_train(y, bgb_ref[1:2, :], bgb_ref[2:3, :])


def conv_pool_relu_bn_kernel(q_ref, w_ref, bgb_ref, o_ref):
    o_ref[...] = _conv_pool_relu_bn(q_ref, w_ref, bgb_ref).astype(o_ref.dtype)


def conv_pool_relu_bn_relu_avg_kernel(q_ref, w_ref, bgb_ref, pool_ref, o_ref):
    # Block 3: conv -> max-pool -> ReLU -> BN -> ReLU -> AdaptiveAvgPool2d(1);
    # the avg-pool is a tiny (N, M) @ (M, 128) matmul so it stays on the MXU
    # (no in-kernel reshapes).
    y = jnp.maximum(_conv_pool_relu_bn(q_ref, w_ref, bgb_ref), 0.0)
    o_ref[...] = jnp.dot(pool_ref[...], y, preferred_element_type=jnp.float32)


def conv_relu_bn_kernel(p_ref, w_ref, bgb_ref, o_ref):
    # Block 2: conv (im2col matmul) -> +bias -> ReLU -> BatchNorm.
    y = jnp.dot(p_ref[...], w_ref[...],
                preferred_element_type=jnp.float32) + bgb_ref[0:1, :]
    y = jnp.maximum(y, 0.0)
    o_ref[...] = _bn_train(y, bgb_ref[1:2, :], bgb_ref[2:3, :]).astype(o_ref.dtype)


def head_kernel(f_ref, w_ref, b_ref, logit_ref, norm_ref):
    # Classifier logits (lane-padded to 128) + per-sample feature L2 norms
    # (for max_radious), fused in one launch.
    f = f_ref[...]
    logit_ref[...] = jnp.dot(f, w_ref[...],
                             preferred_element_type=jnp.float32) + b_ref[...]
    norm_ref[...] = jnp.sqrt(jnp.sum(f * f, axis=1, keepdims=True))


# ----------------------------- pallas_call wrappers -----------------------------

def _full_spec(shape):
    return pl.BlockSpec(shape, lambda i, _s=shape: (0,) * len(_s))


_ARB = pltpu.CompilerParams(dimension_semantics=("arbitrary",))
# NOTE: grid stays (1,) — BN statistics must cover the full N*H*W extent, so an
# M-parallel grid (v7x dual-TC) would need a two-pass reduction; at this size a
# single-point grid is faster anyway (every block fits in VMEM).


def pallas_conv_pool_relu_bn(quads, w, bgb, out_dtype=jnp.bfloat16):
    _, M2, K = quads.shape
    return pl.pallas_call(
        conv_pool_relu_bn_kernel,
        grid=(1,),
        out_shape=jax.ShapeDtypeStruct((M2, CPAD), out_dtype),
        in_specs=[_full_spec((4, M2, K)),
                  _full_spec((K, CPAD)),
                  _full_spec((3, CPAD))],
        out_specs=_full_spec((M2, CPAD)),
        compiler_params=_ARB,
    )(quads, w, bgb)


def pallas_conv_pool_relu_bn_relu_avg(quads, w, bgb, pool_mat):
    _, M2, K = quads.shape
    N = pool_mat.shape[0]
    return pl.pallas_call(
        conv_pool_relu_bn_relu_avg_kernel,
        grid=(1,),
        out_shape=jax.ShapeDtypeStruct((N, CPAD), jnp.float32),
        in_specs=[_full_spec((4, M2, K)),
                  _full_spec((K, CPAD)),
                  _full_spec((3, CPAD)),
                  _full_spec((N, M2))],
        out_specs=_full_spec((N, CPAD)),
        compiler_params=_ARB,
    )(quads, w, bgb, pool_mat)


def pallas_conv_relu_bn(p, w, bgb, out_dtype=jnp.bfloat16):
    M, K = p.shape
    return pl.pallas_call(
        conv_relu_bn_kernel,
        grid=(1,),
        out_shape=jax.ShapeDtypeStruct((M, CPAD), out_dtype),
        in_specs=[_full_spec((M, K)), _full_spec((K, CPAD)),
                  _full_spec((3, CPAD))],
        out_specs=_full_spec((M, CPAD)),
        compiler_params=_ARB,
    )(p, w, bgb)


def pallas_head(f, wT, b):
    Bf, D = f.shape
    return pl.pallas_call(
        head_kernel,
        grid=(1,),
        out_shape=(jax.ShapeDtypeStruct((Bf, CPAD), jnp.float32),
                   jax.ShapeDtypeStruct((Bf, 1), jnp.float32)),
        in_specs=[_full_spec((Bf, D)), _full_spec((D, CPAD)),
                  _full_spec((1, CPAD))],
        out_specs=(_full_spec((Bf, CPAD)), _full_spec((Bf, 1))),
        compiler_params=_ARB,
    )(f, wT, b)


# ----------------------------- JAX glue -----------------------------

def im2col_nhwc(x, kh, kw, pad):
    # x: (N, H, W, C) -> patches (N, OH, OW, kh*kw*C); patch element order
    # (ki, kj, c) matches a PyTorch conv weight transposed to (KH, KW, Cin, Cout).
    N, H, W, C = x.shape
    xp = jnp.pad(x, ((0, 0), (pad, pad), (pad, pad), (0, 0)))
    OH = H + 2 * pad - kh + 1
    OW = W + 2 * pad - kw + 1
    cols = []
    for i in range(kh):
        for j in range(kw):
            cols.append(xp[:, i:i + OH, j:j + OW, :])
    patches = jnp.stack(cols, axis=3).reshape(N, OH, OW, kh * kw * C)
    return patches, OH, OW


def pool_split_patches(patches, OH, OW):
    # The 4 taps of a 2x2/stride-2 max pool (floor mode), stacked into a single
    # (4, N*H2*W2, K) operand so they reach VMEM with one DMA; the max itself
    # happens inside the kernel (after the conv matmul).
    N, _, _, K = patches.shape
    H2, W2 = OH // 2, OW // 2
    quads = []
    for di in range(2):
        for dj in range(2):
            q = patches[:, di:di + 2 * H2:2, dj:dj + 2 * W2:2, :]
            quads.append(q.reshape(N * H2 * W2, K))
    return jnp.stack(quads, axis=0), H2, W2


def conv_weight_to_matmul(w, cout_pad=CPAD, k_pad=None):
    # PyTorch (Cout, Cin, KH, KW) -> (K_pad, cout_pad) zero-padded matmul matrix.
    Cout, Cin, KH, KW = w.shape
    K = KH * KW * Cin
    wm = jnp.transpose(w, (2, 3, 1, 0)).reshape(K, Cout)
    if k_pad is None:
        k_pad = K
    return jnp.pad(wm, ((0, k_pad - K), (0, cout_pad - Cout)))


def _pack_rows(*vecs):
    # bias / gamma / beta packed into one (3, 128) f32 block (single DMA).
    return jnp.stack([jnp.pad(v, (0, CPAD - v.shape[0])) for v in vecs], axis=0)


def init_params(key):
    ks = jax.random.split(key, 14)
    p = {}
    p["w1"] = jax.random.normal(ks[0], (32, 1, 5, 5), jnp.float32) * 0.2
    p["b1"] = jax.random.normal(ks[1], (32,), jnp.float32) * 0.05
    p["g1"] = 1.0 + 0.1 * jax.random.normal(ks[2], (32,), jnp.float32)
    p["be1"] = 0.1 * jax.random.normal(ks[3], (32,), jnp.float32)
    p["w2"] = jax.random.normal(ks[4], (64, 32, 3, 3), jnp.float32) * 0.1
    p["b2"] = jax.random.normal(ks[5], (64,), jnp.float32) * 0.05
    p["g2"] = 1.0 + 0.1 * jax.random.normal(ks[6], (64,), jnp.float32)
    p["be2"] = 0.1 * jax.random.normal(ks[7], (64,), jnp.float32)
    p["w3"] = jax.random.normal(ks[8], (64, 64, 3, 3), jnp.float32) * 0.1
    p["b3"] = jax.random.normal(ks[9], (64,), jnp.float32) * 0.05
    p["g3"] = 1.0 + 0.1 * jax.random.normal(ks[10], (64,), jnp.float32)
    p["be3"] = 0.1 * jax.random.normal(ks[11], (64,), jnp.float32)
    p["wc"] = jax.random.normal(ks[12], (10, 128), jnp.float32) * 0.1
    p["bc"] = jax.random.normal(ks[13], (10,), jnp.float32) * 0.05

    # Precomputed (one-time) matmul / lane-padded forms:
    #  - conv weights as (K, 128) bf16 matrices (Cout zero-padded to 128 lanes;
    #    conv1 K padded 25 -> 32 for a clean sublane layout, incl. v5e).
    #  - bias / gamma / beta packed as one (3, 128) f32 block per conv.
    #  - classifier weight transposed & lane-padded once (no .T per forward).
    p["w1m"] = conv_weight_to_matmul(p["w1"], k_pad=32).astype(jnp.bfloat16)
    p["w2m"] = conv_weight_to_matmul(p["w2"]).astype(jnp.bfloat16)
    p["w3m"] = conv_weight_to_matmul(p["w3"]).astype(jnp.bfloat16)
    p["bgb1"] = _pack_rows(p["b1"], p["g1"], p["be1"])
    p["bgb2"] = _pack_rows(p["b2"], p["g2"], p["be2"])
    p["bgb3"] = _pack_rows(p["b3"], p["g3"], p["be3"])
    p["wcTp"] = jnp.pad(p["wc"].T, ((0, 0), (0, CPAD - p["wc"].shape[0])))  # (128,128)
    p["bcp"] = jnp.pad(p["bc"], (0, CPAD - p["bc"].shape[0])).reshape(1, CPAD)
    return p


def mnist_model_forward(x_nchw, target, params):
    # Cast once to the MXU feed dtype; im2col is pure data movement so casting
    # before or after patch extraction is numerically identical.
    x = jnp.transpose(x_nchw, (0, 2, 3, 1)).astype(jnp.bfloat16)   # NHWC
    N = x.shape[0]

    # Block 1: Conv2d(1,32,5,1,1) -> MaxPool2d(2,2) -> ReLU -> BatchNorm2d(32)
    patches, oh, ow = im2col_nhwc(x, 5, 5, 1)                      # (N,14,14,25)
    patches = jnp.pad(patches, ((0, 0), (0, 0), (0, 0),
                                (0, 32 - patches.shape[-1])))      # K 25->32
    quads, h2, w2 = pool_split_patches(patches, oh, ow)            # (4,N*7*7,32)
    y = pallas_conv_pool_relu_bn(quads, params["w1m"], params["bgb1"])
    y = y.reshape(N, h2, w2, CPAD)[..., :32]                       # bf16

    # Block 2: Conv2d(32,64,3,1,1) -> ReLU -> BatchNorm2d(64)
    patches, oh, ow = im2col_nhwc(y, 3, 3, 1)
    p2 = patches.reshape(N * oh * ow, -1)                          # (N*7*7,288)
    y = pallas_conv_relu_bn(p2, params["w2m"], params["bgb2"])
    y = y.reshape(N, oh, ow, CPAD)[..., :64]                       # bf16

    # Block 3: Conv2d(64,64,3,1,1) -> MaxPool2d(2,2) -> ReLU -> BatchNorm2d(64)
    #          -> ReLU -> AdaptiveAvgPool2d(1), all in one fused kernel.
    patches, oh, ow = im2col_nhwc(y, 3, 3, 1)
    quads, h3, w3 = pool_split_patches(patches, oh, ow)            # (4,N*3*3,576)
    m2 = N * h3 * w3
    pool_mat = (jnp.arange(m2) // (h3 * w3) ==
                jnp.arange(N)[:, None]).astype(jnp.float32) / (h3 * w3)
    pooled = pallas_conv_pool_relu_bn_relu_avg(
        quads, params["w3m"], params["bgb3"], pool_mat)            # (N, 128) f32
    # TODO(synk): nn.BatchNorm2d(128) at the end of `feats` is shape-incompatible
    # with its 64-channel input in the reference module (would raise at runtime);
    # it is skipped here.

    # out.view(-1, 128): (N, 64, 1, 1) row-major -> (N*64/128, 128)
    features = pooled[:, :64].reshape(-1, 128)
    # TODO(synk): the np.load / np.save feature-dump side effects in forward() are
    # host-filesystem I/O with no kernel equivalent; omitted.

    logits_pad, fnorms = pallas_head(features, params["wcTp"], params["bcp"])
    logits = logits_pad[:, :10]
    radius = jnp.max(fnorms)                    # max_radious (detach -> no-op)

    # mms_loss(logits, target, mode='mean') — tiny (2,128) math stays in plain jnp
    _, top2_idx = jax.lax.top_k(logits, 2)
    runner = jnp.where(target == top2_idx[:, 0], top2_idx[:, 1], top2_idx[:, 0])
    wa = params["wc"][target]
    wb = params["wc"][runner]
    mms = jnp.mean(jnp.sqrt(jnp.sum((wa - wb) ** 2, axis=-1)))
    mms_scaled = jnp.power(radius * mms, 2)

    return logits, mms_scaled, radius


if __name__ == "__main__":
    key = jax.random.PRNGKey(0)
    pkey, xkey, tkey = jax.random.split(key, 3)
    params = init_params(pkey)

    # small MNIST-like input: batch=4, 1 channel, 16x16 (NCHW, PyTorch convention)
    x = jax.random.normal(xkey, (4, 1, 16, 16), jnp.float32)
    # features batch after view(-1, 128) is 4*64/128 = 2 -> 2 targets
    target = jax.random.randint(tkey, (2,), 0, 10, jnp.int32)

    fwd = jax.jit(mnist_model_forward)
    logits, mms_scaled, radius = fwd(x, target, params)
    jax.block_until_ready((logits, mms_scaled, radius))
    assert logits.shape == (2, 10)
    assert mms_scaled.shape == () and radius.shape == ()
    print("KERNEL_OK")
</pallas_src>

<mosaic_0001>
module attributes {stable_mosaic.version = 11 : i64} {
  func.func @conv_pool_relu_bn_kernel(%arg0: i32, %arg1: memref<4x196x32xbf16, #tpu.memory_space<vmem>>, %arg2: memref<32x128xbf16, #tpu.memory_space<vmem>>, %arg3: memref<3x128xf32, #tpu.memory_space<vmem>>, %arg4: memref<196x128xbf16, #tpu.memory_space<vmem>>) attributes {dimension_semantics = [#tpu.dimension_semantics<arbitrary>], iteration_bounds = array<i64: 1>, scalar_prefetch = 0 : i64, scratch_operands = 0 : i64, tpu.core_type = #tpu.core_type<tc>, window_params = [{pipeline_mode = #tpu.pipeline_mode<synchronous>, transform_indices = @transform_0, window_bounds = array<i64: 4, 196, 32>}, {pipeline_mode = #tpu.pipeline_mode<synchronous>, transform_indices = @transform_1, window_bounds = array<i64: 32, 128>}, {pipeline_mode = #tpu.pipeline_mode<synchronous>, transform_indices = @transform_2, window_bounds = array<i64: 3, 128>}, {pipeline_mode = #tpu.pipeline_mode<synchronous>, transform_indices = @transform_3, window_bounds = array<i64: 196, 128>}]} {
    %c0 = arith.constant 0 : index
    %c0_0 = arith.constant 0 : index
    %0 = vector.load %arg2[%c0, %c0_0] : memref<32x128xbf16, #tpu.memory_space<vmem>>, vector<32x128xbf16>
    %c0_1 = arith.constant 0 : index
    %c0_2 = arith.constant 0 : index
    %c0_3 = arith.constant 0 : index
    %1 = vector.load %arg1[%c0_1, %c0_2, %c0_3] : memref<4x196x32xbf16, #tpu.memory_space<vmem>>, vector<1x196x32xbf16>
    %2 = vector.shape_cast %1 : vector<1x196x32xbf16> to vector<196x32xbf16>
    %cst = arith.constant dense<0.000000e+00> : vector<196x128xf32>
    %3 = tpu.matmul %2, %0, %cst {dimension_numbers = #tpu.dot_dimension_numbers<[1], [0], [0], [1], [0, 0, 1, 1], [], []>} : vector<196x32xbf16>, vector<32x128xbf16>, vector<196x128xf32> -> vector<196x128xf32>
    %c1 = arith.constant 1 : index
    %c0_4 = arith.constant 0 : index
    %c0_5 = arith.constant 0 : index
    %4 = vector.load %arg1[%c1, %c0_4, %c0_5] : memref<4x196x32xbf16, #tpu.memory_space<vmem>>, vector<1x196x32xbf16>
    %5 = vector.shape_cast %4 : vector<1x196x32xbf16> to vector<196x32xbf16>
    %cst_6 = arith.constant dense<0.000000e+00> : vector<196x128xf32>
    %6 = tpu.matmul %5, %0, %cst_6 {dimension_numbers = #tpu.dot_dimension_numbers<[1], [0], [0], [1], [0, 0, 1, 1], [], []>} : vector<196x32xbf16>, vector<32x128xbf16>, vector<196x128xf32> -> vector<196x128xf32>
    %c2 = arith.constant 2 : index
    %c0_7 = arith.constant 0 : index
    %c0_8 = arith.constant 0 : index
    %7 = vector.load %arg1[%c2, %c0_7, %c0_8] : memref<4x196x32xbf16, #tpu.memory_space<vmem>>, vector<1x196x32xbf16>
    %8 = vector.shape_cast %7 : vector<1x196x32xbf16> to vector<196x32xbf16>
    %cst_9 = arith.constant dense<0.000000e+00> : vector<196x128xf32>
    %9 = tpu.matmul %8, %0, %cst_9 {dimension_numbers = #tpu.dot_dimension_numbers<[1], [0], [0], [1], [0, 0, 1, 1], [], []>} : vector<196x32xbf16>, vector<32x128xbf16>, vector<196x128xf32> -> vector<196x128xf32>
    %c3 = arith.constant 3 : index
    %c0_10 = arith.constant 0 : index
    %c0_11 = arith.constant 0 : index
    %10 = vector.load %arg1[%c3, %c0_10, %c0_11] : memref<4x196x32xbf16, #tpu.memory_space<vmem>>, vector<1x196x32xbf16>
    %11 = vector.shape_cast %10 : vector<1x196x32xbf16> to vector<196x32xbf16>
    %cst_12 = arith.constant dense<0.000000e+00> : vector<196x128xf32>
    %12 = tpu.matmul %11, %0, %cst_12 {dimension_numbers = #tpu.dot_dimension_numbers<[1], [0], [0], [1], [0, 0, 1, 1], [], []>} : vector<196x32xbf16>, vector<32x128xbf16>, vector<196x128xf32> -> vector<196x128xf32>
    %13 = arith.maximumf %3, %6 : vector<196x128xf32>
    %14 = arith.maximumf %9, %12 : vector<196x128xf32>
    %15 = arith.maximumf %13, %14 : vector<196x128xf32>
    %c0_13 = arith.constant 0 : index
    %c0_14 = arith.constant 0 : index
    %16 = vector.load %arg3[%c0_13, %c0_14] : memref<3x128xf32, #tpu.memory_space<vmem>>, vector<1x128xf32>
    %17 = vector.broadcast %16 : vector<1x128xf32> to vector<196x128xf32>
    %18 = arith.addf %15, %17 : vector<196x128xf32>
    %cst_15 = arith.constant 0.000000e+00 : f32
    %19 = vector.broadcast %cst_15 : f32 to vector<196x128xf32>
    %20 = arith.maximumf %18, %19 : vector<196x128xf32>
    %c1_16 = arith.constant 1 : index
    %c0_17 = arith.constant 0 : index
    %21 = vector.load %arg3[%c1_16, %c0_17] : memref<3x128xf32, #tpu.memory_space<vmem>>, vector<1x128xf32>
    %c2_18 = arith.constant 2 : index
    %c0_19 = arith.constant 0 : index
    %22 = vector.load %arg3[%c2_18, %c0_19] : memref<3x128xf32, #tpu.memory_space<vmem>>, vector<1x128xf32>
    %cst_20 = arith.constant dense<0.000000e+00> : vector<128xf32>
    %23 = vector.multi_reduction <add>, %20, %cst_20 [0] : vector<196x128xf32> to vector<128xf32>
    %24 = vector.shape_cast %23 : vector<128xf32> to vector<1x128xf32>
    %cst_21 = arith.constant 1.960000e+02 : f32
    %25 = vector.broadcast %cst_21 : f32 to vector<1x128xf32>
    %26 = arith.divf %24, %25 : vector<1x128xf32>
    %27 = vector.broadcast %26 : vector<1x128xf32> to vector<196x128xf32>
    %28 = arith.subf %20, %27 : vector<196x128xf32>
    %29 = arith.mulf %28, %28 : vector<196x128xf32>
    %cst_22 = arith.constant dense<0.000000e+00> : vector<128xf32>
    %30 = vector.multi_reduction <add>, %29, %cst_22 [0] : vector<196x128xf32> to vector<128xf32>
    %31 = vector.shape_cast %30 : vector<128xf32> to vector<1x128xf32>
    %cst_23 = arith.constant 1.960000e+02 : f32
    %32 = vector.broadcast %cst_23 : f32 to vector<1x128xf32>
    %33 = arith.divf %31, %32 : vector<1x128xf32>
    %cst_24 = arith.constant 9.99999974E-6 : f32
    %34 = vector.broadcast %cst_24 : f32 to vector<1x128xf32>
    %35 = arith.addf %33, %34 : vector<1x128xf32>
    %36 = math.rsqrt %35 : vector<1x128xf32>
    %37 = vector.broadcast %36 : vector<1x128xf32> to vector<196x128xf32>
    %38 = arith.mulf %28, %37 : vector<196x128xf32>
    %39 = vector.broadcast %21 : vector<1x128xf32> to vector<196x128xf32>
    %40 = arith.mulf %38, %39 : vector<196x128xf32>
    %41 = vector.broadcast %22 : vector<1x128xf32> to vector<196x128xf32>
    %42 = arith.addf %40, %41 : vector<196x128xf32>
    %43 = arith.truncf %42 : vector<196x128xf32> to vector<196x128xbf16>
    %c0_25 = arith.constant 0 : index
    %c0_26 = arith.constant 0 : index
    %44 = vector.load %arg4[%c0_25, %c0_26] : memref<196x128xbf16, #tpu.memory_space<vmem>>, vector<196x128xbf16>
    tpu.vector_store %arg4[%c0_25, %c0_26], %43 {strides = array<i32>} : memref<196x128xbf16, #tpu.memory_space<vmem>>, vector<196x128xbf16>,
    return
  }
  func.func @transform_0(%arg0: i32) -> (i32, i32, i32) {
    %c0_i32 = arith.constant 0 : i32
    %c0_i32_0 = arith.constant 0 : i32
    %c0_i32_1 = arith.constant 0 : i32
    %c0_i32_2 = arith.constant 0 : i32
    return %c0_i32, %c0_i32_0, %c0_i32_1 : i32, i32, i32
  }
  func.func @transform_1(%arg0: i32) -> (i32, i32) {
    %c0_i32 = arith.constant 0 : i32
    %c0_i32_0 = arith.constant 0 : i32
    %c0_i32_1 = arith.constant 0 : i32
    return %c0_i32, %c0_i32_0 : i32, i32
  }
  func.func @transform_2(%arg0: i32) -> (i32, i32) {
    %c0_i32 = arith.constant 0 : i32
    %c0_i32_0 = arith.constant 0 : i32
    %c0_i32_1 = arith.constant 0 : i32
    return %c0_i32, %c0_i32_0 : i32, i32
  }
  func.func @transform_3(%arg0: i32) -> (i32, i32) {
    %c0_i32 = arith.constant 0 : i32
    %c0_i32_0 = arith.constant 0 : i32
    %c0_i32_1 = arith.constant 0 : i32
    return %c0_i32, %c0_i32_0 : i32, i32
  }
}

module attributes {stable_mosaic.version = 11 : i64} {
  func.func @conv_relu_bn_kernel(%arg0: i32, %arg1: memref<196x288xbf16, #tpu.memory_space<vmem>>, %arg2: memref<288x128xbf16, #tpu.memory_space<vmem>>, %arg3: memref<3x128xf32, #tpu.memory_space<vmem>>, %arg4: memref<196x128xbf16, #tpu.memory_space<vmem>>) attributes {dimension_semantics = [#tpu.dimension_semantics<arbitrary>], iteration_bounds = array<i64: 1>, scalar_prefetch = 0 : i64, scratch_operands = 0 : i64, tpu.core_type = #tpu.core_type<tc>, window_params = [{pipeline_mode = #tpu.pipeline_mode<synchronous>, transform_indices = @transform_0, window_bounds = array<i64: 196, 288>}, {pipeline_mode = #tpu.pipeline_mode<synchronous>, transform_indices = @transform_1, window_bounds = array<i64: 288, 128>}, {pipeline_mode = #tpu.pipeline_mode<synchronous>, transform_indices = @transform_2, window_bounds = array<i64: 3, 128>}, {pipeline_mode = #tpu.pipeline_mode<synchronous>, transform_indices = @transform_3, window_bounds = array<i64: 196, 128>}]} {
    %c0 = arith.constant 0 : index
    %c0_0 = arith.constant 0 : index
    %0 = vector.load %arg1[%c0, %c0_0] : memref<196x288xbf16, #tpu.memory_space<vmem>>, vector<196x288xbf16>
    %c0_1 = arith.constant 0 : index
    %c0_2 = arith.constant 0 : index
    %1 = vector.load %arg2[%c0_1, %c0_2] : memref<288x128xbf16, #tpu.memory_space<vmem>>, vector<288x128xbf16>
    %cst = arith.constant dense<0.000000e+00> : vector<196x128xf32>
    %2 = tpu.matmul %0, %1, %cst {dimension_numbers = #tpu.dot_dimension_numbers<[1], [0], [0], [1], [0, 0, 1, 1], [], []>} : vector<196x288xbf16>, vector<288x128xbf16>, vector<196x128xf32> -> vector<196x128xf32>
    %c0_3 = arith.constant 0 : index
    %c0_4 = arith.constant 0 : index
    %3 = vector.load %arg3[%c0_3, %c0_4] : memref<3x128xf32, #tpu.memory_space<vmem>>, vector<1x128xf32>
    %4 = vector.broadcast %3 : vector<1x128xf32> to vector<196x128xf32>
    %5 = arith.addf %2, %4 : vector<196x128xf32>
    %cst_5 = arith.constant 0.000000e+00 : f32
    %6 = vector.broadcast %cst_5 : f32 to vector<196x128xf32>
    %7 = arith.maximumf %5, %6 : vector<196x128xf32>
    %c1 = arith.constant 1 : index
    %c0_6 = arith.constant 0 : index
    %8 = vector.load %arg3[%c1, %c0_6] : memref<3x128xf32, #tpu.memory_space<vmem>>, vector<1x128xf32>
    %c2 = arith.constant 2 : index
    %c0_7 = arith.constant 0 : index
    %9 = vector.load %arg3[%c2, %c0_7] : memref<3x128xf32, #tpu.memory_space<vmem>>, vector<1x128xf32>
    %cst_8 = arith.constant dense<0.000000e+00> : vector<128xf32>
    %10 = vector.multi_reduction <add>, %7, %cst_8 [0] : vector<196x128xf32> to vector<128xf32>
    %11 = vector.shape_cast %10 : vector<128xf32> to vector<1x128xf32>
    %cst_9 = arith.constant 1.960000e+02 : f32
    %12 = vector.broadcast %cst_9 : f32 to vector<1x128xf32>
    %13 = arith.divf %11, %12 : vector<1x128xf32>
    %14 = vector.broadcast %13 : vector<1x128xf32> to vector<196x128xf32>
    %15 = arith.subf %7, %14 : vector<196x128xf32>
    %16 = arith.mulf %15, %15 : vector<196x128xf32>
    %cst_10 = arith.constant dense<0.000000e+00> : vector<128xf32>
    %17 = vector.multi_reduction <add>, %16, %cst_10 [0] : vector<196x128xf32> to vector<128xf32>
    %18 = vector.shape_cast %17 : vector<128xf32> to vector<1x128xf32>
    %cst_11 = arith.constant 1.960000e+02 : f32
    %19 = vector.broadcast %cst_11 : f32 to vector<1x128xf32>
    %20 = arith.divf %18, %19 : vector<1x128xf32>
    %cst_12 = arith.constant 9.99999974E-6 : f32
    %21 = vector.broadcast %cst_12 : f32 to vector<1x128xf32>
    %22 = arith.addf %20, %21 : vector<1x128xf32>
    %23 = math.rsqrt %22 : vector<1x128xf32>
    %24 = vector.broadcast %23 : vector<1x128xf32> to vector<196x128xf32>
    %25 = arith.mulf %15, %24 : vector<196x128xf32>
    %26 = vector.broadcast %8 : vector<1x128xf32> to vector<196x128xf32>
    %27 = arith.mulf %25, %26 : vector<196x128xf32>
    %28 = vector.broadcast %9 : vector<1x128xf32> to vector<196x128xf32>
    %29 = arith.addf %27, %28 : vector<196x128xf32>
    %30 = arith.truncf %29 : vector<196x128xf32> to vector<196x128xbf16>
    %c0_13 = arith.constant 0 : index
    %c0_14 = arith.constant 0 : index
    %31 = vector.load %arg4[%c0_13, %c0_14] : memref<196x128xbf16, #tpu.memory_space<vmem>>, vector<196x128xbf16>
    tpu.vector_store %arg4[%c0_13, %c0_14], %30 {strides = array<i32>} : memref<196x128xbf16, #tpu.memory_space<vmem>>, vector<196x128xbf16>,
    return
  }
  func.func @transform_0(%arg0: i32) -> (i32, i32) {
    %c0_i32 = arith.constant 0 : i32
    %c0_i32_0 = arith.constant 0 : i32
    %c0_i32_1 = arith.constant 0 : i32
    return %c0_i32, %c0_i32_0 : i32, i32
  }
  func.func @transform_1(%arg0: i32) -> (i32, i32) {
    %c0_i32 = arith.constant 0 : i32
    %c0_i32_0 = arith.constant 0 : i32
    %c0_i32_1 = arith.constant 0 : i32
    return %c0_i32, %c0_i32_0 : i32, i32
  }
  func.func @transform_2(%arg0: i32) -> (i32, i32) {
    %c0_i32 = arith.constant 0 : i32
    %c0_i32_0 = arith.constant 0 : i32
    %c0_i32_1 = arith.constant 0 : i32
    return %c0_i32, %c0_i32_0 : i32, i32
  }
  func.func @transform_3(%arg0: i32) -> (i32, i32) {
    %c0_i32 = arith.constant 0 : i32
    %c0_i32_0 = arith.constant 0 : i32
    %c0_i32_1 = arith.constant 0 : i32
    return %c0_i32, %c0_i32_0 : i32, i32
  }
}

module attributes {stable_mosaic.version = 11 : i64} {
  func.func @conv_pool_relu_bn_relu_avg_kernel(%arg0: i32, %arg1: memref<4x36x576xbf16, #tpu.memory_space<vmem>>, %arg2: memref<576x128xbf16, #tpu.memory_space<vmem>>, %arg3: memref<3x128xf32, #tpu.memory_space<vmem>>, %arg4: memref<4x36xf32, #tpu.memory_space<vmem>>, %arg5: memref<4x128xf32, #tpu.memory_space<vmem>>) attributes {dimension_semantics = [#tpu.dimension_semantics<arbitrary>], iteration_bounds = array<i64: 1>, scalar_prefetch = 0 : i64, scratch_operands = 0 : i64, tpu.core_type = #tpu.core_type<tc>, window_params = [{pipeline_mode = #tpu.pipeline_mode<synchronous>, transform_indices = @transform_0, window_bounds = array<i64: 4, 36, 576>}, {pipeline_mode = #tpu.pipeline_mode<synchronous>, transform_indices = @transform_1, window_bounds = array<i64: 576, 128>}, {pipeline_mode = #tpu.pipeline_mode<synchronous>, transform_indices = @transform_2, window_bounds = array<i64: 3, 128>}, {pipeline_mode = #tpu.pipeline_mode<synchronous>, transform_indices = @transform_3, window_bounds = array<i64: 4, 36>}, {pipeline_mode = #tpu.pipeline_mode<synchronous>, transform_indices = @transform_4, window_bounds = array<i64: 4, 128>}]} {
    %c0 = arith.constant 0 : index
    %c0_0 = arith.constant 0 : index
    %0 = vector.load %arg2[%c0, %c0_0] : memref<576x128xbf16, #tpu.memory_space<vmem>>, vector<576x128xbf16>
    %c0_1 = arith.constant 0 : index
    %c0_2 = arith.constant 0 : index
    %c0_3 = arith.constant 0 : index
    %1 = vector.load %arg1[%c0_1, %c0_2, %c0_3] : memref<4x36x576xbf16, #tpu.memory_space<vmem>>, vector<1x36x576xbf16>
    %2 = vector.shape_cast %1 : vector<1x36x576xbf16> to vector<36x576xbf16>
    %cst = arith.constant dense<0.000000e+00> : vector<36x128xf32>
    %3 = tpu.matmul %2, %0, %cst {dimension_numbers = #tpu.dot_dimension_numbers<[1], [0], [0], [1], [0, 0, 1, 1], [], []>} : vector<36x576xbf16>, vector<576x128xbf16>, vector<36x128xf32> -> vector<36x128xf32>
    %c1 = arith.constant 1 : index
    %c0_4 = arith.constant 0 : index
    %c0_5 = arith.constant 0 : index
    %4 = vector.load %arg1[%c1, %c0_4, %c0_5] : memref<4x36x576xbf16, #tpu.memory_space<vmem>>, vector<1x36x576xbf16>
    %5 = vector.shape_cast %4 : vector<1x36x576xbf16> to vector<36x576xbf16>
    %cst_6 = arith.constant dense<0.000000e+00> : vector<36x128xf32>
    %6 = tpu.matmul %5, %0, %cst_6 {dimension_numbers = #tpu.dot_dimension_numbers<[1], [0], [0], [1], [0, 0, 1, 1], [], []>} : vector<36x576xbf16>, vector<576x128xbf16>, vector<36x128xf32> -> vector<36x128xf32>
    %c2 = arith.constant 2 : index
    %c0_7 = arith.constant 0 : index
    %c0_8 = arith.constant 0 : index
    %7 = vector.load %arg1[%c2, %c0_7, %c0_8] : memref<4x36x576xbf16, #tpu.memory_space<vmem>>, vector<1x36x576xbf16>
    %8 = vector.shape_cast %7 : vector<1x36x576xbf16> to vector<36x576xbf16>
    %cst_9 = arith.constant dense<0.000000e+00> : vector<36x128xf32>
    %9 = tpu.matmul %8, %0, %cst_9 {dimension_numbers = #tpu.dot_dimension_numbers<[1], [0], [0], [1], [0, 0, 1, 1], [], []>} : vector<36x576xbf16>, vector<576x128xbf16>, vector<36x128xf32> -> vector<36x128xf32>
    %c3 = arith.constant 3 : index
    %c0_10 = arith.constant 0 : index
    %c0_11 = arith.constant 0 : index
    %10 = vector.load %arg1[%c3, %c0_10, %c0_11] : memref<4x36x576xbf16, #tpu.memory_space<vmem>>, vector<1x36x576xbf16>
    %11 = vector.shape_cast %10 : vector<1x36x576xbf16> to vector<36x576xbf16>
    %cst_12 = arith.constant dense<0.000000e+00> : vector<36x128xf32>
    %12 = tpu.matmul %11, %0, %cst_12 {dimension_numbers = #tpu.dot_dimension_numbers<[1], [0], [0], [1], [0, 0, 1, 1], [], []>} : vector<36x576xbf16>, vector<576x128xbf16>, vector<36x128xf32> -> vector<36x128xf32>
    %13 = arith.maximumf %3, %6 : vector<36x128xf32>
    %14 = arith.maximumf %9, %12 : vector<36x128xf32>
    %15 = arith.maximumf %13, %14 : vector<36x128xf32>
    %c0_13 = arith.constant 0 : index
    %c0_14 = arith.constant 0 : index
    %16 = vector.load %arg3[%c0_13, %c0_14] : memref<3x128xf32, #tpu.memory_space<vmem>>, vector<1x128xf32>
    %17 = vector.broadcast %16 : vector<1x128xf32> to vector<36x128xf32>
    %18 = arith.addf %15, %17 : vector<36x128xf32>
    %cst_15 = arith.constant 0.000000e+00 : f32
    %19 = vector.broadcast %cst_15 : f32 to vector<36x128xf32>
    %20 = arith.maximumf %18, %19 : vector<36x128xf32>
    %c1_16 = arith.constant 1 : index
    %c0_17 = arith.constant 0 : index
    %21 = vector.load %arg3[%c1_16, %c0_17] : memref<3x128xf32, #tpu.memory_space<vmem>>, vector<1x128xf32>
    %c2_18 = arith.constant 2 : index
    %c0_19 = arith.constant 0 : index
    %22 = vector.load %arg3[%c2_18, %c0_19] : memref<3x128xf32, #tpu.memory_space<vmem>>, vector<1x128xf32>
    %cst_20 = arith.constant dense<0.000000e+00> : vector<128xf32>
    %23 = vector.multi_reduction <add>, %20, %cst_20 [0] : vector<36x128xf32> to vector<128xf32>
    %24 = vector.shape_cast %23 : vector<128xf32> to vector<1x128xf32>
    %cst_21 = arith.constant 3.600000e+01 : f32
    %25 = vector.broadcast %cst_21 : f32 to vector<1x128xf32>
    %26 = arith.divf %24, %25 : vector<1x128xf32>
    %27 = vector.broadcast %26 : vector<1x128xf32> to vector<36x128xf32>
    %28 = arith.subf %20, %27 : vector<36x128xf32>
    %29 = arith.mulf %28, %28 : vector<36x128xf32>
    %cst_22 = arith.constant dense<0.000000e+00> : vector<128xf32>
    %30 = vector.multi_reduction <add>, %29, %cst_22 [0] : vector<36x128xf32> to vector<128xf32>
    %31 = vector.shape_cast %30 : vector<128xf32> to vector<1x128xf32>
    %cst_23 = arith.constant 3.600000e+01 : f32
    %32 = vector.broadcast %cst_23 : f32 to vector<1x128xf32>
    %33 = arith.divf %31, %32 : vector<1x128xf32>
    %cst_24 = arith.constant 9.99999974E-6 : f32
    %34 = vector.broadcast %cst_24 : f32 to vector<1x128xf32>
    %35 = arith.addf %33, %34 : vector<1x128xf32>
    %36 = math.rsqrt %35 : vector<1x128xf32>
    %37 = vector.broadcast %36 : vector<1x128xf32> to vector<36x128xf32>
    %38 = arith.mulf %28, %37 : vector<36x128xf32>
    %39 = vector.broadcast %21 : vector<1x128xf32> to vector<36x128xf32>
    %40 = arith.mulf %38, %39 : vector<36x128xf32>
    %41 = vector.broadcast %22 : vector<1x128xf32> to vector<36x128xf32>
    %42 = arith.addf %40, %41 : vector<36x128xf32>
    %cst_25 = arith.constant 0.000000e+00 : f32
    %43 = vector.broadcast %cst_25 : f32 to vector<36x128xf32>
    %44 = arith.maximumf %42, %43 : vector<36x128xf32>
    %c0_26 = arith.constant 0 : index
    %c0_27 = arith.constant 0 : index
    %45 = vector.load %arg4[%c0_26, %c0_27] : memref<4x36xf32, #tpu.memory_space<vmem>>, vector<4x36xf32>
    %cst_28 = arith.constant dense<0.000000e+00> : vector<4x128xf32>
    %46 = tpu.matmul %45, %44, %cst_28 {dimension_numbers = #tpu.dot_dimension_numbers<[1], [0], [0], [1], [0, 0, 1, 1], [], []>} : vector<4x36xf32>, vector<36x128xf32>, vector<4x128xf32> -> vector<4x128xf32>
    %c0_29 = arith.constant 0 : index
    %c0_30 = arith.constant 0 : index
    %47 = vector.load %arg5[%c0_29, %c0_30] : memref<4x128xf32, #tpu.memory_space<vmem>>, vector<4x128xf32>
    tpu.vector_store %arg5[%c0_29, %c0_30], %46 {strides = array<i32>} : memref<4x128xf32, #tpu.memory_space<vmem>>, vector<4x128xf32>,
    return
  }
  func.func @transform_0(%arg0: i32) -> (i32, i32, i32) {
    %c0_i32 = arith.constant 0 : i32
    %c0_i32_0 = arith.constant 0 : i32
    %c0_i32_1 = arith.constant 0 : i32
    %c0_i32_2 = arith.constant 0 : i32
    return %c0_i32, %c0_i32_0, %c0_i32_1 : i32, i32, i32
  }
  func.func @transform_1(%arg0: i32) -> (i32, i32) {
    %c0_i32 = arith.constant 0 : i32
    %c0_i32_0 = arith.constant 0 : i32
    %c0_i32_1 = arith.constant 0 : i32
    return %c0_i32, %c0_i32_0 : i32, i32
  }
  func.func @transform_2(%arg0: i32) -> (i32, i32) {
    %c0_i32 = arith.constant 0 : i32
    %c0_i32_0 = arith.constant 0 : i32
    %c0_i32_1 = arith.constant 0 : i32
    return %c0_i32, %c0_i32_0 : i32, i32
  }
  func.func @transform_3(%arg0: i32) -> (i32, i32) {
    %c0_i32 = arith.constant 0 : i32
    %c0_i32_0 = arith.constant 0 : i32
    %c0_i32_1 = arith.constant 0 : i32
    return %c0_i32, %c0_i32_0 : i32, i32
  }
  func.func @transform_4(%arg0: i32) -> (i32, i32) {
    %c0_i32 = arith.constant 0 : i32
    %c0_i32_0 = arith.constant 0 : i32
    %c0_i32_1 = arith.constant 0 : i32
    return %c0_i32, %c0_i32_0 : i32, i32
  }
}

module attributes {stable_mosaic.version = 11 : i64} {
  func.func @head_kernel(%arg0: i32, %arg1: memref<2x128xf32, #tpu.memory_space<vmem>>, %arg2: memref<128x128xf32, #tpu.memory_space<vmem>>, %arg3: memref<1x128xf32, #tpu.memory_space<vmem>>, %arg4: memref<2x128xf32, #tpu.memory_space<vmem>>, %arg5: memref<2x1xf32, #tpu.memory_space<vmem>>) attributes {dimension_semantics = [#tpu.dimension_semantics<arbitrary>], iteration_bounds = array<i64: 1>, scalar_prefetch = 0 : i64, scratch_operands = 0 : i64, tpu.core_type = #tpu.core_type<tc>, window_params = [{pipeline_mode = #tpu.pipeline_mode<synchronous>, transform_indices = @transform_0, window_bounds = array<i64: 2, 128>}, {pipeline_mode = #tpu.pipeline_mode<synchronous>, transform_indices = @transform_1, window_bounds = array<i64: 128, 128>}, {pipeline_mode = #tpu.pipeline_mode<synchronous>, transform_indices = @transform_2, window_bounds = array<i64: 1, 128>}, {pipeline_mode = #tpu.pipeline_mode<synchronous>, transform_indices = @transform_3, window_bounds = array<i64: 2, 128>}, {pipeline_mode = #tpu.pipeline_mode<synchronous>, transform_indices = @transform_4, window_bounds = array<i64: 2, 1>}]} {
    %c0 = arith.constant 0 : index
    %c0_0 = arith.constant 0 : index
    %0 = vector.load %arg1[%c0, %c0_0] : memref<2x128xf32, #tpu.memory_space<vmem>>, vector<2x128xf32>
    %c0_1 = arith.constant 0 : index
    %c0_2 = arith.constant 0 : index
    %1 = vector.load %arg2[%c0_1, %c0_2] : memref<128x128xf32, #tpu.memory_space<vmem>>, vector<128x128xf32>
    %cst = arith.constant dense<0.000000e+00> : vector<2x128xf32>
    %2 = tpu.matmul %0, %1, %cst {dimension_numbers = #tpu.dot_dimension_numbers<[1], [0], [0], [1], [0, 0, 1, 1], [], []>} : vector<2x128xf32>, vector<128x128xf32>, vector<2x128xf32> -> vector<2x128xf32>
    %c0_3 = arith.constant 0 : index
    %c0_4 = arith.constant 0 : index
    %3 = vector.load %arg3[%c0_3, %c0_4] : memref<1x128xf32, #tpu.memory_space<vmem>>, vector<1x128xf32>
    %4 = vector.broadcast %3 : vector<1x128xf32> to vector<2x128xf32>
    %5 = arith.addf %2, %4 : vector<2x128xf32>
    %c0_5 = arith.constant 0 : index
    %c0_6 = arith.constant 0 : index
    %6 = vector.load %arg4[%c0_5, %c0_6] : memref<2x128xf32, #tpu.memory_space<vmem>>, vector<2x128xf32>
    tpu.vector_store %arg4[%c0_5, %c0_6], %5 {strides = array<i32>} : memref<2x128xf32, #tpu.memory_space<vmem>>, vector<2x128xf32>,
    %7 = arith.mulf %0, %0 : vector<2x128xf32>
    %cst_7 = arith.constant dense<0.000000e+00> : vector<2xf32>
    %8 = vector.multi_reduction <add>, %7, %cst_7 [1] : vector<2x128xf32> to vector<2xf32>
    %9 = vector.shape_cast %8 : vector<2xf32> to vector<2x1xf32>
    %10 = math.sqrt %9 : vector<2x1xf32>
    %c0_8 = arith.constant 0 : index
    %c0_9 = arith.constant 0 : index
    %11 = vector.load %arg5[%c0_8, %c0_9] : memref<2x1xf32, #tpu.memory_space<vmem>>, vector<2x1xf32>
    tpu.vector_store %arg5[%c0_8, %c0_9], %10 {strides = array<i32>} : memref<2x1xf32, #tpu.memory_space<vmem>>, vector<2x1xf32>,
    return
  }
  func.func @transform_0(%arg0: i32) -> (i32, i32) {
    %c0_i32 = arith.constant 0 : i32
    %c0_i32_0 = arith.constant 0 : i32
    %c0_i32_1 = arith.constant 0 : i32
    return %c0_i32, %c0_i32_0 : i32, i32
  }
  func.func @transform_1(%arg0: i32) -> (i32, i32) {
    %c0_i32 = arith.constant 0 : i32
    %c0_i32_0 = arith.constant 0 : i32
    %c0_i32_1 = arith.constant 0 : i32
    return %c0_i32, %c0_i32_0 : i32, i32
  }
  func.func @transform_2(%arg0: i32) -> (i32, i32) {
    %c0_i32 = arith.constant 0 : i32
    %c0_i32_0 = arith.constant 0 : i32
    %c0_i32_1 = arith.constant 0 : i32
    return %c0_i32, %c0_i32_0 : i32, i32
  }
  func.func @transform_3(%arg0: i32) -> (i32, i32) {
    %c0_i32 = arith.constant 0 : i32
    %c0_i32_0 = arith.constant 0 : i32
    %c0_i32_1 = arith.constant 0 : i32
    return %c0_i32, %c0_i32_0 : i32, i32
  }
  func.func @transform_4(%arg0: i32) -> (i32, i32) {
    %c0_i32 = arith.constant 0 : i32
    %c0_i32_0 = arith.constant 0 : i32
    %c0_i32_1 = arith.constant 0 : i32
    return %c0_i32, %c0_i32_0 : i32, i32
  }
}

</mosaic_0001>

<bundles_post_ra>
// kernel: mnist_model_forward.4
= control target key start
LH: loop header
LB: loop body
LE: loop exit
PB: predicated region body
PF: predicated region fallthrough
CT: control target
= control target key end

     0   :  { %v2197_v0 = vmov 0.0   ;;  %vm2198_vm0 = vmmov 0   ;;  %vm119_vm1 = vcmask 261120   ;;  %vm1242_vm2 = vcmask 1043456   ;;  %s3122_s1 = inlined_call_operand.vmem [shape: bf16[32,128], index: 1, kind: input, shape index: {}]   ;;  %s3123_s0 = inlined_call_operand.vmem [shape: bf16[4,196,32], index: 0, kind: input, shape index: {}]   ;;  %s3124_s2 = inlined_call_operand.vmem [shape: f32[3,128], index: 2, kind: input, shape index: {}]   ;;  %s3125_s3 = inlined_call_operand.vmem [shape: bf16[196,128], index: 3, kind: output, shape index: {}]  }
   0x1   :  { %1915 = vmatprep.subr.bf16.mxu0 %v2197_v0  ;;  %1971 = vmatprep.subr.bf16.mxu1 %v2197_v0  ;;  %v2141_v1 = vld [vmem:[%s3122_s1] sm:$0xff]   ;;  %v2142_v2 = vld [vmem:[%s3122_s1 + $0x8] sm:$0xff]   ;;  %v2147_v7 = vld [vmem:[%s3123_s0 + $0x10] sm:$0xff]  }
   0x2   :  { %1919 = vmatprep.mubr.msk.bf16.mxu0 %vm2198_vm0, %v2197_v0  ;;  %1975 = vmatprep.mubr.msk.bf16.mxu1 %vm2198_vm0, %v2197_v0  ;;  %v2143_v3 = vld [vmem:[%s3123_s0] sm:$0xff]   ;;  %v2145_v5 = vld [vmem:[%s3123_s0 + $0x8] sm:$0xff]   ;;  %v2148_v8 = vld [vmem:[%s3123_s0 + $0x74] sm:$0xff]  }
   0x3   :  { %1916 = vmatpush3.bf16.msra.mxu0 %v2141_v1  ;;  %1972 = vmatpush3.bf16.msra.mxu1 %v2141_v1  ;;  %v2144_v4 = vld [vmem:[%s3123_s0 + $0x64] sm:$0xff]   ;;  %v2146_v6 = vld [vmem:[%s3123_s0 + $0x6c] sm:$0xff]   ;;  %v2149_v9 = vld [vmem:[%s3123_s0 + $0x18] sm:$0xff]  }
   0x4   :  { %1917 = vmatprep.subr.bf16.mxu0 %v2197_v0  ;;  %1973 = vmatprep.subr.bf16.mxu1 %v2197_v0  ;;  %v2150_v10 = vld [vmem:[%s3123_s0 + $0x7c] sm:$0xff]   ;;  %v2152_v12 = vld [vmem:[%s3123_s0 + $0x84] sm:$0xff]   ;;  %v2154_v14 = vld [vmem:[%s3123_s0 + $0x8c] sm:$0xff]  }
   0x5   :  { %v2151_v11 = vld [vmem:[%s3123_s0 + $0x20] sm:$0xff]   ;;  %v2153_v13 = vld [vmem:[%s3123_s0 + $0x28] sm:$0xff]   ;;  %v2155_v15 = vld [vmem:[%s3123_s0 + $0x30] sm:$0xff]  }
   0x6   :  { %v2156_v16 = vld [vmem:[%s3123_s0 + $0x94] sm:$0xff]   ;;  %v2158_v18 = vld [vmem:[%s3123_s0 + $0x9c] sm:$0xff]   ;;  %v2160_v20 = vld [vmem:[%s3123_s0 + $0xa4] sm:$0xff]  }
   0x7   :  { %1918 = vmatpush3.bf16.msra.mxu0 %v2142_v2  ;;  %1974 = vmatpush3.bf16.msra.mxu1 %v2142_v2  ;;  %v2157_v17 = vld [vmem:[%s3123_s0 + $0x38] sm:$0xff]   ;;  %v2159_v19 = vld [vmem:[%s3123_s0 + $0x40] sm:$0xff]   ;;  %v2161_v21 = vld [vmem:[%s3123_s0 + $0x48] sm:$0xff]  }
   0x8   :  { %2027 = vmatprep.subr.bf16.mxu0 %v2197_v0  ;;  %2083 = vmatprep.subr.bf16.mxu1 %v2197_v0  ;;  %v2162_v22 = vld [vmem:[%s3123_s0 + $0xac] sm:$0xff]   ;;  %v2164_v24 = vld [vmem:[%s3123_s0 + $0xb4] sm:$0xff]   ;;  %v2166_v26 = vld [vmem:[%s3123_s0 + $0xbc] sm:$0xff]  }
   0x9   :  { %v2163_v23 = vld [vmem:[%s3123_s0 + $0x50] sm:$0xff]   ;;  %v2165_v25 = vld [vmem:[%s3123_s0 + $0x58] sm:$0xff]   ;;  %v2167_v27 = vld [vmem:[%s3123_s0 + $0x60] ss:$0 sps:$4 sm:$0x33]  }
   0xa   :  { %1920 = vmatmul.mubr.msk.bf16.vlgmr.msra.gmra.mrb[0].mxu0 %vm119_vm1, %v2143_v3  ;;  %1976 = vmatmul.mubr.msk.bf16.vlgmr.msra.gmra.mrb[0].mxu1 %vm119_vm1, %v2144_v4  ;;  %v2168_v28 = vld [vmem:[%s3123_s0 + $0xc4] ss:$0 sps:$4 sm:$0x33]   ;;  %v2169_v29 = vld [vmem:[%s3123_s0 + $0xc8] sm:$0xff]   ;;  %v2171_v31 = vld [vmem:[%s3123_s0 + $0xd0] sm:$0xff]  }
   0xb   :  { %2028 = vmatpush3.bf16.msra.mxu0 %v2141_v1  ;;  %2084 = vmatpush3.bf16.msra.mxu1 %v2141_v1  ;;  %v2170_v30 = vld [vmem:[%s3123_s0 + $0x12c] sm:$0xff]   ;;  %v2172_v32 = vld [vmem:[%s3123_s0 + $0x134] sm:$0xff]   ;;  %v2174_v34 = vld [vmem:[%s3123_s0 + $0x13c] sm:$0xff]  }
   0xc   :  { %1923 = vmatprep.mubr.msk.bf16.mxu0 %vm2198_vm0, %v2197_v0  ;;  %1979 = vmatprep.mubr.msk.bf16.mxu1 %vm2198_vm0, %v2197_v0  ;;  %v2173_v33 = vld [vmem:[%s3123_s0 + $0xd8] sm:$0xff]   ;;  %v2175_v35 = vld [vmem:[%s3123_s0 + $0xe0] sm:$0xff]   ;;  %v2177_v37 = vld [vmem:[%s3123_s0 + $0xe8] sm:$0xff]  }
   0xd   :  { %2029 = vmatprep.subr.bf16.mxu0 %v2197_v0  ;;  %2085 = vmatprep.subr.bf16.mxu1 %v2197_v0  ;;  %v2176_v36 = vld [vmem:[%s3123_s0 + $0x144] sm:$0xff]   ;;  %v2178_v38 = vld [vmem:[%s3123_s0 + $0x14c] sm:$0xff]   ;;  %v2180_v40 = vld [vmem:[%s3123_s0 + $0x154] sm:$0xff]  }
   0xe   :  { %v2179_v39 = vld [vmem:[%s3123_s0 + $0xf0] sm:$0xff]   ;;  %v2181_v41 = vld [vmem:[%s3123_s0 + $0xf8] sm:$0xff]   ;;  %v2183_v43 = vld [vmem:[%s3123_s0 + $0x100] sm:$0xff]  }
   0xf   :  { %2030 = vmatpush3.bf16.msra.mxu0 %v2142_v2  ;;  %2086 = vmatpush3.bf16.msra.mxu1 %v2142_v2  ;;  %v2182_v42 = vld [vmem:[%s3123_s0 + $0x15c] sm:$0xff]   ;;  %v2184_v44 = vld [vmem:[%s3123_s0 + $0x164] sm:$0xff]   ;;  %v2186_v46 = vld [vmem:[%s3123_s0 + $0x16c] sm:$0xff]  }
  0x10   :  { %v2185_v45 = vld [vmem:[%s3123_s0 + $0x108] sm:$0xff]   ;;  %v2187_v47 = vld [vmem:[%s3123_s0 + $0x110] sm:$0xff]   ;;  %v2189_v49 = vld [vmem:[%s3123_s0 + $0x118] sm:$0xff]  }
  0x11   :  { %v2188_v48 = vld [vmem:[%s3123_s0 + $0x174] sm:$0xff]   ;;  %v2190_v50 = vld [vmem:[%s3123_s0 + $0x17c] sm:$0xff]   ;;  %v2192_v52 = vld [vmem:[%s3123_s0 + $0x184] sm:$0xff]  }
  0x12   :  { %1924 = vmatmul.mubr.msk.bf16.gmra.mrb[4].mxu0 %vm119_vm1, %v2145_v5  ;;  %1980 = vmatmul.mubr.msk.bf16.gmra.mrb[4].mxu1 %vm119_vm1, %v2146_v6  ;;  %v2191_v51 = vld [vmem:[%s3123_s0 + $0x120] sm:$0xff]   ;;  %v2193_v53 = vld [vmem:[%s3123_s0 + $0x128] ss:$0 sps:$4 sm:$0x33]  }
  0x13   :  { %1927 = vmatprep.mubr.msk.bf16.mxu0 %vm2198_vm0, %v2197_v0  ;;  %1983 = vmatprep.mubr.msk.bf16.mxu1 %vm2198_vm0, %v2197_v0  ;;  %v2194_v54 = vld [vmem:[%s3123_s0 + $0x18c] ss:$0 sps:$4 sm:$0x33]  }
  0x1a   :  { %1928 = vmatmul.mubr.msk.bf16.gmra.mrb[8].mxu0 %vm119_vm1, %v2147_v7  ;;  %1984 = vmatmul.mubr.msk.bf16.gmra.mrb[8].mxu1 %vm119_vm1, %v2148_v8 }
  0x1b   :  { %1931 = vmatprep.mubr.msk.bf16.mxu0 %vm2198_vm0, %v2197_v0  ;;  %1987 = vmatprep.mubr.msk.bf16.mxu1 %vm2198_vm0, %v2197_v0 }
  0x22   :  { %1932 = vmatmul.mubr.msk.bf16.gmra.mrb[12].mxu0 %vm119_vm1, %v2149_v9  ;;  %1988 = vmatmul.mubr.msk.bf16.gmra.mrb[12].mxu1 %vm119_vm1, %v2150_v10 }
  0x23   :  { %1935 = vmatprep.mubr.msk.bf16.mxu0 %vm2198_vm0, %v2197_v0  ;;  %1991 = vmatprep.mubr.msk.bf16.mxu1 %vm2198_vm0, %v2197_v0 }
  0x2a   :  { %1936 = vmatmul.mubr.msk.bf16.gmra.mrb[16].mxu0 %vm119_vm1, %v2151_v11  ;;  %1992 = vmatmul.mubr.msk.bf16.gmra.mrb[16].mxu1 %vm119_vm1, %v2152_v12 }
  0x2b   :  { %1939 = vmatprep.mubr.msk.bf16.mxu0 %vm2198_vm0, %v2197_v0  ;;  %1995 = vmatprep.mubr.msk.bf16.mxu1 %vm2198_vm0, %v2197_v0 }
  0x32   :  { %1940 = vmatmul.mubr.msk.bf16.gmra.mrb[20].mxu0 %vm119_vm1, %v2153_v13  ;;  %1996 = vmatmul.mubr.msk.bf16.gmra.mrb[20].mxu1 %vm119_vm1, %v2154_v14 }
  0x33   :  { %1943 = vmatprep.mubr.msk.bf16.mxu0 %vm2198_vm0, %v2197_v0  ;;  %1999 = vmatprep.mubr.msk.bf16.mxu1 %vm2198_vm0, %v2197_v0 }
  0x3a   :  { %1944 = vmatmul.mubr.msk.bf16.gmra.mrb[24].mxu0 %vm119_vm1, %v2155_v15  ;;  %2000 = vmatmul.mubr.msk.bf16.gmra.mrb[24].mxu1 %vm119_vm1, %v2156_v16 }
  0x3b   :  { %1947 = vmatprep.mubr.msk.bf16.mxu0 %vm2198_vm0, %v2197_v0  ;;  %2003 = vmatprep.mubr.msk.bf16.mxu1 %vm2198_vm0, %v2197_v0 }
  0x42   :  { %1948 = vmatmul.mubr.msk.bf16.gmra.mrb[28].mxu0 %vm119_vm1, %v2157_v17  ;;  %2004 = vmatmul.mubr.msk.bf16.gmra.mrb[28].mxu1 %vm119_vm1, %v2158_v18 }
  0x43   :  { %1951 = vmatprep.mubr.msk.bf16.mxu0 %vm2198_vm0, %v2197_v0  ;;  %2007 = vmatprep.mubr.msk.bf16.mxu1 %vm2198_vm0, %v2197_v0 }
  0x4a   :  { %1952 = vmatmul.mubr.msk.bf16.gmra.mrb[32].mxu0 %vm119_vm1, %v2159_v19  ;;  %2008 = vmatmul.mubr.msk.bf16.gmra.mrb[32].mxu1 %vm119_vm1, %v2160_v20 }
  0x4b   :  { %1955 = vmatprep.mubr.msk.bf16.mxu0 %vm2198_vm0, %v2197_v0  ;;  %2011 = vmatprep.mubr.msk.bf16.mxu1 %vm2198_vm0, %v2197_v0 }
  0x52   :  { %1956 = vmatmul.mubr.msk.bf16.gmra.mrb[36].mxu0 %vm119_vm1, %v2161_v21  ;;  %2012 = vmatmul.mubr.msk.bf16.gmra.mrb[36].mxu1 %vm119_vm1, %v2162_v22 }
  0x53   :  { %1959 = vmatprep.mubr.msk.bf16.mxu0 %vm2198_vm0, %v2197_v0  ;;  %2015 = vmatprep.mubr.msk.bf16.mxu1 %vm2198_vm0, %v2197_v0 }
  0x5a   :  { %1960 = vmatmul.mubr.msk.bf16.gmra.mrb[40].mxu0 %vm119_vm1, %v2163_v23  ;;  %2016 = vmatmul.mubr.msk.bf16.gmra.mrb[40].mxu1 %vm119_vm1, %v2164_v24 }
  0x5b   :  { %1963 = vmatprep.mubr.msk.bf16.mxu0 %vm2198_vm0, %v2197_v0  ;;  %2019 = vmatprep.mubr.msk.bf16.mxu1 %vm2198_vm0, %v2197_v0 }
  0x62   :  { %1964 = vmatmul.mubr.msk.bf16.gmra.mrb[44].mxu0 %vm119_vm1, %v2165_v25  ;;  %2020 = vmatmul.mubr.msk.bf16.gmra.mrb[44].mxu1 %vm119_vm1, %v2166_v26 }
  0x63   :  { %1967 = vmatprep.mubr.msk.bf16.mxu0 %vm2198_vm0, %v2197_v0  ;;  %2023 = vmatprep.mubr.msk.bf16.mxu1 %vm2198_vm0, %v2197_v0 }
  0x6a   :  { %1968 = vmatmul.mubr.msk.bf16.gmra.mrb[48].mxu0 %vm119_vm1, %v2167_v27  ;;  %2024 = vmatmul.mubr.msk.bf16.gmra.mrb[48].mxu1 %vm119_vm1, %v2168_v28 }
  0x6b   :  { %2031 = vmatprep.mubr.msk.bf16.mxu0 %vm2198_vm0, %v2197_v0  ;;  %2087 = vmatprep.mubr.msk.bf16.mxu1 %vm2198_vm0, %v2197_v0 }
  0x72   :  { %2032 = vmatmul.mubr.msk.bf16.vlgmr.msra.gmra.mrb[52].mxu0 %vm119_vm1, %v2169_v29  ;;  %2088 = vmatmul.mubr.msk.bf16.vlgmr.msra.gmra.mrb[52].mxu1 %vm119_vm1, %v2170_v30 }
  0x73   :  { %2035 = vmatprep.mubr.msk.bf16.mxu0 %vm2198_vm0, %v2197_v0  ;;  %2091 = vmatprep.mubr.msk.bf16.mxu1 %vm2198_vm0, %v2197_v0 }
  0x7a   :  { %2036 = vmatmul.mubr.msk.bf16.gmra.mrb[56].mxu0 %vm119_vm1, %v2171_v31  ;;  %2092 = vmatmul.mubr.msk.bf16.gmra.mrb[56].mxu1 %vm119_vm1, %v2172_v32 }
  0x7b   :  { %2039 = vmatprep.mubr.msk.bf16.mxu0 %vm2198_vm0, %v2197_v0  ;;  %2095 = vmatprep.mubr.msk.bf16.mxu1 %vm2198_vm0, %v2197_v0 }
  0x82   :  { %2040 = vmatmul.mubr.msk.bf16.gmra.mrb[60].mxu0 %vm119_vm1, %v2173_v33  ;;  %2096 = vmatmul.mubr.msk.bf16.gmra.mrb[60].mxu1 %vm119_vm1, %v2174_v34 }
  0x83   :  { %2043 = vmatprep.mubr.msk.bf16.mxu0 %vm2198_vm0, %v2197_v0  ;;  %2099 = vmatprep.mubr.msk.bf16.mxu1 %vm2198_vm0, %v2197_v0 }
  0x8a   :  { %2044 = vmatmul.mubr.msk.bf16.gmra.mrb[64].mxu0 %vm119_vm1, %v2175_v35  ;;  %2100 = vmatmul.mubr.msk.bf16.gmra.mrb[64].mxu1 %vm119_vm1, %v2176_v36 }
  0x8b   :  { %2047 = vmatprep.mubr.msk.bf16.mxu0 %vm2198_vm0, %v2197_v0  ;;  %2103 = vmatprep.mubr.msk.bf16.mxu1 %vm2198_vm0, %v2197_v0 }
  0x92   :  { %2048 = vmatmul.mubr.msk.bf16.gmra.mrb[68].mxu0 %vm119_vm1, %v2177_v37  ;;  %2104 = vmatmul.mubr.msk.bf16.gmra.mrb[68].mxu1 %vm119_vm1, %v2178_v38 }
  0x93   :  { %2051 = vmatprep.mubr.msk.bf16.mxu0 %vm2198_vm0, %v2197_v0  ;;  %2107 = vmatprep.mubr.msk.bf16.mxu1 %vm2198_vm0, %v2197_v0 }
  0x9a   :  { %2052 = vmatmul.mubr.msk.bf16.gmra.mrb[72].mxu0 %vm119_vm1, %v2179_v39  ;;  %2108 = vmatmul.mubr.msk.bf16.gmra.mrb[72].mxu1 %vm119_vm1, %v2180_v40 }
  0x9b   :  { %2055 = vmatprep.mubr.msk.bf16.mxu0 %vm2198_vm0, %v2197_v0  ;;  %2111 = vmatprep.mubr.msk.bf16.mxu1 %vm2198_vm0, %v2197_v0 }
  0xa2   :  { %2056 = vmatmul.mubr.msk.bf16.gmra.mrb[76].mxu0 %vm119_vm1, %v2181_v41  ;;  %2112 = vmatmul.mubr.msk.bf16.gmra.mrb[76].mxu1 %vm119_vm1, %v2182_v42 }
  0xa3   :  { %2059 = vmatprep.mubr.msk.bf16.mxu0 %vm2198_vm0, %v2197_v0  ;;  %2115 = vmatprep.mubr.msk.bf16.mxu1 %vm2198_vm0, %v2197_v0 }
  0xaa   :  { %2060 = vmatmul.mubr.msk.bf16.gmra.mrb[80].mxu0 %vm119_vm1, %v2183_v43  ;;  %2116 = vmatmul.mubr.msk.bf16.gmra.mrb[80].mxu1 %vm119_vm1, %v2184_v44 }
  0xab   :  { %2063 = vmatprep.mubr.msk.bf16.mxu0 %vm2198_vm0, %v2197_v0  ;;  %2119 = vmatprep.mubr.msk.bf16.mxu1 %vm2198_vm0, %v2197_v0 }
  0xb2   :  { %2064 = vmatmul.mubr.msk.bf16.gmra.mrb[84].mxu0 %vm119_vm1, %v2185_v45  ;;  %2120 = vmatmul.mubr.msk.bf16.gmra.mrb[84].mxu1 %vm119_vm1, %v2186_v46 }
  0xb3   :  { %2067 = vmatprep.mubr.msk.bf16.mxu0 %vm2198_vm0, %v2197_v0  ;;  %2123 = vmatprep.mubr.msk.bf16.mxu1 %vm2198_vm0, %v2197_v0 }
  0xba   :  { %2068 = vmatmul.mubr.msk.bf16.gmra.mrb[88].mxu0 %vm119_vm1, %v2187_v47  ;;  %2124 = vmatmul.mubr.msk.bf16.gmra.mrb[88].mxu1 %vm119_vm1, %v2188_v48 }
  0xbb   :  { %2071 = vmatprep.mubr.msk.bf16.mxu0 %vm2198_vm0, %v2197_v0  ;;  %2127 = vmatprep.mubr.msk.bf16.mxu1 %vm2198_vm0, %v2197_v0 }
  0xc2   :  { %2072 = vmatmul.mubr.msk.bf16.gmra.mrb[92].mxu0 %vm119_vm1, %v2189_v49  ;;  %2128 = vmatmul.mubr.msk.bf16.gmra.mrb[92].mxu1 %vm119_vm1, %v2190_v50 }
  0xc3   :  { %2075 = vmatprep.mubr.msk.bf16.mxu0 %vm2198_vm0, %v2197_v0  ;;  %2131 = vmatprep.mubr.msk.bf16.mxu1 %vm2198_vm0, %v2197_v0 }
  0xca   :  { %2076 = vmatmul.mubr.msk.bf16.gmra.mrb[96].mxu0 %vm119_vm1, %v2191_v51  ;;  %2132 = vmatmul.mubr.msk.bf16.gmra.mrb[96].mxu1 %vm119_vm1, %v2192_v52 }
  0xcb   :  { %2079 = vmatprep.mubr.msk.bf16.mxu0 %vm2198_vm0, %v2197_v0  ;;  %2135 = vmatprep.mubr.msk.bf16.mxu1 %vm2198_vm0, %v2197_v0 }
  0xd2   :  { %2080 = vmatmul.mubr.msk.bf16.gmra.mrb[100].mxu0 %vm119_vm1, %v2193_v53  ;;  %2136 = vmatmul.mubr.msk.bf16.gmra.mrb[100].mxu1 %vm119_vm1, %v2194_v54 }
  0xdd   :  { %v2545_v55 = vpop.f32.mrb[0].mxu0  ;;  %v2547_v56 = vpop.f32.mrb[0].mxu1 }
  0xde   :  { %v1921_v58 = vpop.f32.mrb[1].mxu0  ;;  %v1977_v59 = vpop.f32.mrb[1].mxu1 }
  0xdf   :  { %v2551_v60 = vpop.f32.mrb[2].mxu0  ;;  %v2553_v61 = vpop.f32.mrb[2].mxu1 }
  0xe0   :  { %v1922_v63 = vpop.f32.mrb[3].mxu0  ;;  %v1978_v0 = vpop.f32.mrb[3].mxu1 }
  0xe5   :  { %v2557_v1 = vpop.f32.mrb[4].mxu0  ;;  %v2559_v2 = vpop.f32.mrb[4].mxu1 }
  0xe6   :  { %v1925_v4 = vpop.f32.mrb[5].mxu0  ;;  %v1981_v5 = vpop.f32.mrb[5].mxu1 }
  0xe7   :  { %v2563_v6 = vpop.f32.mrb[6].mxu0  ;;  %v2565_v7 = vpop.f32.mrb[6].mxu1 }
  0xe8   :  { %v1926_v9 = vpop.f32.mrb[7].mxu0  ;;  %v1982_v10 = vpop.f32.mrb[7].mxu1 }
  0xed   :  { %v2569_v11 = vpop.f32.mrb[8].mxu0  ;;  %v2571_v12 = vpop.f32.mrb[8].mxu1 }
  0xee   :  { %v1929_v14 = vpop.f32.mrb[9].mxu0  ;;  %v1985_v15 = vpop.f32.mrb[9].mxu1 }
  0xef   :  { %v2575_v16 = vpop.f32.mrb[10].mxu0  ;;  %v2577_v17 = vpop.f32.mrb[10].mxu1 }
  0xf0   :  { %v1930_v19 = vpop.f32.mrb[11].mxu0  ;;  %v1986_v20 = vpop.f32.mrb[11].mxu1 }
  0xf5   :  { %v2581_v21 = vpop.f32.mrb[12].mxu0  ;;  %v2583_v22 = vpop.f32.mrb[12].mxu1 }
  0xf6   :  { %v1933_v24 = vpop.f32.mrb[13].mxu0  ;;  %v1989_v25 = vpop.f32.mrb[13].mxu1 }
  0xf7   :  { %v2587_v26 = vpop.f32.mrb[14].mxu0  ;;  %v2589_v27 = vpop.f32.mrb[14].mxu1 }
  0xf8   :  { %v1934_v29 = vpop.f32.mrb[15].mxu0  ;;  %v1990_v30 = vpop.f32.mrb[15].mxu1 }
  0xfd   :  { %v2593_v31 = vpop.f32.mrb[16].mxu0  ;;  %v2595_v32 = vpop.f32.mrb[16].mxu1 }
  0xfe   :  { %v1937_v34 = vpop.f32.mrb[17].mxu0  ;;  %v1993_v35 = vpop.f32.mrb[17].mxu1 }
  0xff   :  { %v2599_v36 = vpop.f32.mrb[18].mxu0  ;;  %v2601_v37 = vpop.f32.mrb[18].mxu1 }
 0x100   :  { %v1938_v39 = vpop.f32.mrb[19].mxu0  ;;  %v1994_v40 = vpop.f32.mrb[19].mxu1 }
 0x105   :  { %v2605_v41 = vpop.f32.mrb[20].mxu0  ;;  %v2607_v42 = vpop.f32.mrb[20].mxu1 }
 0x106   :  { %v1941_v44 = vpop.f32.mrb[21].mxu0  ;;  %v1997_v45 = vpop.f32.mrb[21].mxu1 }
 0x107   :  { %v2611_v46 = vpop.f32.mrb[22].mxu0  ;;  %v2613_v47 = vpop.f32.mrb[22].mxu1 }
 0x108   :  { %v1942_v49 = vpop.f32.mrb[23].mxu0  ;;  %v1998_v50 = vpop.f32.mrb[23].mxu1 }
 0x10d   :  { %v2617_v51 = vpop.f32.mrb[24].mxu0  ;;  %v2619_v52 = vpop.f32.mrb[24].mxu1 }
 0x10e   :  { %v1945_v54 = vpop.f32.mrb[25].mxu0  ;;  %v2001_v58 = vpop.f32.mrb[25].mxu1 }
 0x10f   :  { %v2623_v59 = vpop.f32.mrb[26].mxu0  ;;  %v2625_v63 = vpop.f32.mrb[26].mxu1 }
 0x110   :  { %v1946_v4 = vpop.f32.mrb[27].mxu0  ;;  %v2002_v5 = vpop.f32.mrb[27].mxu1 }
 0x115   :  { %v2629_v9 = vpop.f32.mrb[28].mxu0  ;;  %v2631_v10 = vpop.f32.mrb[28].mxu1 }
 0x116   :  { %v1949_v15 = vpop.f32.mrb[29].mxu0  ;;  %v2005_v19 = vpop.f32.mrb[29].mxu1 }
 0x117   :  { %v2635_v20 = vpop.f32.mrb[30].mxu0  ;;  %v2637_v24 = vpop.f32.mrb[30].mxu1 }
 0x118   :  { %v1950_v29 = vpop.f32.mrb[31].mxu0  ;;  %v2006_v30 = vpop.f32.mrb[31].mxu1 }
 0x11d   :  { %v2641_v34 = vpop.f32.mrb[32].mxu0  ;;  %v2643_v35 = vpop.f32.mrb[32].mxu1 }
 0x11e   :  { %v1953_v40 = vpop.f32.mrb[33].mxu0  ;;  %v2009_v44 = vpop.f32.mrb[33].mxu1 }
 0x11f   :  { %v2647_v45 = vpop.f32.mrb[34].mxu0  ;;  %v2649_v49 = vpop.f32.mrb[34].mxu1 }
 0x120   :  { %v1954_v54 = vpop.f32.mrb[35].mxu0  ;;  %v2010_v58 = vpop.f32.mrb[35].mxu1 }
 0x125   :  { %v2653_v4 = vpop.f32.mrb[36].mxu0  ;;  %v2655_v5 = vpop.f32.mrb[36].mxu1 }
 0x126   :  { %v1957_v19 = vpop.f32.mrb[37].mxu0  ;;  %v2013_v29 = vpop.f32.mrb[37].mxu1 }
 0x127   :  { %v2659_v30 = vpop.f32.mrb[38].mxu0  ;;  %v2661_v40 = vpop.f32.mrb[38].mxu1 }
 0x128   :  { %v1958_v39 = vpop.f32.mrb[39].mxu0  ;;  %v2014_v50 = vpop.f32.mrb[39].mxu1 }
 0x12d   :  { %v2665_v54 = vpop.f32.mrb[40].mxu0  ;;  %v2667_v58 = vpop.f32.mrb[40].mxu1 }
 0x12e   :  { %v1961_v14 = vpop.f32.mrb[41].mxu0  ;;  %v2017_v15 = vpop.f32.mrb[41].mxu1 }
 0x12f   :  { %v2671_v19 = vpop.f32.mrb[42].mxu0  ;;  %v2673_v29 = vpop.f32.mrb[42].mxu1 }
 0x130   :  { %v1962_v53 = vpop.f32.mrb[43].mxu0  ;;  %v2018_v44 = vpop.f32.mrb[43].mxu1 }
 0x135   :  { %v2677_v39 = vpop.f32.mrb[44].mxu0  ;;  %v2679_v50 = vpop.f32.mrb[44].mxu1 }
 0x136   :  { %v1965_v43 = vpop.f32.mrb[45].mxu0  ;;  %v2021_v25 = vpop.f32.mrb[45].mxu1 }
 0x137   :  { %v2683_v14 = vpop.f32.mrb[46].mxu0  ;;  %v2685_v15 = vpop.f32.mrb[46].mxu1 }
 0x138   :  { %3133 = vst [vmem:[#allocation2_spill] sm:$0xff] %v2685_v15  ;;  %v1966_v33 = vpop.f32.mrb[47].mxu0  ;;  %v2022_v0 = vpop.f32.mrb[47].mxu1 }
 0x139   :  { %v2698_v33 = vld [vmem:[%s3124_s2] ss:$0 sm:$0xff] }
 0x13d   :  { %v2689_v53 = vpop.f32.mrb[48].mxu0  ;;  %v2691_v44 = vpop.f32.mrb[48].mxu1 }
 0x13e   :  { %3134 = vst [vmem:[#allocation3_spill] sm:$0xff] %v2691_v44  ;;  %v1969_v23 = vpop.f32.mrb[49].mxu0  ;;  %v2025_v48 = vpop.f32.mrb[49].mxu1 }
 0x13f   :  { %v292_v43 = vpop.f32.mrb[50].mxu0  ;;  %v556_v25 = vpop.f32.mrb[50].mxu1  ;;  %v3135_v23 = vmax.f32 %v2545_v55, %v2547_v56 }
 0x140   :  { %v1970_v18 = vpop.f32.mrb[51].mxu0  ;;  %v2026_v13 = vpop.f32.mrb[51].mxu1 }
 0x145   :  { %v721_v8 = vpop.f32.mrb[52].mxu0  ;;  %v985_v3 = vpop.f32.mrb[52].mxu1 }
 0x146   :  { %v1112_v62 = vmax.f32 %v721_v8, %v985_v3  ;;  %v2033_v57 = vpop.f32.mrb[53].mxu0  ;;  %v2089_v38 = vpop.f32.mrb[53].mxu1 }
 0x147   :  { %v724_v0 = vpop.f32.mrb[54].mxu0  ;;  %v988_v15 = vpop.f32.mrb[54].mxu1  ;;  %v3136_v57 = vmax.f32 %v2551_v60, %v2553_v61  ;;  %v3137_v61 = vmax.f32 %v2557_v1, %v2559_v2 }
 0x148   :  { %v1137_v48 = vmax.f32 %v3135_v23, %v1112_v62  ;;  %v1113_v43 = vmax.f32 %v724_v0, %v988_v15  ;;  %v2034_v25 = vpop.f32.mrb[55].mxu0  ;;  %v2090_v18 = vpop.f32.mrb[55].mxu1 }
 0x14a   :  { %v2704_v13 = vadd.f32 %v2698_v33, %v1137_v48  ;;  %v1138_v3 = vmax.f32 %v3136_v57, %v1113_v43 }
 0x14c   :  { %v2710_v8 = vadd.f32 %v2698_v33, %v1138_v3  ;;  %v1192_v44 = vmax.f32 %v2704_v13, 0.0 }
 0x14d   :  { %v729_v38 = vpop.f32.mrb[56].mxu0  ;;  %v993_v28 = vpop.f32.mrb[56].mxu1 }
 0x14e   :  { %v3128_v55 = vmax.f32 %v2710_v8, 0.0  ;;  %v1114_v56 = vmax.f32 %v729_v38, %v993_v28  ;;  %v2037_v62 = vpop.f32.mrb[57].mxu0  ;;  %v2093_v15 = vpop.f32.mrb[57].mxu1  ;;  %v3138_v28 = vmax.f32 %v2563_v6, %v2565_v7  ;;  %v3139_v7 = vmax.f32 %v2569_v11, %v2571_v12 }
 0x14f   :  { %v732_v0 = vpop.f32.mrb[58].mxu0  ;;  %v996_v23 = vpop.f32.mrb[58].mxu1 }
 0x150   :  { %v1219_v60 = vadd.f32 %v3128_v55, %v1192_v44  ;;  %v1139_v48 = vmax.f32 %v3137_v61, %v1114_v56  ;;  %v1115_v43 = vmax.f32 %v732_v0, %v996_v23  ;;  %v2038_v25 = vpop.f32.mrb[59].mxu0  ;;  %v2094_v18 = vpop.f32.mrb[59].mxu1 }
 0x152   :  { %v2722_v57 = vadd.f32 %v2698_v33, %v1139_v48  ;;  %v1140_v3 = vmax.f32 %v3138_v28, %v1115_v43 }
 0x154   :  { %v1194_v38 = vmax.f32 %v2722_v57, 0.0  ;;  %v2729_v62 = vadd.f32 %v2698_v33, %v1140_v3 }
 0x155   :  { %v737_v15 = vpop.f32.mrb[60].mxu0  ;;  %v1001_v55 = vpop.f32.mrb[60].mxu1 }
 0x156   :  { %v1220_v1 = vadd.f32 %v1219_v60, %v1194_v38  ;;  %v1195_v2 = vmax.f32 %v2729_v62, 0.0  ;;  %v1116_v56 = vmax.f32 %v737_v15, %v1001_v55  ;;  %v2041_v0 = vpop.f32.mrb[61].mxu0  ;;  %v2097_v23 = vpop.f32.mrb[61].mxu1  ;;  %v3140_v55 = vmax.f32 %v2575_v16, %v2577_v17 }
 0x157   :  { %v740_v61 = vpop.f32.mrb[62].mxu0  ;;  %v1004_v48 = vpop.f32.mrb[62].mxu1  ;;  %v3141_v17 = vmax.f32 %v2581_v21, %v2583_v22 }
 0x158   :  { %v1221_v6 = vadd.f32 %v1220_v1, %v1195_v2  ;;  %v1141_v43 = vmax.f32 %v3139_v7, %v1116_v56  ;;  %v1117_v25 = vmax.f32 %v740_v61, %v1004_v48  ;;  %v2042_v18 = vpop.f32.mrb[63].mxu0  ;;  %v2098_v28 = vpop.f32.mrb[63].mxu1 }
 0x15a   :  { %v2740_v3 = vadd.f32 %v2698_v33, %v1141_v43  ;;  %v1142_v60 = vmax.f32 %v3140_v55, %v1117_v25 }
 0x15c   :  { %v1196_v15 = vmax.f32 %v2740_v3, 0.0  ;;  %v2747_v0 = vadd.f32 %v2698_v33, %v1142_v60 }
 0x15d   :  { %v745_v1 = vpop.f32.mrb[64].mxu0  ;;  %v1009_v23 = vpop.f32.mrb[64].mxu1 }
 0x15e   :  { %v1222_v11 = vadd.f32 %v1221_v6, %v1196_v15  ;;  %v1197_v12 = vmax.f32 %v2747_v0, 0.0  ;;  %v1118_v56 = vmax.f32 %v745_v1, %v1009_v23  ;;  %v2045_v61 = vpop.f32.mrb[65].mxu0  ;;  %v2101_v48 = vpop.f32.mrb[65].mxu1  ;;  %v3142_v6 = vmax.f32 %v2587_v26, %v2589_v27 }
 0x15f   :  { %v748_v7 = vpop.f32.mrb[66].mxu0  ;;  %v1012_v43 = vpop.f32.mrb[66].mxu1  ;;  %v3143_v27 = vmax.f32 %v2593_v31, %v2595_v32 }
 0x160   :  { %v1223_v16 = vadd.f32 %v1222_v11, %v1197_v12  ;;  %v1143_v25 = vmax.f32 %v3141_v17, %v1118_v56  ;;  %v1119_v18 = vmax.f32 %v748_v7, %v1012_v43  ;;  %v2046_v28 = vpop.f32.mrb[67].mxu0  ;;  %v2102_v55 = vpop.f32.mrb[67].mxu1 }
 0x162   :  { %v2758_v60 = vadd.f32 %v2698_v33, %v1143_v25  ;;  %v1144_v1 = vmax.f32 %v3142_v6, %v1119_v18 }
 0x164   :  { %v1198_v23 = vmax.f32 %v2758_v60, 0.0  ;;  %v2765_v61 = vadd.f32 %v2698_v33, %v1144_v1 }
 0x165   :  { %v753_v11 = vpop.f32.mrb[68].mxu0  ;;  %v1017_v48 = vpop.f32.mrb[68].mxu1 }
 0x166   :  { %v1224_v21 = vadd.f32 %v1223_v16, %v1198_v23  ;;  %v1199_v22 = vmax.f32 %v2765_v61, 0.0  ;;  %v1120_v56 = vmax.f32 %v753_v11, %v1017_v48  ;;  %v2049_v7 = vpop.f32.mrb[69].mxu0  ;;  %v2105_v43 = vpop.f32.mrb[69].mxu1  ;;  %v3144_v16 = vmax.f32 %v2599_v36, %v2601_v37 }
 0x167   :  { %v756_v17 = vpop.f32.mrb[70].mxu0  ;;  %v1020_v25 = vpop.f32.mrb[70].mxu1  ;;  %v3145_v37 = vmax.f32 %v2605_v41, %v2607_v42 }
 0x168   :  { %v1225_v26 = vadd.f32 %v1224_v21, %v1199_v22  ;;  %v1145_v18 = vmax.f32 %v3143_v27, %v1120_v56  ;;  %v1121_v28 = vmax.f32 %v756_v17, %v1020_v25  ;;  %v2050_v55 = vpop.f32.mrb[71].mxu0  ;;  %v2106_v6 = vpop.f32.mrb[71].mxu1 }
 0x16a   :  { %v2776_v1 = vadd.f32 %v2698_v33, %v1145_v18  ;;  %v1146_v11 = vmax.f32 %v3144_v16, %v1121_v28 }
 0x16c   :  { %v1200_v48 = vmax.f32 %v2776_v1, 0.0  ;;  %v2783_v7 = vadd.f32 %v2698_v33, %v1146_v11 }
 0x16d   :  { %v761_v21 = vpop.f32.mrb[72].mxu0  ;;  %v1025_v43 = vpop.f32.mrb[72].mxu1 }
 0x16e   :  { %v1226_v31 = vadd.f32 %v1225_v26, %v1200_v48  ;;  %v1201_v32 = vmax.f32 %v2783_v7, 0.0  ;;  %v1122_v56 = vmax.f32 %v761_v21, %v1025_v43  ;;  %v2053_v17 = vpop.f32.mrb[73].mxu0  ;;  %v2109_v25 = vpop.f32.mrb[73].mxu1  ;;  %v3146_v26 = vmax.f32 %v2611_v46, %v2613_v47 }
 0x16f   :  { %v764_v27 = vpop.f32.mrb[74].mxu0  ;;  %v1028_v18 = vpop.f32.mrb[74].mxu1  ;;  %v3147_v47 = vmax.f32 %v2617_v51, %v2619_v52 }
 0x170   :  { %v1227_v36 = vadd.f32 %v1226_v31, %v1201_v32  ;;  %v1147_v28 = vmax.f32 %v3145_v37, %v1122_v56  ;;  %v1123_v55 = vmax.f32 %v764_v27, %v1028_v18  ;;  %v2054_v6 = vpop.f32.mrb[75].mxu0  ;;  %v2110_v16 = vpop.f32.mrb[75].mxu1 }
 0x172   :  { %v2794_v11 = vadd.f32 %v2698_v33, %v1147_v28  ;;  %v1148_v21 = vmax.f32 %v3146_v26, %v1123_v55 }
 0x174   :  { %v1202_v43 = vmax.f32 %v2794_v11, 0.0  ;;  %v2801_v17 = vadd.f32 %v2698_v33, %v1148_v21 }
 0x175   :  { %v769_v31 = vpop.f32.mrb[76].mxu0  ;;  %v1033_v25 = vpop.f32.mrb[76].mxu1 }
 0x176   :  { %v1228_v41 = vadd.f32 %v1227_v36, %v1202_v43  ;;  %v1203_v42 = vmax.f32 %v2801_v17, 0.0  ;;  %v1124_v56 = vmax.f32 %v769_v31, %v1033_v25  ;;  %v2057_v27 = vpop.f32.mrb[77].mxu0  ;;  %v2113_v18 = vpop.f32.mrb[77].mxu1  ;;  %v3148_v36 = vmax.f32 %v2623_v59, %v2625_v63 }
 0x177   :  { %v772_v37 = vpop.f32.mrb[78].mxu0  ;;  %v1036_v28 = vpop.f32.mrb[78].mxu1  ;;  %v3149_v63 = vmax.f32 %v2629_v9, %v2631_v10 }
 0x178   :  { %v1229_v46 = vadd.f32 %v1228_v41, %v1203_v42  ;;  %v1149_v55 = vmax.f32 %v3147_v47, %v1124_v56  ;;  %v1125_v6 = vmax.f32 %v772_v37, %v1036_v28  ;;  %v2058_v16 = vpop.f32.mrb[79].mxu0  ;;  %v2114_v26 = vpop.f32.mrb[79].mxu1 }
 0x17a   :  { %v2812_v21 = vadd.f32 %v2698_v33, %v1149_v55  ;;  %v1150_v31 = vmax.f32 %v3148_v36, %v1125_v6 }
 0x17c   :  { %v1204_v25 = vmax.f32 %v2812_v21, 0.0  ;;  %v2819_v27 = vadd.f32 %v2698_v33, %v1150_v31 }
 0x17d   :  { %v777_v41 = vpop.f32.mrb[80].mxu0  ;;  %v1041_v18 = vpop.f32.mrb[80].mxu1 }
 0x17e   :  { %v1230_v51 = vadd.f32 %v1229_v46, %v1204_v25  ;;  %v1205_v52 = vmax.f32 %v2819_v27, 0.0  ;;  %v1126_v56 = vmax.f32 %v777_v41, %v1041_v18  ;;  %v2061_v37 = vpop.f32.mrb[81].mxu0  ;;  %v2117_v28 = vpop.f32.mrb[81].mxu1  ;;  %v3150_v46 = vmax.f32 %v2635_v20, %v2637_v24 }
 0x17f   :  { %v780_v47 = vpop.f32.mrb[82].mxu0  ;;  %v1044_v55 = vpop.f32.mrb[82].mxu1  ;;  %v3151_v24 = vmax.f32 %v2641_v34, %v2643_v35 }
 0x180   :  { %v1231_v59 = vadd.f32 %v1230_v51, %v1205_v52  ;;  %v1151_v6 = vmax.f32 %v3149_v63, %v1126_v56  ;;  %v1127_v16 = vmax.f32 %v780_v47, %v1044_v55  ;;  %v2062_v26 = vpop.f32.mrb[83].mxu0  ;;  %v2118_v36 = vpop.f32.mrb[83].mxu1 }
 0x182   :  { %v2830_v31 = vadd.f32 %v2698_v33, %v1151_v6  ;;  %v1152_v41 = vmax.f32 %v3150_v46, %v1127_v16 }
 0x184   :  { %v1206_v18 = vmax.f32 %v2830_v31, 0.0  ;;  %v2837_v37 = vadd.f32 %v2698_v33, %v1152_v41 }
 0x185   :  { %v785_v51 = vpop.f32.mrb[84].mxu0  ;;  %v1049_v28 = vpop.f32.mrb[84].mxu1 }
 0x186   :  { %v1232_v9 = vadd.f32 %v1231_v59, %v1206_v18  ;;  %v1207_v10 = vmax.f32 %v2837_v37, 0.0  ;;  %v1128_v56 = vmax.f32 %v785_v51, %v1049_v28  ;;  %v2065_v47 = vpop.f32.mrb[85].mxu0  ;;  %v2121_v55 = vpop.f32.mrb[85].mxu1  ;;  %v3152_v59 = vmax.f32 %v2647_v45, %v2649_v49 }
 0x187   :  { %v788_v63 = vpop.f32.mrb[86].mxu0  ;;  %v1052_v6 = vpop.f32.mrb[86].mxu1  ;;  %v3153_v49 = vmax.f32 %v2653_v4, %v2655_v5 }
 0x188   :  { %v1233_v20 = vadd.f32 %v1232_v9, %v1207_v10  ;;  %v1153_v16 = vmax.f32 %v3151_v24, %v1128_v56  ;;  %v1129_v26 = vmax.f32 %v788_v63, %v1052_v6  ;;  %v2066_v36 = vpop.f32.mrb[87].mxu0  ;;  %v2122_v46 = vpop.f32.mrb[87].mxu1 }
 0x18a   :  { %v2848_v41 = vadd.f32 %v2698_v33, %v1153_v16  ;;  %v1154_v51 = vmax.f32 %v3152_v59, %v1129_v26 }
 0x18c   :  { %v1208_v28 = vmax.f32 %v2848_v41, 0.0  ;;  %v2855_v47 = vadd.f32 %v2698_v33, %v1154_v51 }
 0x18d   :  { %v793_v9 = vpop.f32.mrb[88].mxu0  ;;  %v1057_v55 = vpop.f32.mrb[88].mxu1 }
 0x18e   :  { %v1234_v34 = vadd.f32 %v1233_v20, %v1208_v28  ;;  %v3132_v35 = vmax.f32 %v2855_v47, 0.0  ;;  %v1130_v56 = vmax.f32 %v793_v9, %v1057_v55  ;;  %v2069_v63 = vpop.f32.mrb[89].mxu0  ;;  %v2125_v6 = vpop.f32.mrb[89].mxu1  ;;  %v3154_v20 = vmax.f32 %v2659_v30, %v2661_v40 }
 0x18f   :  { %v796_v24 = vpop.f32.mrb[90].mxu0  ;;  %v1060_v16 = vpop.f32.mrb[90].mxu1  ;;  %v3155_v40 = vmax.f32 %v2665_v54, %v2667_v58 }
 0x190   :  { %v1235_v45 = vadd.f32 %v1234_v34, %v3132_v35  ;;  %v1155_v26 = vmax.f32 %v3153_v49, %v1130_v56  ;;  %v1131_v36 = vmax.f32 %v796_v24, %v1060_v16  ;;  %v2070_v46 = vpop.f32.mrb[91].mxu0  ;;  %v2126_v59 = vpop.f32.mrb[91].mxu1 }
 0x192   :  { %v2866_v51 = vadd.f32 %v2698_v33, %v1155_v26  ;;  %v1156_v9 = vmax.f32 %v3154_v20, %v1131_v36 }
 0x194   :  { %v3131_v55 = vmax.f32 %v2866_v51, 0.0  ;;  %v2873_v63 = vadd.f32 %v2698_v33, %v1156_v9 }
 0x195   :  { %v801_v34 = vpop.f32.mrb[92].mxu0  ;;  %v1065_v6 = vpop.f32.mrb[92].mxu1 }
 0x196   :  { %v1236_v4 = vadd.f32 %v1235_v45, %v3131_v55  ;;  %v3129_v5 = vmax.f32 %v2873_v63, 0.0  ;;  %v1132_v56 = vmax.f32 %v801_v34, %v1065_v6  ;;  %v2073_v24 = vpop.f32.mrb[93].mxu0  ;;  %v2129_v16 = vpop.f32.mrb[93].mxu1  ;;  %v3156_v45 = vmax.f32 %v2671_v19, %v2673_v29 }
 0x197   :  { %v804_v49 = vpop.f32.mrb[94].mxu0  ;;  %v1068_v26 = vpop.f32.mrb[94].mxu1  ;;  %v3157_v19 = vmax.f32 %v2677_v39, %v2679_v50 }
 0x198   :  { %v1237_v30 = vadd.f32 %v1236_v4, %v3129_v5  ;;  %v1157_v36 = vmax.f32 %v3155_v40, %v1132_v56  ;;  %v1133_v46 = vmax.f32 %v804_v49, %v1068_v26  ;;  %v2074_v59 = vpop.f32.mrb[95].mxu0  ;;  %v2130_v20 = vpop.f32.mrb[95].mxu1  ;;  %v3158_v5 = vld [vmem:[#allocation2_spill] sm:$0xff] }
 0x19a   :  { %v2884_v9 = vadd.f32 %v2698_v33, %v1157_v36  ;;  %v1158_v34 = vmax.f32 %v3156_v45, %v1133_v46 }
 0x19c   :  { %v3130_v6 = vmax.f32 %v2884_v9, 0.0  ;;  %v2891_v24 = vadd.f32 %v2698_v33, %v1158_v34 }
 0x19d   :  { %v809_v4 = vpop.f32.mrb[96].mxu0  ;;  %v1073_v16 = vpop.f32.mrb[96].mxu1 }
 0x19e   :  { %v1238_v54 = vadd.f32 %v1237_v30, %v3130_v6  ;;  %v1213_v58 = vmax.f32 %v2891_v24, 0.0  ;;  %v1134_v56 = vmax.f32 %v809_v4, %v1073_v16  ;;  %v2077_v49 = vpop.f32.mrb[97].mxu0  ;;  %v2133_v26 = vpop.f32.mrb[97].mxu1  ;;  %v3159_v30 = vmax.f32 %v2683_v14, %v3158_v5 }
 0x19f   :  { %v812_v40 = vpop.f32.mrb[98].mxu0  ;;  %v1076_v36 = vpop.f32.mrb[98].mxu1 }
 0x1a0   :  { %v1239_v59 = vadd.f32 %v1238_v54, %v1213_v58  ;;  %v1159_v29 = vmax.f32 %v3157_v19, %v1134_v56  ;;  %v1135_v46 = vmax.f32 %v812_v40, %v1076_v36  ;;  %v2078_v20 = vpop.f32.mrb[99].mxu0  ;;  %v2134_v45 = vpop.f32.mrb[99].mxu1  ;;  %v3160_v36 = vld [vmem:[#allocation3_spill] sm:$0xff] }
 0x1a1   :  { %v3161_v19 = vmax.f32 %v2689_v53, %v3160_v36 }
 0x1a2   :  { %v1189_v34 = vadd.f32 %v2698_v33, %v1159_v29  ;;  %v1160_v6 = vmax.f32 %v3159_v30, %v1135_v46 }
 0x1a4   :  { %v1214_v24 = vmax.f32 %v1189_v34, 0.0  ;;  %v1190_v4 = vadd.f32 %v2698_v33, %v1160_v6 }
 0x1a5   :  { %v817_v16 = vpop.f32.mrb[100].mxu0  ;;  %v1081_v49 = vpop.f32.mrb[100].mxu1 }
 0x1a6   :  { %v1240_v26 = vadd.f32 %v1239_v59, %v1214_v24  ;;  %v1215_v54 = vmax.f32 %v1190_v4, 0.0  ;;  %v1136_v55 = vmax.f32 %v817_v16, %v1081_v49  ;;  %v2081_v35 = vpop.f32.mrb[101].mxu0  ;;  %v2137_v39 = vpop.f32.mrb[101].mxu1 }
 0x1a7   :  { %v820_v50 = vpop.f32.mrb[102].mxu0  ;;  %v1084_v56 = vpop.f32.mrb[102].mxu1 }
 0x1a8   :  { %v1241_v40 = vadd.f32 %v1240_v26, %v1215_v54  ;;  %v1161_v29 = vmax.f32 %v3161_v19, %v1136_v55  ;;  %v2082_v20 = vpop.f32.mrb[103].mxu0  ;;  %v2138_v14 = vpop.f32.mrb[103].mxu1  ;;  %v3162_v55 = vmax.f32 %v2710_v8, 0.0 }
 0x1aa   :  { %v1191_v5 = vadd.f32 %v2698_v33, %v1161_v29 }
 0x1ac   :  { %v1216_v6 = vmax.f32 %v1191_v5, 0.0 }
 0x1ae   :  { %v1243_v46 = vsel %vm1242_vm2, %v1216_v6, 0.0 }
 0x1af   :  { %v1244_v59 = vadd.f32 %v1243_v46, %v1241_v40 }
 0x1b1   :  { %v1245_v45 = vrot.slane %v1244_v59, 4 }
 0x1b3   :  { %v1246_v34 = vadd.f32 %v1245_v45, %v1244_v59 }
 0x1b5   :  { %v1247_v35 = vrot.slane %v1246_v34, 2 }
 0x1b7   :  { %v1248_v30 = vadd.f32 %v1247_v35, %v1246_v34 }
 0x1b9   :  { %v1249_v4 = vrot.slane %v1248_v30, 1 }
 0x1bb   :  { %v1250_v16 = vadd.f32 %v1249_v4, %v1248_v30 }
 0x1bd   :  { %v1252_v49 = vmul.f32 0.0051020407, %v1250_v16 }
 0x1bf   :  { %v2911_v53 = vsub.f32 %v1192_v44, %v1252_v49  ;;  %v2915_v26 = vsub.f32 %v3162_v55, %v1252_v49  ;;  %v2919_v33 = vsub.f32 %v1194_v38, %v1252_v49  ;;  %v2923_v39 = vsub.f32 %v1195_v2, %v1252_v49 }
 0x1c0   :  { %v2927_v50 = vsub.f32 %v1196_v15, %v1252_v49  ;;  %v2931_v44 = vsub.f32 %v1197_v12, %v1252_v49  ;;  %v2935_v13 = vsub.f32 %v1198_v23, %v1252_v49  ;;  %v2939_v8 = vsub.f32 %v1199_v22, %v1252_v49 }
 0x1c1   :  { %v2943_v57 = vsub.f32 %v1200_v48, %v1252_v49  ;;  %v2947_v38 = vsub.f32 %v1201_v32, %v1252_v49  ;;  %v2951_v62 = vsub.f32 %v1202_v43, %v1252_v49  ;;  %v2955_v2 = vsub.f32 %v1203_v42, %v1252_v49 }
 0x1c2   :  { %v2959_v3 = vsub.f32 %v1204_v25, %v1252_v49  ;;  %v2963_v15 = vsub.f32 %v1205_v52, %v1252_v49  ;;  %v2967_v0 = vsub.f32 %v1206_v18, %v1252_v49  ;;  %v2971_v12 = vsub.f32 %v1207_v10, %v1252_v49 }
 0x1c3   :  { %v2975_v60 = vsub.f32 %v1208_v28, %v1252_v49  ;;  %v3163_v23 = vmax.f32 %v2855_v47, 0.0  ;;  %v3164_v22 = vmax.f32 %v2866_v51, 0.0  ;;  %v3165_v48 = vmax.f32 %v2873_v63, 0.0 }
 0x1c4   :  { %v3166_v32 = vmax.f32 %v2884_v9, 0.0  ;;  %v2993_v43 = vsub.f32 %v1213_v58, %v1252_v49  ;;  %v2995_v17 = vsub.f32 %v1214_v24, %v1252_v49  ;;  %v2997_v42 = vsub.f32 %v1215_v54, %v1252_v49 }
 0x1c5   :  { %v2979_v61 = vsub.f32 %v3163_v23, %v1252_v49  ;;  %v2983_v1 = vsub.f32 %v3164_v22, %v1252_v49  ;;  %v2987_v7 = vsub.f32 %v3165_v48, %v1252_v49  ;;  %v2999_v21 = vsub.f32 %v1216_v6, %v1252_v49 }
 0x1c6   :  { %v2991_v11 = vsub.f32 %v3166_v32, %v1252_v49  ;;  %v1278_v25 = vmul.f32 %v2911_v53, %v2911_v53  ;;  %v1279_v27 = vmul.f32 %v2915_v26, %v2915_v26  ;;  %v1280_v52 = vmul.f32 %v2919_v33, %v2919_v33 }
 0x1c7   :  { %v1302_v31 = vmul.f32 %v2999_v21, %v2999_v21  ;;  %v1281_v37 = vmul.f32 %v2923_v39, %v2923_v39  ;;  %v1282_v28 = vmul.f32 %v2927_v50, %v2927_v50  ;;  %v1283_v51 = vmul.f32 %v2931_v44, %v2931_v44 }
 0x1c8   :  { %v1303_v18 = vadd.f32 %v1279_v27, %v1278_v25  ;;  %v1284_v9 = vmul.f32 %v2935_v13, %v2935_v13  ;;  %v1285_v24 = vmul.f32 %v2939_v8, %v2939_v8  ;;  %v1286_v56 = vmul.f32 %v2943_v57, %v2943_v57 }
 0x1c9   :  { %v1326_v41 = vsel %vm1242_vm2, %v1302_v31, 0.0  ;;  %v1287_v36 = vmul.f32 %v2947_v38, %v2947_v38  ;;  %v1288_v29 = vmul.f32 %v2951_v62, %v2951_v62  ;;  %v1289_v14 = vmul.f32 %v2955_v2, %v2955_v2 }
 0x1ca   :  { %v1304_v10 = vadd.f32 %v1303_v18, %v1280_v52  ;;  %v1290_v6 = vmul.f32 %v2959_v3, %v2959_v3  ;;  %v1291_v59 = vmul.f32 %v2963_v15, %v2963_v15  ;;  %v1292_v34 = vmul.f32 %v2967_v0, %v2967_v0 }
 0x1cb   :  { %v1293_v30 = vmul.f32 %v2971_v12, %v2971_v12  ;;  %v1294_v16 = vmul.f32 %v2975_v60, %v2975_v60  ;;  %v1295_v55 = vmul.f32 %v2979_v61, %v2979_v61  ;;  %v1296_v22 = vmul.f32 %v2983_v1, %v2983_v1 }
 0x1cc   :  { %v1305_v47 = vadd.f32 %v1304_v10, %v1281_v37  ;;  %v1297_v32 = vmul.f32 %v2987_v7, %v2987_v7  ;;  %v1298_v27 = vmul.f32 %v2991_v11, %v2991_v11  ;;  %v1299_v31 = vmul.f32 %v2993_v43, %v2993_v43 }
 0x1cd   :  { %v1300_v37 = vmul.f32 %v2995_v17, %v2995_v17 }
 0x1ce   :  { %v1306_v63 = vadd.f32 %v1305_v47, %v1282_v28  ;;  %v1301_v28 = vmul.f32 %v2997_v42, %v2997_v42 }
 0x1d0   :  { %v1307_v58 = vadd.f32 %v1306_v63, %v1283_v51 }
 0x1d2   :  { %v1308_v54 = vadd.f32 %v1307_v58, %v1284_v9 }
 0x1d4   :  { %v1309_v40 = vadd.f32 %v1308_v54, %v1285_v24 }
 0x1d6   :  { %v1310_v19 = vadd.f32 %v1309_v40, %v1286_v56 }
 0x1d8   :  { %v1311_v20 = vadd.f32 %v1310_v19, %v1287_v36 }
 0x1da   :  { %v1312_v5 = vadd.f32 %v1311_v20, %v1288_v29 }
 0x1dc   :  { %v1313_v46 = vadd.f32 %v1312_v5, %v1289_v14 }
 0x1de   :  { %v1314_v45 = vadd.f32 %v1313_v46, %v1290_v6 }
 0x1e0   :  { %v1315_v35 = vadd.f32 %v1314_v45, %v1291_v59 }
 0x1e2   :  { %v1316_v4 = vadd.f32 %v1315_v35, %v1292_v34 }
 0x1e4   :  { %v1317_v49 = vadd.f32 %v1316_v4, %v1293_v30 }
 0x1e6   :  { %v1318_v23 = vadd.f32 %v1317_v49, %v1294_v16 }
 0x1e8   :  { %v1319_v48 = vadd.f32 %v1318_v23, %v1295_v55 }
 0x1ea   :  { %v1320_v25 = vadd.f32 %v1319_v48, %v1296_v22 }
 0x1ec   :  { %v1321_v52 = vadd.f32 %v1320_v25, %v1297_v32 }
 0x1ee   :  { %v1322_v18 = vadd.f32 %v1321_v52, %v1298_v27 }
 0x1f0   :  { %v1323_v10 = vadd.f32 %v1322_v18, %v1299_v31 }
 0x1f2   :  { %v1324_v47 = vadd.f32 %v1323_v10, %v1300_v37 }
 0x1f4   :  { %v1325_v51 = vadd.f32 %v1324_v47, %v1301_v28 }
 0x1f6   :  { %v1327_v63 = vadd.f32 %v1326_v41, %v1325_v51 }
 0x1f8   :  { %v1328_v9 = vrot.slane %v1327_v63, 4 }
 0x1fa   :  { %v1329_v58 = vadd.f32 %v1328_v9, %v1327_v63 }
 0x1fc   :  { %v1330_v24 = vrot.slane %v1329_v58, 2 }
 0x1fe   :  { %v1331_v54 = vadd.f32 %v1330_v24, %v1329_v58 }
 0x200   :  { %v1332_v56 = vrot.slane %v1331_v54, 1 }
 0x202   :  { %v1333_v40 = vadd.f32 %v1332_v56, %v1331_v54 }
 0x204   :  { %v1334_v36 = vmul.f32 0.0051020407, %v1333_v40 }
 0x206   :  { %v1335_v19 = vadd.f32 1e-05, %v1334_v36 }
 0x208   :  { %2195 = vrsqrt.f32 %v1335_v19 }
 0x212   :  { %v2196_v29 = vpop.eup %2195 }
 0x213   :  { %v1337_v20 = vmul.f32 %v2196_v29, %v2911_v53  ;;  %v1338_v14 = vmul.f32 %v2196_v29, %v2915_v26  ;;  %v1339_v5 = vmul.f32 %v2196_v29, %v2919_v33  ;;  %v1340_v6 = vmul.f32 %v2196_v29, %v2923_v39  ;;  %v1732_v33 = vld [vmem:[%s3124_s2 + $0x1] ss:$0 sm:$0xff] }
 0x214   :  { %v1341_v41 = vmul.f32 %v2196_v29, %v2927_v50  ;;  %v1342_v46 = vmul.f32 %v2196_v29, %v2931_v44  ;;  %v1343_v59 = vmul.f32 %v2196_v29, %v2935_v13  ;;  %v1344_v45 = vmul.f32 %v2196_v29, %v2939_v8 }
 0x215   :  { %v1345_v34 = vmul.f32 %v2196_v29, %v2943_v57  ;;  %v1346_v35 = vmul.f32 %v2196_v29, %v2947_v38  ;;  %v1347_v53 = vmul.f32 %v2196_v29, %v2951_v62  ;;  %v1348_v26 = vmul.f32 %v2196_v29, %v2955_v2 }
 0x216   :  { %v1349_v39 = vmul.f32 %v2196_v29, %v2959_v3  ;;  %v1350_v50 = vmul.f32 %v2196_v29, %v2963_v15  ;;  %v1351_v44 = vmul.f32 %v2196_v29, %v2967_v0  ;;  %v1352_v13 = vmul.f32 %v2196_v29, %v2971_v12 }
 0x217   :  { %v1353_v8 = vmul.f32 %v2196_v29, %v2975_v60  ;;  %v1354_v57 = vmul.f32 %v2196_v29, %v2979_v61  ;;  %v1355_v38 = vmul.f32 %v2196_v29, %v2983_v1  ;;  %v1356_v62 = vmul.f32 %v2196_v29, %v2987_v7 }
 0x218   :  { %v1357_v2 = vmul.f32 %v2196_v29, %v2991_v11  ;;  %v1358_v30 = vmul.f32 %v2196_v29, %v2993_v43  ;;  %v1359_v3 = vmul.f32 %v2196_v29, %v2995_v17  ;;  %v1360_v15 = vmul.f32 %v2196_v29, %v2997_v42  ;;  %v1733_v11 = vld [vmem:[%s3124_s2 + $0x2] ss:$0 sm:$0xff] }
 0x219   :  { %v1361_v0 = vmul.f32 %v2196_v29, %v2999_v21  ;;  %v1366_v4 = vmul.f32 %v1732_v33, %v1337_v20  ;;  %v1367_v12 = vmul.f32 %v1732_v33, %v1338_v14  ;;  %v1368_v16 = vmul.f32 %v1732_v33, %v1339_v5 }
 0x21a   :  { %v1369_v60 = vmul.f32 %v1732_v33, %v1340_v6  ;;  %v1370_v49 = vmul.f32 %v1732_v33, %v1341_v41  ;;  %v1371_v61 = vmul.f32 %v1732_v33, %v1342_v46  ;;  %v1372_v55 = vmul.f32 %v1732_v33, %v1343_v59 }
 0x21b   :  { %v1373_v1 = vmul.f32 %v1732_v33, %v1344_v45  ;;  %v1374_v23 = vmul.f32 %v1732_v33, %v1345_v34  ;;  %v1375_v7 = vmul.f32 %v1732_v33, %v1346_v35  ;;  %v1376_v22 = vmul.f32 %v1732_v33, %v1347_v53 }
 0x21c   :  { %v1377_v43 = vmul.f32 %v1732_v33, %v1348_v26  ;;  %v1378_v17 = vmul.f32 %v1732_v33, %v1349_v39  ;;  %v1379_v42 = vmul.f32 %v1732_v33, %v1350_v50  ;;  %v1380_v48 = vmul.f32 %v1732_v33, %v1351_v44 }
 0x21d   :  { %v1381_v21 = vmul.f32 %v1732_v33, %v1352_v13  ;;  %v1382_v32 = vmul.f32 %v1732_v33, %v1353_v8  ;;  %v1383_v25 = vmul.f32 %v1732_v33, %v1354_v57  ;;  %v1384_v27 = vmul.f32 %v1732_v33, %v1355_v38 }
 0x21e   :  { %v1385_v52 = vmul.f32 %v1732_v33, %v1356_v62  ;;  %v1386_v31 = vmul.f32 %v1732_v33, %v1357_v2  ;;  %v1387_v18 = vmul.f32 %v1732_v33, %v1358_v30  ;;  %v1388_v37 = vmul.f32 %v1732_v33, %v1359_v3 }
 0x21f   :  { %v1389_v10 = vmul.f32 %v1732_v33, %v1360_v15  ;;  %v1390_v28 = vmul.f32 %v1732_v33, %v1361_v0  ;;  %v1395_v47 = vadd.f32 %v1733_v11, %v1366_v4  ;;  %v1396_v51 = vadd.f32 %v1733_v11, %v1367_v12 }
 0x220   :  { %v1397_v63 = vadd.f32 %v1733_v11, %v1368_v16  ;;  %v1398_v9 = vadd.f32 %v1733_v11, %v1369_v60  ;;  %v1399_v58 = vadd.f32 %v1733_v11, %v1370_v49  ;;  %v1400_v24 = vadd.f32 %v1733_v11, %v1371_v61 }
 0x221   :  { %v1401_v54 = vadd.f32 %v1733_v11, %v1372_v55  ;;  %v1402_v56 = vadd.f32 %v1733_v11, %v1373_v1  ;;  %v1403_v40 = vadd.f32 %v1733_v11, %v1374_v23  ;;  %v1404_v36 = vadd.f32 %v1733_v11, %v1375_v7 }
 0x222   :  { %v1405_v19 = vadd.f32 %v1733_v11, %v1376_v22  ;;  %v1406_v29 = vadd.f32 %v1733_v11, %v1377_v43  ;;  %v1407_v20 = vadd.f32 %v1733_v11, %v1378_v17  ;;  %v1408_v14 = vadd.f32 %v1733_v11, %v1379_v42 }
 0x223   :  { %v1409_v5 = vadd.f32 %v1733_v11, %v1380_v48  ;;  %v1410_v6 = vadd.f32 %v1733_v11, %v1381_v21  ;;  %v1411_v41 = vadd.f32 %v1733_v11, %v1382_v32  ;;  %v1412_v46 = vadd.f32 %v1733_v11, %v1383_v25 }
 0x224   :  { %v1413_v59 = vadd.f32 %v1733_v11, %v1384_v27  ;;  %v1414_v45 = vadd.f32 %v1733_v11, %v1385_v52  ;;  %v1415_v34 = vadd.f32 %v1733_v11, %v1386_v31  ;;  %v1416_v35 = vadd.f32 %v1733_v11, %v1387_v18 }
 0x225   :  { %v1417_v53 = vadd.f32 %v1733_v11, %v1388_v37  ;;  %v1418_v26 = vadd.f32 %v1733_v11, %v1389_v10  ;;  %v1419_v33 = vadd.f32 %v1733_v11, %v1390_v28  ;;  %v1787_v39 = vpack.c.bf16 %v1396_v51, %v1395_v47 }
 0x226   :  { %v1792_v50 = vpack.c.bf16 %v1398_v9, %v1397_v63  ;;  %v1797_v44 = vpack.c.bf16 %v1400_v24, %v1399_v58  ;;  %v1802_v13 = vpack.c.bf16 %v1402_v56, %v1401_v54  ;;  %v1807_v8 = vpack.c.bf16 %v1404_v36, %v1403_v40 }
 0x227   :  { %v1783_v57 = vpack.c.bf16 %v1419_v33, %v1419_v33  ;;  %1788 = vst [vmem:[%s3125_s3] sm:$0xff] %v1787_v39   ;;  %v1812_v38 = vpack.c.bf16 %v1406_v29, %v1405_v19  ;;  %v1817_v62 = vpack.c.bf16 %v1408_v14, %v1407_v20  ;;  %v1822_v2 = vpack.c.bf16 %v1410_v6, %v1409_v5 }
 0x228   :  { %1844 = vst [vmem:[%s3125_s3 + $0x8] sm:$0xff] %v1792_v50   ;;  %1845 = vst [vmem:[%s3125_s3 + $0x10] sm:$0xff] %v1797_v44   ;;  %v1827_v30 = vpack.c.bf16 %v1412_v46, %v1411_v41  ;;  %v1832_v3 = vpack.c.bf16 %v1414_v45, %v1413_v59  ;;  %v1837_v15 = vpack.c.bf16 %v1416_v35, %v1415_v34 }
 0x229   :  { %1846 = vst [vmem:[%s3125_s3 + $0x18] sm:$0xff] %v1802_v13   ;;  %1847 = vst [vmem:[%s3125_s3 + $0x20] sm:$0xff] %v1807_v8   ;;  %v1842_v0 = vpack.c.bf16 %v1418_v26, %v1417_v53 }
 0x22a   :  { %1848 = vst [vmem:[%s3125_s3 + $0x28] sm:$0xff] %v1812_v38   ;;  %1849 = vst [vmem:[%s3125_s3 + $0x30] sm:$0xff] %v1817_v62  }
 0x22b   :  { %1850 = vst [vmem:[%s3125_s3 + $0x38] sm:$0xff] %v1822_v2   ;;  %1545 = vst [vmem:[%s3125_s3 + $0x60] sm:$0x3] %v1783_v57 }
 0x22c   :  { %1851 = vst [vmem:[%s3125_s3 + $0x40] sm:$0xff] %v1827_v30   ;;  %1852 = vst [vmem:[%s3125_s3 + $0x48] sm:$0xff] %v1832_v3  }
 0x22d   :  { %1853 = vst [vmem:[%s3125_s3 + $0x50] sm:$0xff] %v1837_v15   ;;  %1854 = vst [vmem:[%s3125_s3 + $0x58] sm:$0xff] %v1842_v0  }

// kernel: mnist_model_forward.5
= control target key start
LH: loop header
LB: loop body
LE: loop exit
PB: predicated region body
PF: predicated region fallthrough
CT: control target
= control target key end

     0   :  { %v1506_v1 = vmov 0.0   ;;  %vm1507_vm0 = vmmov 0   ;;  %vm404_vm1 = vcmask 261120   ;;  %vm766_vm2 = vcmask 1043456   ;;  %s2082_s1 = inlined_call_operand.vmem [shape: bf16[288,128], index: 1, kind: input, shape index: {}]   ;;  %s2083_s0 = inlined_call_operand.vmem [shape: bf16[196,288], index: 0, kind: input, shape index: {}]   ;;  %s2084_s2 = inlined_call_operand.vmem [shape: f32[3,128], index: 2, kind: input, shape index: {}]   ;;  %s2085_s3 = inlined_call_operand.vmem [shape: bf16[196,128], index: 3, kind: output, shape index: {}]  }
   0x1   :  { %v1435_v0 = vld [vmem:[%s2082_s1 + $0x40] sm:$0xff]   ;;  %1377 = vmatprep.subr.bf16.mxu1 %v1506_v1  ;;  %1381 = vmatprep.mubr.msk.bf16.mxu1 %vm1507_vm0, %v1506_v1  ;;  %v1437_v3 = vld [vmem:[%s2082_s1 + $0x48] sm:$0xff]   ;;  %v1439_v5 = vld [vmem:[%s2082_s1 + $0x50] sm:$0xff]  }
   0x2   :  { %v1436_v2 = vld [vmem:[%s2082_s1] sm:$0xff]   ;;  %1268 = vmatprep.subr.bf16.mxu0 %v1435_v0  ;;  %v1438_v4 = vld [vmem:[%s2082_s1 + $0x8] sm:$0xff]   ;;  %v1440_v6 = vld [vmem:[%s2082_s1 + $0x10] sm:$0xff]  }
   0x3   :  { %1269 = vmatpush3.bf16.msra.mxu0 %v1436_v2  ;;  %v1441_v7 = vld [vmem:[%s2082_s1 + $0x58] sm:$0xff]   ;;  %v1443_v9 = vld [vmem:[%s2082_s1 + $0x60] sm:$0xff]   ;;  %v1445_v12 = vld [vmem:[%s2082_s1 + $0x68] sm:$0xff]  }
   0x4   :  { %1270 = vmatprep.subr.bf16.mxu0 %v1437_v3  ;;  %v1442_v8 = vld [vmem:[%s2082_s1 + $0x18] sm:$0xff]   ;;  %v1449_v10 = vld [vmem:[%s2082_s1 + $0x80] sm:$0xff]   ;;  %v1446_v13 = vld [vmem:[%s2082_s1 + $0x28] sm:$0xff]  }
   0x5   :  { %v1444_v11 = vld [vmem:[%s2082_s1 + $0x20] sm:$0xff]   ;;  %1378 = vmatpush3.bf16.msra.mxu1 %v1449_v10  ;;  %v1447_v14 = vld [vmem:[%s2082_s1 + $0x70] sm:$0xff]   ;;  %v1455_v16 = vld [vmem:[%s2082_s1 + $0x88] sm:$0xff]  }
   0x6   :  { %1379 = vmatprep.subr.bf16.mxu1 %v1506_v1  ;;  %v1454_v15 = vld [vmem:[%s2083_s0 + $0x4] ss:$12 sps:$4 sm:$0xff]   ;;  %v1456_v17 = vld [vmem:[%s2083_s0 + $0x8] ss:$12 sps:$4 sm:$0xff]   ;;  %v1450_v19 = vld [vmem:[%s2082_s1 + $0x78] sm:$0xff]  }
   0x7   :  { %1271 = vmatpush3.bf16.msra.mxu0 %v1438_v4  ;;  %476 = vmatprep.mubr.bf16.mxu0 %v1454_v15  ;;  %v1448_v18 = vld [vmem:[%s2082_s1 + $0x30] sm:$0xff]   ;;  %v1451_v20 = vld [vmem:[%s2082_s1 + $0x38] sm:$0xff]   ;;  %v1460_v21 = vld [vmem:[%s2083_s0 + $0x20] ss:$12 sps:$4 sm:$0xff]  }
   0x8   :  { %1272 = vmatprep.subr.bf16.mxu0 %v1439_v5  ;;  %v1452_v22 = vld [vmem:[%s2083_s0] ss:$12 sps:$4 sm:$0xff]   ;;  %v1457_v23 = vld [vmem:[%s2083_s0 + $0x1c] ss:$12 sps:$4 sm:$0xff]   ;;  %v1464_v24 = vld [vmem:[%s2083_s0 + $0x38] ss:$12 sps:$4 sm:$0xff]  }
   0x9   :  { %1380 = vmatpush3.bf16.msra.mxu1 %v1455_v16  ;;  %v1459_v25 = vld [vmem:[%s2083_s0 + $0x18] ss:$12 sps:$4 sm:$0xff]   ;;  %v1461_v26 = vld [vmem:[%s2083_s0 + $0x34] ss:$12 sps:$4 sm:$0xff]   ;;  %v1468_v27 = vld [vmem:[%s2083_s0 + $0x50] ss:$12 sps:$4 sm:$0xff]  }
   0xa   :  { %v1463_v28 = vld [vmem:[%s2083_s0 + $0x30] ss:$12 sps:$4 sm:$0xff]   ;;  %v1465_v29 = vld [vmem:[%s2083_s0 + $0x4c] ss:$12 sps:$4 sm:$0xff]   ;;  %v1472_v30 = vld [vmem:[%s2083_s0 + $0x68] ss:$12 sps:$4 sm:$0xff]  }
   0xb   :  { %1273 = vmatpush3.bf16.msra.mxu0 %v1440_v6  ;;  %v1467_v31 = vld [vmem:[%s2083_s0 + $0x48] ss:$12 sps:$4 sm:$0xff]   ;;  %v1469_v32 = vld [vmem:[%s2083_s0 + $0x64] ss:$12 sps:$4 sm:$0xff]   ;;  %v1476_v33 = vld [vmem:[%s2083_s0 + $0x80] ss:$12 sps:$4 sm:$0xff]  }
   0xc   :  { %1274 = vmatprep.subr.bf16.mxu0 %v1441_v7  ;;  %1382 = vmatmul.mubr.msk.bf16.vlgmr.msra.gmra.mrb[0].mxu1 %vm404_vm1, %v1456_v17  ;;  %v1471_v34 = vld [vmem:[%s2083_s0 + $0x60] ss:$12 sps:$4 sm:$0xff]   ;;  %v1473_v35 = vld [vmem:[%s2083_s0 + $0x7c] ss:$12 sps:$4 sm:$0xff]   ;;  %v1480_v36 = vld [vmem:[%s2083_s0 + $0x98] ss:$12 sps:$4 sm:$0xff]  }
   0xd   :  { %1385 = vmatprep.mubr.msk.bf16.mxu1 %vm1507_vm0, %v1506_v1  ;;  %v1475_v37 = vld [vmem:[%s2083_s0 + $0x78] ss:$12 sps:$4 sm:$0xff]   ;;  %v1477_v38 = vld [vmem:[%s2083_s0 + $0x94] ss:$12 sps:$4 sm:$0xff]   ;;  %v1484_v39 = vld [vmem:[%s2083_s0 + $0xb0] ss:$12 sps:$4 sm:$0xff]  }
   0xe   :  { %v1479_v40 = vld [vmem:[%s2083_s0 + $0x90] ss:$12 sps:$4 sm:$0xff]   ;;  %v1481_v41 = vld [vmem:[%s2083_s0 + $0xac] ss:$12 sps:$4 sm:$0xff]   ;;  %v1488_v42 = vld [vmem:[%s2083_s0 + $0xc8] ss:$12 sps:$4 sm:$0xff]  }
   0xf   :  { %1275 = vmatpush3.bf16.msra.mxu0 %v1442_v8  ;;  %v1483_v43 = vld [vmem:[%s2083_s0 + $0xa8] ss:$12 sps:$4 sm:$0xff]   ;;  %v1485_v44 = vld [vmem:[%s2083_s0 + $0xc4] ss:$12 sps:$4 sm:$0xff]   ;;  %v1492_v45 = vld [vmem:[%s2083_s0 + $0xe0] ss:$12 sps:$4 sm:$0xff]  }
  0x10   :  { %1276 = vmatprep.subr.bf16.mxu0 %v1443_v9  ;;  %v1487_v46 = vld [vmem:[%s2083_s0 + $0xc0] ss:$12 sps:$4 sm:$0xff]   ;;  %v1489_v47 = vld [vmem:[%s2083_s0 + $0xdc] ss:$12 sps:$4 sm:$0xff]   ;;  %v1496_v48 = vld [vmem:[%s2083_s0 + $0xf8] ss:$12 sps:$4 sm:$0xff]  }
  0x11   :  { %v1491_v49 = vld [vmem:[%s2083_s0 + $0xd8] ss:$12 sps:$4 sm:$0xff]   ;;  %v1493_v50 = vld [vmem:[%s2083_s0 + $0xf4] ss:$12 sps:$4 sm:$0xff]   ;;  %v1500_v51 = vld [vmem:[%s2083_s0 + $0x110] ss:$12 sps:$4 sm:$0xff]  }
  0x12   :  { %v1495_v52 = vld [vmem:[%s2083_s0 + $0xf0] ss:$12 sps:$4 sm:$0xff]   ;;  %v1497_v53 = vld [vmem:[%s2083_s0 + $0x10c] ss:$12 sps:$4 sm:$0xff]   ;;  %v63_v54 = vld [vmem:[%s2083_s0 + $0x120] sm:$0x33] }
  0x13   :  { %1277 = vmatpush3.bf16.msra.mxu0 %v1444_v11  ;;  %v1503_v55 = vld [vmem:[%s2083_s0 + $0x128] ss:$0 sps:$4 sm:$0x33]   ;;  %v1112_v57 = vcombine.high %v63_v54, %v63_v54  ;;  %v1111_v58 = vcombine.low %v63_v54, %v63_v54  ;;  %v1740_v4 = vld [vmem:[%s2084_s2] ss:$0 sm:$0xff] }
  0x14   :  { %1278 = vmatprep.subr.bf16.mxu0 %v1445_v12  ;;  %1386 = vmatmul.mubr.msk.bf16.gmra.mrb[4].mxu1 %vm404_vm1, %v1460_v21  ;;  %v1499_v56 = vld [vmem:[%s2083_s0 + $0x108] ss:$12 sps:$4 sm:$0xff]  }
  0x15   :  { %1389 = vmatprep.mubr.msk.bf16.mxu1 %vm1507_vm0, %v1506_v1 }
  0x17   :  { %1279 = vmatpush3.bf16.msra.mxu0 %v1446_v13 }
  0x18   :  { %1280 = vmatprep.subr.bf16.mxu0 %v1447_v14 }
  0x1b   :  { %1281 = vmatpush3.bf16.msra.mxu0 %v1448_v18 }
  0x1c   :  { %1282 = vmatprep.subr.bf16.mxu0 %v1450_v19  ;;  %1390 = vmatmul.mubr.msk.bf16.gmra.mrb[8].mxu1 %vm404_vm1, %v1464_v24 }
  0x1d   :  { %1393 = vmatprep.mubr.msk.bf16.mxu1 %vm1507_vm0, %v1506_v1 }
  0x1f   :  { %1283 = vmatpush3.bf16.msra.mxu0 %v1451_v20 }
  0x22   :  { %477 = vmatmul.mubr.bf16.vlgmr.msra.gmra.mrb[0].mxu0 %v1452_v22 }
  0x23   :  { %484 = vmatprep.mubr.bf16.mxu0 %v1457_v23 }
  0x24   :  { %1394 = vmatmul.mubr.msk.bf16.gmra.mrb[12].mxu1 %vm404_vm1, %v1468_v27 }
  0x25   :  { %1397 = vmatprep.mubr.msk.bf16.mxu1 %vm1507_vm0, %v1506_v1 }
  0x2a   :  { %485 = vmatmul.mubr.bf16.gmra.mrb[4].mxu0 %v1459_v25 }
  0x2b   :  { %492 = vmatprep.mubr.bf16.mxu0 %v1461_v26 }
  0x2c   :  { %1398 = vmatmul.mubr.msk.bf16.gmra.mrb[16].mxu1 %vm404_vm1, %v1472_v30 }
  0x2d   :  { %1401 = vmatprep.mubr.msk.bf16.mxu1 %vm1507_vm0, %v1506_v1 }
  0x32   :  { %493 = vmatmul.mubr.bf16.gmra.mrb[8].mxu0 %v1463_v28 }
  0x33   :  { %500 = vmatprep.mubr.bf16.mxu0 %v1465_v29 }
  0x34   :  { %1402 = vmatmul.mubr.msk.bf16.gmra.mrb[20].mxu1 %vm404_vm1, %v1476_v33 }
  0x35   :  { %1405 = vmatprep.mubr.msk.bf16.mxu1 %vm1507_vm0, %v1506_v1 }
  0x3a   :  { %501 = vmatmul.mubr.bf16.gmra.mrb[12].mxu0 %v1467_v31 }
  0x3b   :  { %508 = vmatprep.mubr.bf16.mxu0 %v1469_v32 }
  0x3c   :  { %1406 = vmatmul.mubr.msk.bf16.gmra.mrb[24].mxu1 %vm404_vm1, %v1480_v36 }
  0x3d   :  { %1409 = vmatprep.mubr.msk.bf16.mxu1 %vm1507_vm0, %v1506_v1 }
  0x42   :  { %509 = vmatmul.mubr.bf16.gmra.mrb[16].mxu0 %v1471_v34 }
  0x43   :  { %516 = vmatprep.mubr.bf16.mxu0 %v1473_v35 }
  0x44   :  { %1410 = vmatmul.mubr.msk.bf16.gmra.mrb[28].mxu1 %vm404_vm1, %v1484_v39 }
  0x45   :  { %1413 = vmatprep.mubr.msk.bf16.mxu1 %vm1507_vm0, %v1506_v1 }
  0x4a   :  { %517 = vmatmul.mubr.bf16.gmra.mrb[20].mxu0 %v1475_v37 }
  0x4b   :  { %524 = vmatprep.mubr.bf16.mxu0 %v1477_v38 }
  0x4c   :  { %1414 = vmatmul.mubr.msk.bf16.gmra.mrb[32].mxu1 %vm404_vm1, %v1488_v42 }
  0x4d   :  { %1417 = vmatprep.mubr.msk.bf16.mxu1 %vm1507_vm0, %v1506_v1 }
  0x52   :  { %525 = vmatmul.mubr.bf16.gmra.mrb[24].mxu0 %v1479_v40 }
  0x53   :  { %532 = vmatprep.mubr.bf16.mxu0 %v1481_v41 }
  0x54   :  { %1418 = vmatmul.mubr.msk.bf16.gmra.mrb[36].mxu1 %vm404_vm1, %v1492_v45 }
  0x55   :  { %1421 = vmatprep.mubr.msk.bf16.mxu1 %vm1507_vm0, %v1506_v1 }
  0x5a   :  { %533 = vmatmul.mubr.bf16.gmra.mrb[28].mxu0 %v1483_v43 }
  0x5b   :  { %540 = vmatprep.mubr.bf16.mxu0 %v1485_v44 }
  0x5c   :  { %1422 = vmatmul.mubr.msk.bf16.gmra.mrb[40].mxu1 %vm404_vm1, %v1496_v48 }
  0x5d   :  { %1425 = vmatprep.mubr.msk.bf16.mxu1 %vm1507_vm0, %v1506_v1 }
  0x62   :  { %541 = vmatmul.mubr.bf16.gmra.mrb[32].mxu0 %v1487_v46 }
  0x63   :  { %548 = vmatprep.mubr.bf16.mxu0 %v1489_v47 }
  0x64   :  { %1426 = vmatmul.mubr.msk.bf16.gmra.mrb[44].mxu1 %vm404_vm1, %v1500_v51 }
  0x65   :  { %1429 = vmatprep.mubr.msk.bf16.mxu1 %vm1507_vm0, %v1506_v1 }
  0x6a   :  { %549 = vmatmul.mubr.bf16.gmra.mrb[36].mxu0 %v1491_v49 }
  0x6b   :  { %556 = vmatprep.mubr.bf16.mxu0 %v1493_v50 }
  0x6c   :  { %1430 = vmatmul.mubr.msk.bf16.gmra.mrb[48].mxu1 %vm404_vm1, %v1503_v55 }
  0x72   :  { %557 = vmatmul.mubr.bf16.gmra.mrb[40].mxu0 %v1495_v52 }
  0x73   :  { %564 = vmatprep.mubr.bf16.mxu0 %v1497_v53 }
  0x7a   :  { %565 = vmatmul.mubr.bf16.gmra.mrb[44].mxu0 %v1499_v56 }
  0x7b   :  { %572 = vmatprep.mubr.bf16.mxu0 %v1112_v57 }
  0x82   :  { %573 = vmatmul.mubr.bf16.gmra.mrb[48].mxu0 %v1111_v58 }
  0xdf   :  { %v614_v59 = vpop.f32.mrb[0].mxu1 }
  0xe0   :  { %v1383_v60 = vpop.f32.mrb[1].mxu1 }
  0xe1   :  { %v617_v61 = vpop.f32.mrb[2].mxu1 }
  0xe2   :  { %v1384_v62 = vpop.f32.mrb[3].mxu1 }
  0xe7   :  { %v622_v63 = vpop.f32.mrb[4].mxu1 }
  0xe8   :  { %v1387_v0 = vpop.f32.mrb[5].mxu1 }
  0xe9   :  { %v625_v2 = vpop.f32.mrb[6].mxu1 }
  0xea   :  { %v1388_v5 = vpop.f32.mrb[7].mxu1 }
  0xef   :  { %v630_v13 = vpop.f32.mrb[8].mxu1 }
  0xf0   :  { %v1391_v14 = vpop.f32.mrb[9].mxu1 }
  0xf1   :  { %v633_v17 = vpop.f32.mrb[10].mxu1 }
  0xf2   :  { %v1392_v19 = vpop.f32.mrb[11].mxu1 }
  0xf5   :  { %v1284_v1 = vpop.f32.mrb[0].mxu0 }
  0xf6   :  { %v1285_v3 = vpop.f32.mrb[1].mxu0 }
  0xf7   :  { %v1286_v6 = vadd.f32 %v1285_v3, %v1284_v1  ;;  %v1287_v7 = vpop.f32.mrb[2].mxu0  ;;  %v638_v30 = vpop.f32.mrb[12].mxu1 }
  0xf8   :  { %v1288_v8 = vpop.f32.mrb[3].mxu0  ;;  %v1395_v31 = vpop.f32.mrb[13].mxu1 }
  0xf9   :  { %v479_v9 = vadd.f32 %v1286_v6, %v1740_v4  ;;  %v1289_v10 = vadd.f32 %v1288_v8, %v1287_v7  ;;  %v641_v35 = vpop.f32.mrb[14].mxu1 }
  0xfa   :  { %v1396_v37 = vpop.f32.mrb[15].mxu1 }
  0xfb   :  { %v1743_v11 = vadd.f32 %v614_v59, %v479_v9  ;;  %v482_v12 = vadd.f32 %v1289_v10, %v1740_v4 }
  0xfd   :  { %v1746_v15 = vadd.f32 %v617_v61, %v482_v12  ;;  %v1290_v16 = vpop.f32.mrb[4].mxu0  ;;  %v716_v20 = vmax.f32 %v1743_v11, 0.0 }
  0xfe   :  { %v1291_v18 = vpop.f32.mrb[5].mxu0 }
  0xff   :  { %v717_v21 = vmax.f32 %v1746_v15, 0.0  ;;  %v1292_v22 = vadd.f32 %v1291_v18, %v1290_v16  ;;  %v1293_v23 = vpop.f32.mrb[6].mxu0  ;;  %v646_v48 = vpop.f32.mrb[16].mxu1 }
 0x100   :  { %v1294_v24 = vpop.f32.mrb[7].mxu0  ;;  %v1399_v49 = vpop.f32.mrb[17].mxu1 }
 0x101   :  { %v743_v25 = vadd.f32 %v717_v21, %v716_v20  ;;  %v487_v26 = vadd.f32 %v1292_v22, %v1740_v4  ;;  %v1295_v27 = vadd.f32 %v1294_v24, %v1293_v23  ;;  %v649_v53 = vpop.f32.mrb[18].mxu1 }
 0x102   :  { %v1400_v55 = vpop.f32.mrb[19].mxu1 }
 0x103   :  { %v1755_v28 = vadd.f32 %v622_v63, %v487_v26  ;;  %v490_v29 = vadd.f32 %v1295_v27, %v1740_v4 }
 0x105   :  { %v718_v32 = vmax.f32 %v1755_v28, 0.0  ;;  %v1759_v33 = vadd.f32 %v625_v2, %v490_v29  ;;  %v1296_v34 = vpop.f32.mrb[8].mxu0 }
 0x106   :  { %v1297_v36 = vpop.f32.mrb[9].mxu0 }
 0x107   :  { %v744_v38 = vadd.f32 %v743_v25, %v718_v32  ;;  %v719_v39 = vmax.f32 %v1759_v33, 0.0  ;;  %v1298_v40 = vadd.f32 %v1297_v36, %v1296_v34  ;;  %v1299_v41 = vpop.f32.mrb[10].mxu0  ;;  %v654_v2 = vpop.f32.mrb[20].mxu1 }
 0x108   :  { %v1300_v42 = vpop.f32.mrb[11].mxu0  ;;  %v1403_v3 = vpop.f32.mrb[21].mxu1 }
 0x109   :  { %v745_v43 = vadd.f32 %v744_v38, %v719_v39  ;;  %v495_v44 = vadd.f32 %v1298_v40, %v1740_v4  ;;  %v1301_v45 = vadd.f32 %v1300_v42, %v1299_v41  ;;  %v657_v8 = vpop.f32.mrb[22].mxu1 }
 0x10a   :  { %v1404_v10 = vpop.f32.mrb[23].mxu1 }
 0x10b   :  { %v1767_v46 = vadd.f32 %v630_v13, %v495_v44  ;;  %v498_v47 = vadd.f32 %v1301_v45, %v1740_v4 }
 0x10d   :  { %v720_v50 = vmax.f32 %v1767_v46, 0.0  ;;  %v1771_v51 = vadd.f32 %v633_v17, %v498_v47  ;;  %v1302_v52 = vpop.f32.mrb[12].mxu0 }
 0x10e   :  { %v1303_v54 = vpop.f32.mrb[13].mxu0 }
 0x10f   :  { %v746_v56 = vadd.f32 %v745_v43, %v720_v50  ;;  %v721_v57 = vmax.f32 %v1771_v51, 0.0  ;;  %v1304_v58 = vadd.f32 %v1303_v54, %v1302_v52  ;;  %v1305_v59 = vpop.f32.mrb[14].mxu0  ;;  %v662_v25 = vpop.f32.mrb[24].mxu1 }
 0x110   :  { %v1306_v60 = vpop.f32.mrb[15].mxu0  ;;  %v1407_v26 = vpop.f32.mrb[25].mxu1 }
 0x111   :  { %v747_v61 = vadd.f32 %v746_v56, %v721_v57  ;;  %v503_v62 = vadd.f32 %v1304_v58, %v1740_v4  ;;  %v1307_v63 = vadd.f32 %v1306_v60, %v1305_v59  ;;  %v665_v31 = vpop.f32.mrb[26].mxu1 }
 0x113   :  { %v1779_v0 = vadd.f32 %v638_v30, %v503_v62  ;;  %v506_v1 = vadd.f32 %v1307_v63, %v1740_v4 }
 0x115   :  { %v722_v5 = vmax.f32 %v1779_v0, 0.0  ;;  %v1783_v6 = vadd.f32 %v641_v35, %v506_v1  ;;  %v1308_v7 = vpop.f32.mrb[16].mxu0  ;;  %v1408_v35 = vpop.f32.mrb[27].mxu1 }
 0x116   :  { %v1309_v9 = vpop.f32.mrb[17].mxu0 }
 0x117   :  { %v748_v12 = vadd.f32 %v747_v61, %v722_v5  ;;  %v723_v13 = vmax.f32 %v1783_v6, 0.0  ;;  %v1310_v14 = vadd.f32 %v1309_v9, %v1308_v7  ;;  %v1311_v16 = vpop.f32.mrb[18].mxu0 }
 0x118   :  { %v1312_v17 = vpop.f32.mrb[19].mxu0 }
 0x119   :  { %v749_v18 = vadd.f32 %v748_v12, %v723_v13  ;;  %v511_v19 = vadd.f32 %v1310_v14, %v1740_v4  ;;  %v1313_v22 = vadd.f32 %v1312_v17, %v1311_v16 }
 0x11b   :  { %v1791_v23 = vadd.f32 %v646_v48, %v511_v19  ;;  %v514_v24 = vadd.f32 %v1313_v22, %v1740_v4  ;;  %v670_v48 = vpop.f32.mrb[28].mxu1 }
 0x11c   :  { %v1411_v49 = vpop.f32.mrb[29].mxu1 }
 0x11d   :  { %v724_v27 = vmax.f32 %v1791_v23, 0.0  ;;  %v1795_v29 = vadd.f32 %v649_v53, %v514_v24  ;;  %v1314_v30 = vpop.f32.mrb[20].mxu0  ;;  %v673_v55 = vpop.f32.mrb[30].mxu1 }
 0x11e   :  { %v1315_v34 = vpop.f32.mrb[21].mxu0  ;;  %v1412_v58 = vpop.f32.mrb[31].mxu1 }
 0x11f   :  { %v750_v36 = vadd.f32 %v749_v18, %v724_v27  ;;  %v725_v37 = vmax.f32 %v1795_v29, 0.0  ;;  %v1316_v38 = vadd.f32 %v1315_v34, %v1314_v30  ;;  %v1317_v40 = vpop.f32.mrb[22].mxu0  ;;  %v678_v9 = vpop.f32.mrb[32].mxu1 }
 0x120   :  { %v1318_v41 = vpop.f32.mrb[23].mxu0  ;;  %v1415_v10 = vpop.f32.mrb[33].mxu1 }
 0x121   :  { %v751_v42 = vadd.f32 %v750_v36, %v725_v37  ;;  %v519_v43 = vadd.f32 %v1316_v38, %v1740_v4  ;;  %v1319_v44 = vadd.f32 %v1318_v41, %v1317_v40  ;;  %v681_v17 = vpop.f32.mrb[34].mxu1 }
 0x122   :  { %v1416_v19 = vpop.f32.mrb[35].mxu1 }
 0x123   :  { %v1803_v45 = vadd.f32 %v654_v2, %v519_v43  ;;  %v522_v47 = vadd.f32 %v1319_v44, %v1740_v4 }
 0x125   :  { %v726_v52 = vmax.f32 %v1803_v45, 0.0  ;;  %v1807_v53 = vadd.f32 %v657_v8, %v522_v47  ;;  %v1320_v54 = vpop.f32.mrb[24].mxu0 }
 0x126   :  { %v1321_v56 = vpop.f32.mrb[25].mxu0 }
 0x127   :  { %v752_v59 = vadd.f32 %v751_v42, %v726_v52  ;;  %v727_v60 = vmax.f32 %v1807_v53, 0.0  ;;  %v1322_v61 = vadd.f32 %v1321_v56, %v1320_v54  ;;  %v1323_v62 = vpop.f32.mrb[26].mxu0  ;;  %v686_v40 = vpop.f32.mrb[36].mxu1 }
 0x128   :  { %v1324_v63 = vpop.f32.mrb[27].mxu0  ;;  %v1419_v41 = vpop.f32.mrb[37].mxu1 }
 0x129   :  { %v753_v1 = vadd.f32 %v752_v59, %v727_v60  ;;  %v527_v2 = vadd.f32 %v1322_v61, %v1740_v4  ;;  %v1325_v3 = vadd.f32 %v1324_v63, %v1323_v62  ;;  %v689_v47 = vpop.f32.mrb[38].mxu1 }
 0x12a   :  { %v1420_v54 = vpop.f32.mrb[39].mxu1 }
 0x12b   :  { %v1815_v7 = vadd.f32 %v662_v25, %v527_v2  ;;  %v530_v8 = vadd.f32 %v1325_v3, %v1740_v4 }
 0x12d   :  { %v728_v12 = vmax.f32 %v1815_v7, 0.0  ;;  %v1819_v14 = vadd.f32 %v665_v31, %v530_v8  ;;  %v1326_v16 = vpop.f32.mrb[28].mxu0 }
 0x12e   :  { %v1327_v18 = vpop.f32.mrb[29].mxu0 }
 0x12f   :  { %v754_v22 = vadd.f32 %v753_v1, %v728_v12  ;;  %v729_v24 = vmax.f32 %v1819_v14, 0.0  ;;  %v1328_v26 = vadd.f32 %v1327_v18, %v1326_v16  ;;  %v1329_v25 = vpop.f32.mrb[30].mxu0  ;;  %v694_v3 = vpop.f32.mrb[40].mxu1 }
 0x130   :  { %v1330_v30 = vpop.f32.mrb[31].mxu0  ;;  %v1423_v8 = vpop.f32.mrb[41].mxu1 }
 0x131   :  { %v755_v34 = vadd.f32 %v754_v22, %v729_v24  ;;  %v535_v35 = vadd.f32 %v1328_v26, %v1740_v4  ;;  %v1331_v36 = vadd.f32 %v1330_v30, %v1329_v25  ;;  %v697_v19 = vpop.f32.mrb[42].mxu1 }
 0x132   :  { %v1424_v26 = vpop.f32.mrb[43].mxu1 }
 0x133   :  { %v1827_v31 = vadd.f32 %v670_v48, %v535_v35  ;;  %v538_v38 = vadd.f32 %v1331_v36, %v1740_v4 }
 0x135   :  { %v730_v42 = vmax.f32 %v1827_v31, 0.0  ;;  %v1831_v43 = vadd.f32 %v673_v55, %v538_v38  ;;  %v1332_v44 = vpop.f32.mrb[32].mxu0 }
 0x136   :  { %v1333_v49 = vpop.f32.mrb[33].mxu0 }
 0x137   :  { %v756_v56 = vadd.f32 %v755_v34, %v730_v42  ;;  %v731_v58 = vmax.f32 %v1831_v43, 0.0  ;;  %v1334_v59 = vadd.f32 %v1333_v49, %v1332_v44  ;;  %v1335_v48 = vpop.f32.mrb[34].mxu0  ;;  %v702_v49 = vpop.f32.mrb[44].mxu1 }
 0x138   :  { %v1336_v61 = vpop.f32.mrb[35].mxu0  ;;  %v1427_v54 = vpop.f32.mrb[45].mxu1 }
 0x139   :  { %v757_v62 = vadd.f32 %v756_v56, %v731_v58  ;;  %v543_v63 = vadd.f32 %v1334_v59, %v1740_v4  ;;  %v1337_v1 = vadd.f32 %v1336_v61, %v1335_v48  ;;  %v705_v61 = vpop.f32.mrb[46].mxu1 }
 0x13b   :  { %v1839_v55 = vadd.f32 %v678_v9, %v543_v63  ;;  %v546_v2 = vadd.f32 %v1337_v1, %v1740_v4  ;;  %v1428_v63 = vpop.f32.mrb[47].mxu1 }
 0x13d   :  { %v732_v10 = vmax.f32 %v1839_v55, 0.0  ;;  %v1843_v16 = vadd.f32 %v681_v17, %v546_v2  ;;  %v1338_v18 = vpop.f32.mrb[36].mxu0 }
 0x13e   :  { %v1339_v22 = vpop.f32.mrb[37].mxu0 }
 0x13f   :  { %v758_v25 = vadd.f32 %v757_v62, %v732_v10  ;;  %v2088_v30 = vmax.f32 %v1843_v16, 0.0  ;;  %v1340_v34 = vadd.f32 %v1339_v22, %v1338_v18  ;;  %v1341_v9 = vpop.f32.mrb[38].mxu0  ;;  %v2089_v0 = vmax.f32 %v1843_v16, 0.0 }
 0x140   :  { %v1342_v35 = vpop.f32.mrb[39].mxu0 }
 0x141   :  { %v759_v36 = vadd.f32 %v758_v25, %v2088_v30  ;;  %v551_v38 = vadd.f32 %v1340_v34, %v1740_v4  ;;  %v1343_v41 = vadd.f32 %v1342_v35, %v1341_v9  ;;  %v710_v9 = vpop.f32.mrb[48].mxu1 }
 0x142   :  { %v1431_v35 = vpop.f32.mrb[49].mxu1 }
 0x143   :  { %v1851_v17 = vadd.f32 %v686_v40, %v551_v38  ;;  %v554_v44 = vadd.f32 %v1343_v41, %v1740_v4 }
 0x145   :  { %v2086_v56 = vmax.f32 %v1851_v17, 0.0  ;;  %v1855_v59 = vadd.f32 %v689_v47, %v554_v44  ;;  %v1344_v48 = vpop.f32.mrb[40].mxu0  ;;  %v713_v44 = vpop.f32.mrb[50].mxu1  ;;  %v2090_v6 = vmax.f32 %v1851_v17, 0.0 }
 0x146   :  { %v1345_v62 = vpop.f32.mrb[41].mxu0 }
 0x147   :  { %v760_v1 = vadd.f32 %v759_v36, %v2086_v56  ;;  %v2087_v2 = vmax.f32 %v1855_v59, 0.0  ;;  %v1346_v8 = vadd.f32 %v1345_v62, %v1344_v48  ;;  %v1347_v40 = vpop.f32.mrb[42].mxu0  ;;  %v1432_v48 = vpop.f32.mrb[51].mxu1  ;;  %v2091_v23 = vmax.f32 %v1855_v59, 0.0 }
 0x148   :  { %v1348_v18 = vpop.f32.mrb[43].mxu0 }
 0x149   :  { %v761_v22 = vadd.f32 %v760_v1, %v2087_v2  ;;  %v559_v26 = vadd.f32 %v1346_v8, %v1740_v4  ;;  %v1349_v25 = vadd.f32 %v1348_v18, %v1347_v40 }
 0x14b   :  { %v1863_v47 = vadd.f32 %v694_v3, %v559_v26  ;;  %v562_v34 = vadd.f32 %v1349_v25, %v1740_v4 }
 0x14d   :  { %v736_v38 = vmax.f32 %v1863_v47, 0.0  ;;  %v698_v36 = vadd.f32 %v697_v19, %v562_v34  ;;  %v1350_v41 = vpop.f32.mrb[44].mxu0 }
 0x14e   :  { %v1351_v54 = vpop.f32.mrb[45].mxu0 }
 0x14f   :  { %v762_v62 = vadd.f32 %v761_v22, %v736_v38  ;;  %v737_v63 = vmax.f32 %v698_v36, 0.0  ;;  %v1352_v56 = vadd.f32 %v1351_v54, %v1350_v41  ;;  %v1353_v1 = vpop.f32.mrb[46].mxu0 }
 0x150   :  { %v1354_v2 = vpop.f32.mrb[47].mxu0 }
 0x151   :  { %v763_v8 = vadd.f32 %v762_v62, %v737_v63  ;;  %v567_v3 = vadd.f32 %v1352_v56, %v1740_v4  ;;  %v1355_v40 = vadd.f32 %v1354_v2, %v1353_v1 }
 0x153   :  { %v703_v18 = vadd.f32 %v702_v49, %v567_v3  ;;  %v570_v26 = vadd.f32 %v1355_v40, %v1740_v4 }
 0x155   :  { %v738_v25 = vmax.f32 %v703_v18, 0.0  ;;  %v706_v35 = vadd.f32 %v705_v61, %v570_v26  ;;  %v1356_v47 = vpop.f32.mrb[48].mxu0 }
 0x156   :  { %v1357_v19 = vpop.f32.mrb[49].mxu0 }
 0x157   :  { %v764_v34 = vadd.f32 %v763_v8, %v738_v25  ;;  %v739_v44 = vmax.f32 %v706_v35, 0.0  ;;  %v1358_v30 = vadd.f32 %v1357_v19, %v1356_v47  ;;  %v1359_v48 = vpop.f32.mrb[50].mxu0 }
 0x158   :  { %v1360_v22 = vpop.f32.mrb[51].mxu0 }
 0x159   :  { %v765_v36 = vadd.f32 %v764_v34, %v739_v44  ;;  %v575_v41 = vadd.f32 %v1358_v30, %v1740_v4 }
 0x15b   :  { %v711_v54 = vadd.f32 %v710_v9, %v575_v41 }
 0x15d   :  { %v740_v62 = vmax.f32 %v711_v54, 0.0 }
 0x15f   :  { %v767_v56 = vsel %vm766_vm2, %v740_v62, 0.0 }
 0x160   :  { %v768_v49 = vadd.f32 %v767_v56, %v765_v36 }
 0x162   :  { %v769_v2 = vrot.slane %v768_v49, 4 }
 0x164   :  { %v770_v1 = vadd.f32 %v769_v2, %v768_v49 }
 0x166   :  { %v771_v3 = vrot.slane %v770_v1, 2 }
 0x168   :  { %v772_v61 = vadd.f32 %v771_v3, %v770_v1 }
 0x16a   :  { %v773_v40 = vrot.slane %v772_v61, 1 }
 0x16c   :  { %v774_v18 = vadd.f32 %v773_v40, %v772_v61 }
 0x16e   :  { %v776_v8 = vmul.f32 0.0051020407, %v774_v18 }
 0x170   :  { %v1873_v26 = vsub.f32 %v716_v20, %v776_v8  ;;  %v1877_v4 = vsub.f32 %v717_v21, %v776_v8  ;;  %v1881_v30 = vsub.f32 %v718_v32, %v776_v8  ;;  %v1885_v9 = vsub.f32 %v719_v39, %v776_v8 }
 0x171   :  { %v1889_v35 = vsub.f32 %v720_v50, %v776_v8  ;;  %v1893_v11 = vsub.f32 %v721_v57, %v776_v8  ;;  %v1897_v15 = vsub.f32 %v722_v5, %v776_v8  ;;  %v1901_v20 = vsub.f32 %v723_v13, %v776_v8 }
 0x172   :  { %v1905_v21 = vsub.f32 %v724_v27, %v776_v8  ;;  %v1909_v28 = vsub.f32 %v725_v37, %v776_v8  ;;  %v1913_v32 = vsub.f32 %v726_v52, %v776_v8  ;;  %v1917_v33 = vsub.f32 %v727_v60, %v776_v8 }
 0x173   :  { %v1921_v39 = vsub.f32 %v728_v12, %v776_v8  ;;  %v1925_v46 = vsub.f32 %v729_v24, %v776_v8  ;;  %v1929_v50 = vsub.f32 %v730_v42, %v776_v8  ;;  %v1933_v51 = vsub.f32 %v731_v58, %v776_v8 }
 0x174   :  { %v1937_v57 = vsub.f32 %v732_v10, %v776_v8  ;;  %v1941_v5 = vsub.f32 %v2089_v0, %v776_v8  ;;  %v1945_v13 = vsub.f32 %v2090_v6, %v776_v8  ;;  %v1949_v27 = vsub.f32 %v2091_v23, %v776_v8 }
 0x175   :  { %v1951_v29 = vsub.f32 %v736_v38, %v776_v8  ;;  %v1953_v37 = vsub.f32 %v737_v63, %v776_v8  ;;  %v1955_v45 = vsub.f32 %v738_v25, %v776_v8  ;;  %v1957_v52 = vsub.f32 %v739_v44, %v776_v8 }
 0x176   :  { %v1959_v53 = vsub.f32 %v740_v62, %v776_v8  ;;  %v802_v60 = vmul.f32 %v1873_v26, %v1873_v26  ;;  %v803_v7 = vmul.f32 %v1877_v4, %v1877_v4  ;;  %v804_v12 = vmul.f32 %v1881_v30, %v1881_v30 }
 0x177   :  { %v805_v31 = vmul.f32 %v1885_v9, %v1885_v9  ;;  %v806_v58 = vmul.f32 %v1889_v35, %v1889_v35  ;;  %v807_v10 = vmul.f32 %v1893_v11, %v1893_v11  ;;  %v808_v17 = vmul.f32 %v1897_v15, %v1897_v15 }
 0x178   :  { %v826_v14 = vmul.f32 %v1959_v53, %v1959_v53  ;;  %v827_v24 = vadd.f32 %v803_v7, %v802_v60  ;;  %v809_v38 = vmul.f32 %v1901_v20, %v1901_v20  ;;  %v810_v25 = vmul.f32 %v1905_v21, %v1905_v21 }
 0x179   :  { %v811_v19 = vmul.f32 %v1909_v28, %v1909_v28  ;;  %v812_v44 = vmul.f32 %v1913_v32, %v1913_v32  ;;  %v813_v22 = vmul.f32 %v1917_v33, %v1917_v33  ;;  %v814_v41 = vmul.f32 %v1921_v39, %v1921_v39 }
 0x17a   :  { %v828_v42 = vadd.f32 %v827_v24, %v804_v12  ;;  %v850_v43 = vsel %vm766_vm2, %v826_v14, 0.0  ;;  %v815_v62 = vmul.f32 %v1925_v46, %v1925_v46  ;;  %v816_v49 = vmul.f32 %v1929_v50, %v1929_v50 }
 0x17b   :  { %v817_v1 = vmul.f32 %v1933_v51, %v1933_v51  ;;  %v818_v61 = vmul.f32 %v1937_v57, %v1937_v57  ;;  %v819_v18 = vmul.f32 %v1941_v5, %v1941_v5  ;;  %v820_v0 = vmul.f32 %v1945_v13, %v1945_v13 }
 0x17c   :  { %v829_v55 = vadd.f32 %v828_v42, %v805_v31  ;;  %v821_v23 = vmul.f32 %v1949_v27, %v1949_v27  ;;  %v822_v7 = vmul.f32 %v1951_v29, %v1951_v29  ;;  %v823_v14 = vmul.f32 %v1953_v37, %v1953_v37 }
 0x17d   :  { %v824_v31 = vmul.f32 %v1955_v45, %v1955_v45 }
 0x17e   :  { %v830_v16 = vadd.f32 %v829_v55, %v806_v58  ;;  %v825_v58 = vmul.f32 %v1957_v52, %v1957_v52 }
 0x180   :  { %v831_v59 = vadd.f32 %v830_v16, %v807_v10 }
 0x182   :  { %v832_v63 = vadd.f32 %v831_v59, %v808_v17 }
 0x184   :  { %v833_v47 = vadd.f32 %v832_v63, %v809_v38 }
 0x186   :  { %v834_v34 = vadd.f32 %v833_v47, %v810_v25 }
 0x188   :  { %v835_v48 = vadd.f32 %v834_v34, %v811_v19 }
 0x18a   :  { %v836_v36 = vadd.f32 %v835_v48, %v812_v44 }
 0x18c   :  { %v837_v54 = vadd.f32 %v836_v36, %v813_v22 }
 0x18e   :  { %v838_v56 = vadd.f32 %v837_v54, %v814_v41 }
 0x190   :  { %v839_v2 = vadd.f32 %v838_v56, %v815_v62 }
 0x192   :  { %v840_v3 = vadd.f32 %v839_v2, %v816_v49 }
 0x194   :  { %v841_v40 = vadd.f32 %v840_v3, %v817_v1 }
 0x196   :  { %v842_v8 = vadd.f32 %v841_v40, %v818_v61 }
 0x198   :  { %v843_v6 = vadd.f32 %v842_v8, %v819_v18 }
 0x19a   :  { %v844_v60 = vadd.f32 %v843_v6, %v820_v0 }
 0x19c   :  { %v845_v12 = vadd.f32 %v844_v60, %v821_v23 }
 0x19e   :  { %v846_v24 = vadd.f32 %v845_v12, %v822_v7 }
 0x1a0   :  { %v847_v42 = vadd.f32 %v846_v24, %v823_v14 }
 0x1a2   :  { %v848_v55 = vadd.f32 %v847_v42, %v824_v31 }
 0x1a4   :  { %v849_v10 = vadd.f32 %v848_v55, %v825_v58 }
 0x1a6   :  { %v851_v16 = vadd.f32 %v850_v43, %v849_v10 }
 0x1a8   :  { %v852_v17 = vrot.slane %v851_v16, 4 }
 0x1aa   :  { %v853_v59 = vadd.f32 %v852_v17, %v851_v16 }
 0x1ac   :  { %v854_v38 = vrot.slane %v853_v59, 2 }
 0x1ae   :  { %v855_v63 = vadd.f32 %v854_v38, %v853_v59 }
 0x1b0   :  { %v856_v25 = vrot.slane %v855_v63, 1 }
 0x1b2   :  { %v857_v47 = vadd.f32 %v856_v25, %v855_v63 }
 0x1b4   :  { %v858_v19 = vmul.f32 0.0051020407, %v857_v47 }
 0x1b6   :  { %v859_v34 = vadd.f32 1e-05, %v858_v19 }
 0x1b8   :  { %1504 = vrsqrt.f32 %v859_v34 }
 0x1c2   :  { %v1505_v44 = vpop.eup %1504 }
 0x1c3   :  { %v861_v48 = vmul.f32 %v1505_v44, %v1873_v26  ;;  %v862_v22 = vmul.f32 %v1505_v44, %v1877_v4  ;;  %v863_v36 = vmul.f32 %v1505_v44, %v1881_v30  ;;  %v864_v41 = vmul.f32 %v1505_v44, %v1885_v9  ;;  %v1145_v30 = vld [vmem:[%s2084_s2 + $0x1] ss:$0 sm:$0xff] }
 0x1c4   :  { %v865_v43 = vmul.f32 %v1505_v44, %v1889_v35  ;;  %v866_v54 = vmul.f32 %v1505_v44, %v1893_v11  ;;  %v867_v62 = vmul.f32 %v1505_v44, %v1897_v15  ;;  %v868_v56 = vmul.f32 %v1505_v44, %v1901_v20 }
 0x1c5   :  { %v869_v49 = vmul.f32 %v1505_v44, %v1905_v21  ;;  %v870_v2 = vmul.f32 %v1505_v44, %v1909_v28  ;;  %v871_v26 = vmul.f32 %v1505_v44, %v1913_v32  ;;  %v872_v4 = vmul.f32 %v1505_v44, %v1917_v33 }
 0x1c6   :  { %v873_v9 = vmul.f32 %v1505_v44, %v1921_v39  ;;  %v874_v35 = vmul.f32 %v1505_v44, %v1925_v46  ;;  %v875_v11 = vmul.f32 %v1505_v44, %v1929_v50  ;;  %v876_v15 = vmul.f32 %v1505_v44, %v1933_v51 }
 0x1c7   :  { %v877_v20 = vmul.f32 %v1505_v44, %v1937_v57  ;;  %v878_v21 = vmul.f32 %v1505_v44, %v1941_v5  ;;  %v879_v28 = vmul.f32 %v1505_v44, %v1945_v13  ;;  %v880_v32 = vmul.f32 %v1505_v44, %v1949_v27 }
 0x1c8   :  { %v881_v33 = vmul.f32 %v1505_v44, %v1951_v29  ;;  %v882_v1 = vmul.f32 %v1505_v44, %v1953_v37  ;;  %v883_v39 = vmul.f32 %v1505_v44, %v1955_v45  ;;  %v884_v46 = vmul.f32 %v1505_v44, %v1957_v52  ;;  %v1146_v29 = vld [vmem:[%s2084_s2 + $0x2] ss:$0 sm:$0xff] }
 0x1c9   :  { %v885_v50 = vmul.f32 %v1505_v44, %v1959_v53  ;;  %v890_v3 = vmul.f32 %v1145_v30, %v861_v48  ;;  %v891_v51 = vmul.f32 %v1145_v30, %v862_v22  ;;  %v892_v61 = vmul.f32 %v1145_v30, %v863_v36 }
 0x1ca   :  { %v893_v57 = vmul.f32 %v1145_v30, %v864_v41  ;;  %v894_v40 = vmul.f32 %v1145_v30, %v865_v43  ;;  %v895_v5 = vmul.f32 %v1145_v30, %v866_v54  ;;  %v896_v18 = vmul.f32 %v1145_v30, %v867_v62 }
 0x1cb   :  { %v897_v13 = vmul.f32 %v1145_v30, %v868_v56  ;;  %v898_v8 = vmul.f32 %v1145_v30, %v869_v49  ;;  %v899_v27 = vmul.f32 %v1145_v30, %v870_v2  ;;  %v900_v0 = vmul.f32 %v1145_v30, %v871_v26 }
 0x1cc   :  { %v901_v37 = vmul.f32 %v1145_v30, %v872_v4  ;;  %v902_v45 = vmul.f32 %v1145_v30, %v873_v9  ;;  %v903_v52 = vmul.f32 %v1145_v30, %v874_v35  ;;  %v904_v6 = vmul.f32 %v1145_v30, %v875_v11 }
 0x1cd   :  { %v905_v53 = vmul.f32 %v1145_v30, %v876_v15  ;;  %v906_v23 = vmul.f32 %v1145_v30, %v877_v20  ;;  %v907_v60 = vmul.f32 %v1145_v30, %v878_v21  ;;  %v908_v7 = vmul.f32 %v1145_v30, %v879_v28 }
 0x1ce   :  { %v909_v12 = vmul.f32 %v1145_v30, %v880_v32  ;;  %v910_v14 = vmul.f32 %v1145_v30, %v881_v33  ;;  %v911_v24 = vmul.f32 %v1145_v30, %v882_v1  ;;  %v912_v31 = vmul.f32 %v1145_v30, %v883_v39 }
 0x1cf   :  { %v913_v42 = vmul.f32 %v1145_v30, %v884_v46  ;;  %v914_v58 = vmul.f32 %v1145_v30, %v885_v50  ;;  %v919_v55 = vadd.f32 %v1146_v29, %v890_v3  ;;  %v920_v10 = vadd.f32 %v1146_v29, %v891_v51 }
 0x1d0   :  { %v921_v16 = vadd.f32 %v1146_v29, %v892_v61  ;;  %v922_v17 = vadd.f32 %v1146_v29, %v893_v57  ;;  %v923_v59 = vadd.f32 %v1146_v29, %v894_v40  ;;  %v924_v38 = vadd.f32 %v1146_v29, %v895_v5 }
 0x1d1   :  { %v925_v63 = vadd.f32 %v1146_v29, %v896_v18  ;;  %v926_v25 = vadd.f32 %v1146_v29, %v897_v13  ;;  %v927_v47 = vadd.f32 %v1146_v29, %v898_v8  ;;  %v928_v19 = vadd.f32 %v1146_v29, %v899_v27 }
 0x1d2   :  { %v929_v34 = vadd.f32 %v1146_v29, %v900_v0  ;;  %v930_v44 = vadd.f32 %v1146_v29, %v901_v37  ;;  %v931_v48 = vadd.f32 %v1146_v29, %v902_v45  ;;  %v932_v22 = vadd.f32 %v1146_v29, %v903_v52 }
 0x1d3   :  { %v933_v36 = vadd.f32 %v1146_v29, %v904_v6  ;;  %v934_v41 = vadd.f32 %v1146_v29, %v905_v53  ;;  %v935_v43 = vadd.f32 %v1146_v29, %v906_v23  ;;  %v936_v54 = vadd.f32 %v1146_v29, %v907_v60 }
 0x1d4   :  { %v937_v62 = vadd.f32 %v1146_v29, %v908_v7  ;;  %v938_v56 = vadd.f32 %v1146_v29, %v909_v12  ;;  %v939_v49 = vadd.f32 %v1146_v29, %v910_v14  ;;  %v940_v2 = vadd.f32 %v1146_v29, %v911_v24 }
 0x1d5   :  { %v941_v26 = vadd.f32 %v1146_v29, %v912_v31  ;;  %v942_v4 = vadd.f32 %v1146_v29, %v913_v42  ;;  %v943_v30 = vadd.f32 %v1146_v29, %v914_v58  ;;  %v1200_v9 = vpack.c.bf16 %v920_v10, %v919_v55 }
 0x1d6   :  { %v1205_v35 = vpack.c.bf16 %v922_v17, %v921_v16  ;;  %v1210_v11 = vpack.c.bf16 %v924_v38, %v923_v59  ;;  %v1215_v15 = vpack.c.bf16 %v926_v25, %v925_v63  ;;  %v1220_v20 = vpack.c.bf16 %v928_v19, %v927_v47 }
 0x1d7   :  { %v1196_v21 = vpack.c.bf16 %v943_v30, %v943_v30  ;;  %1201 = vst [vmem:[%s2085_s3] sm:$0xff] %v1200_v9   ;;  %v1225_v28 = vpack.c.bf16 %v930_v44, %v929_v34  ;;  %v1230_v32 = vpack.c.bf16 %v932_v22, %v931_v48  ;;  %v1235_v33 = vpack.c.bf16 %v934_v41, %v933_v36 }
 0x1d8   :  { %1257 = vst [vmem:[%s2085_s3 + $0x8] sm:$0xff] %v1205_v35   ;;  %1258 = vst [vmem:[%s2085_s3 + $0x10] sm:$0xff] %v1210_v11   ;;  %v1240_v1 = vpack.c.bf16 %v936_v54, %v935_v43  ;;  %v1245_v39 = vpack.c.bf16 %v938_v56, %v937_v62  ;;  %v1250_v46 = vpack.c.bf16 %v940_v2, %v939_v49 }
 0x1d9   :  { %1259 = vst [vmem:[%s2085_s3 + $0x18] sm:$0xff] %v1215_v15   ;;  %1260 = vst [vmem:[%s2085_s3 + $0x20] sm:$0xff] %v1220_v20   ;;  %v1255_v50 = vpack.c.bf16 %v942_v4, %v941_v26 }
 0x1da   :  { %1261 = vst [vmem:[%s2085_s3 + $0x28] sm:$0xff] %v1225_v28   ;;  %1262 = vst [vmem:[%s2085_s3 + $0x30] sm:$0xff] %v1230_v32  }
 0x1db   :  { %1263 = vst [vmem:[%s2085_s3 + $0x38] sm:$0xff] %v1235_v33   ;;  %1069 = vst [vmem:[%s2085_s3 + $0x60] sm:$0x3] %v1196_v21 }
 0x1dc   :  { %1264 = vst [vmem:[%s2085_s3 + $0x40] sm:$0xff] %v1240_v1   ;;  %1265 = vst [vmem:[%s2085_s3 + $0x48] sm:$0xff] %v1245_v39  }
 0x1dd   :  { %1266 = vst [vmem:[%s2085_s3 + $0x50] sm:$0xff] %v1250_v46   ;;  %1267 = vst [vmem:[%s2085_s3 + $0x58] sm:$0xff] %v1255_v50  }

// kernel: mnist_model_forward.7
= control target key start
LH: loop header
LB: loop body
LE: loop exit
PB: predicated region body
PF: predicated region fallthrough
CT: control target
= control target key end

     0   :  { %v215_v0 = vmov 0.0|0.0   ;;  %vm216_vm0 = vmmov 0   ;;  %v217_v4 = vmov 0.0   ;;  %vm112_vm1 = vcmask 1041408   ;;  %s303_s1 = inlined_call_operand.vmem [shape: f32[128,128], index: 1, kind: input, shape index: {}]   ;;  %s304_s0 = inlined_call_operand.vmem [shape: f32[2,128], index: 0, kind: input, shape index: {}]   ;;  %s305_s4 = inlined_call_operand.vmem [shape: f32[2,1], index: 4, kind: output, shape index: {1}]   ;;  %s306_s2 = inlined_call_operand.vmem [shape: f32[1,128], index: 2, kind: input, shape index: {}]   ;;  %s307_s3 = inlined_call_operand.vmem [shape: f32[2,128], index: 3, kind: output, shape index: {0}]  }
   0x1   :  { %186 = vmatprep.subr.bf16.mxu0 %v215_v0  ;;  %v17_v1 = vld [vmem:[%s303_s1] sm:$0xff]  ;;  %v18_v2 = vld [vmem:[%s303_s1 + $0x8] sm:$0xff]  ;;  %v19_v3 = vld [vmem:[%s303_s1 + $0x10] sm:$0xff]  ;;  %183 = vmatprep.mubr.msk.f32.mxu0 %vm216_vm0, %v217_v4  ;;  %vm123_vm4 = vcmask 1024  }
   0x2   :  { %v187_v5 = vpack.c.bf16 %v18_v2, %v17_v1  ;;  %v20_v6 = vld [vmem:[%s303_s1 + $0x18] sm:$0xff]  ;;  %v21_v8 = vld [vmem:[%s303_s1 + $0x20] sm:$0xff]  ;;  %v22_v9 = vld [vmem:[%s303_s1 + $0x28] sm:$0xff] }
   0x3   :  { %v190_v7 = vpack.c.bf16 %v20_v6, %v19_v3  ;;  %v16_v10 = vld [vmem:[%s304_s0] sm:$0x3]  ;;  %v193_v12 = vpack.c.bf16 %v22_v9, %v21_v8  ;;  %v23_v13 = vld [vmem:[%s303_s1 + $0x30] sm:$0xff]  ;;  %v24_v14 = vld [vmem:[%s303_s1 + $0x38] sm:$0xff] }
   0x4   :  { %188 = vmatpush3.bf16.msra.mxu0 %v187_v5  ;;  %v111_v11 = vmul.f32 %v16_v10, %v16_v10  ;;  %v196_v16 = vpack.c.bf16 %v24_v14, %v23_v13  ;;  %v25_v17 = vld [vmem:[%s303_s1 + $0x40] sm:$0xff]  ;;  %v26_v18 = vld [vmem:[%s303_s1 + $0x48] sm:$0xff]  ;;  %v27_v20 = vld [vmem:[%s303_s1 + $0x50] sm:$0xff] }
   0x5   :  { %189 = vmatprep.subr.bf16.mxu0 %v215_v0  ;;  %v199_v19 = vpack.c.bf16 %v26_v18, %v25_v17  ;;  %v28_v21 = vld [vmem:[%s303_s1 + $0x58] sm:$0xff]  ;;  %v29_v23 = vld [vmem:[%s303_s1 + $0x60] sm:$0xff]  ;;  %v30_v24 = vld [vmem:[%s303_s1 + $0x68] sm:$0xff] }
   0x6   :  { %v113_v15 = vsel %vm112_vm1, %v111_v11, 0.0  ;;  %v202_v22 = vpack.c.bf16 %v28_v21, %v27_v20  ;;  %v205_v25 = vpack.c.bf16 %v30_v24, %v29_v23  ;;  %v31_v26 = vld [vmem:[%s303_s1 + $0x70] sm:$0xff]  ;;  %v32_v27 = vld [vmem:[%s303_s1 + $0x78] sm:$0xff]  ;;  %v133_v35 = vld [vmem:[%s306_s2] ss:$0 sm:$0xff] }
   0x7   :  { %114 = vadd.xlane.f32.xlu0 %v113_v15  ;;  %v208_v28 = vpack.c.bf16 %v32_v27, %v31_v26 }
   0x8   :  { %191 = vmatpush3.bf16.msra.mxu0 %v190_v7 }
   0x9   :  { %192 = vmatprep.subr.bf16.mxu0 %v215_v0 }
   0xc   :  { %194 = vmatpush3.bf16.msra.mxu0 %v193_v12 }
   0xd   :  { %195 = vmatprep.subr.bf16.mxu0 %v215_v0 }
  0x10   :  { %197 = vmatpush3.bf16.msra.mxu0 %v196_v16 }
  0x11   :  { %198 = vmatprep.subr.bf16.mxu0 %v215_v0 }
  0x14   :  { %200 = vmatpush3.bf16.msra.mxu0 %v199_v19 }
  0x15   :  { %201 = vmatprep.subr.bf16.mxu0 %v215_v0 }
  0x18   :  { %203 = vmatpush3.bf16.msra.mxu0 %v202_v22 }
  0x19   :  { %204 = vmatprep.subr.bf16.mxu0 %v215_v0 }
  0x1c   :  { %206 = vmatpush3.bf16.msra.mxu0 %v205_v25 }
  0x1d   :  { %207 = vmatprep.subr.bf16.mxu0 %v215_v0 }
  0x20   :  { %209 = vmatpush3.bf16.msra.mxu0 %v208_v28 }
  0x23   :  { %184 = vmatmul.mubr.f32.vlgmr.msra.gmra.mrb[0].mxu0 %v16_v10 }
  0x94   :  { %v115_v29 = vpop.xlane.xlu0 %114 }
  0x95   :  { %213 = vrsqrt.f32 %v115_v29  ;;  %vm118_vm2 = vcmp.eq.f32.partialorder %v115_v29, inf  ;;  %v121_v31 = vand.u32 2147483648, %v115_v29  ;;  %vm120_vm3 = vcmp.eq.f32.partialorder %v115_v29, 0.0 }
  0x9f   :  { %v214_v30 = vpop.eup %213 }
  0xa0   :  { %v117_v32 = vmul.f32 %v214_v30, %v115_v29 }
  0xa2   :  { %v119_v33 = vsel %vm118_vm2, %v115_v29, %v117_v32 }
  0xa3   :  { %v122_v34 = vsel %vm120_vm3, %v121_v31, %v119_v33 }
  0xa4   :  { %124 = vst.msk [vmem:[%s305_s4] sm:$0x3] %vm123_vm4, %v122_v34 }
  0xf6   :  { %v106_v36 = vpop.f32.mrb[0].mxu0 }
  0xf7   :  { %v107_v37 = vadd.f32 %v133_v35, %v106_v36  ;;  %v185_v38 = vpop.f32.mrb[1].mxu0 }
  0xf9   :  { %110 = vst [vmem:[%s307_s3] sm:$0x3] %v107_v37 }

// kernel: mnist_model_forward.6
= control target key start
LH: loop header
LB: loop body
LE: loop exit
PB: predicated region body
PF: predicated region fallthrough
CT: control target
= control target key end

     0   :  { %v2207_v34 = vmov 0.0   ;;  %vm2208_vm0 = vmmov 0   ;;  %vm388_vm1 = vcmask 523264   ;;  %vm1381_vm2 = vcmask 1043456   ;;  %s2844_s1 = inlined_call_operand.vmem [shape: bf16[576,128], index: 1, kind: input, shape index: {}]   ;;  %s2845_s0 = inlined_call_operand.vmem [shape: bf16[4,36,576], index: 0, kind: input, shape index: {}]   ;;  %s2846_s2 = inlined_call_operand.vmem [shape: f32[3,128], index: 2, kind: input, shape index: {}]   ;;  %s2847_s3 = inlined_call_operand.vmem [shape: f32[4,36], index: 3, kind: input, shape index: {}]   ;;  %s2848_s4 = inlined_call_operand.vmem [shape: f32[4,128], index: 4, kind: output, shape index: {}]  }
   0x1   :  { %v2238_v0 = vld [vmem:[%s2844_s1 + $0x40] sm:$0xff]   ;;  %v2261_v4 = vld [vmem:[%s2844_s1 + $0x48] sm:$0xff]   ;;  %v2285_v8 = vld [vmem:[%s2844_s1 + $0x50] sm:$0xff]   ;;  %vm1445_vm3 = vcmask 293888  }
   0x2   :  { %v2243_v1 = vld [vmem:[%s2844_s1 + $0xc0] sm:$0xff]   ;;  %1685 = vmatprep.subr.bf16.mxu0 %v2238_v0  ;;  %v2267_v5 = vld [vmem:[%s2844_s1 + $0xc8] sm:$0xff]   ;;  %v2291_v9 = vld [vmem:[%s2844_s1 + $0xd0] sm:$0xff]  }
   0x3   :  { %v2249_v2 = vld [vmem:[%s2844_s1] sm:$0xff]   ;;  %1719 = vmatprep.subr.bf16.mxu1 %v2243_v1  ;;  %v2273_v6 = vld [vmem:[%s2844_s1 + $0x8] sm:$0xff]   ;;  %v2297_v10 = vld [vmem:[%s2844_s1 + $0x10] sm:$0xff]  }
   0x4   :  { %v2255_v3 = vld [vmem:[%s2844_s1 + $0x80] sm:$0xff]   ;;  %1686 = vmatpush3.bf16.msra.mxu0 %v2249_v2  ;;  %v2279_v7 = vld [vmem:[%s2844_s1 + $0x88] sm:$0xff]   ;;  %v2303_v11 = vld [vmem:[%s2844_s1 + $0x90] sm:$0xff]  }
   0x5   :  { %1720 = vmatpush3.bf16.msra.mxu1 %v2255_v3  ;;  %1687 = vmatprep.subr.bf16.mxu0 %v2261_v4  ;;  %v2309_v12 = vld [vmem:[%s2844_s1 + $0x58] sm:$0xff]   ;;  %v2333_v16 = vld [vmem:[%s2844_s1 + $0x60] sm:$0xff]   ;;  %v2357_v20 = vld [vmem:[%s2844_s1 + $0x68] sm:$0xff]  }
   0x6   :  { %1721 = vmatprep.subr.bf16.mxu1 %v2267_v5  ;;  %v2315_v13 = vld [vmem:[%s2844_s1 + $0xd8] sm:$0xff]   ;;  %v2339_v17 = vld [vmem:[%s2844_s1 + $0xe0] sm:$0xff]   ;;  %v2363_v21 = vld [vmem:[%s2844_s1 + $0xe8] sm:$0xff]  }
   0x7   :  { %v2321_v14 = vld [vmem:[%s2844_s1 + $0x18] sm:$0xff]   ;;  %v2345_v18 = vld [vmem:[%s2844_s1 + $0x20] sm:$0xff]   ;;  %v2369_v22 = vld [vmem:[%s2844_s1 + $0x28] sm:$0xff]  }
   0x8   :  { %1688 = vmatpush3.bf16.msra.mxu0 %v2273_v6  ;;  %v2327_v15 = vld [vmem:[%s2844_s1 + $0x98] sm:$0xff]   ;;  %v2351_v19 = vld [vmem:[%s2844_s1 + $0xa0] sm:$0xff]   ;;  %v2375_v23 = vld [vmem:[%s2844_s1 + $0xa8] sm:$0xff]  }
   0x9   :  { %1722 = vmatpush3.bf16.msra.mxu1 %v2279_v7  ;;  %1689 = vmatprep.subr.bf16.mxu0 %v2285_v8  ;;  %v2381_v24 = vld [vmem:[%s2844_s1 + $0x70] sm:$0xff]   ;;  %v2405_v28 = vld [vmem:[%s2844_s1 + $0x78] sm:$0xff]   ;;  %v2130_v36 = vld [vmem:[%s2845_s0 + $0xc] ss:$20 sps:$4 sm:$0xff]  }
   0xa   :  { %1723 = vmatprep.subr.bf16.mxu1 %v2291_v9  ;;  %v2387_v25 = vld [vmem:[%s2844_s1 + $0xf0] sm:$0xff]   ;;  %v2411_v29 = vld [vmem:[%s2844_s1 + $0xf8] sm:$0xff]   ;;  %v2131_v37 = vld [vmem:[%s2845_s0 + $0x2c] ss:$20 sps:$4 sm:$0xff]   ;;  %486 = vmatprep.mubr.bf16.mxu1 %v2130_v36 }
   0xb   :  { %v2393_v26 = vld [vmem:[%s2844_s1 + $0x30] sm:$0xff]   ;;  %v2417_v30 = vld [vmem:[%s2844_s1 + $0x38] sm:$0xff]   ;;  %v2451_v39 = vld [vmem:[%s2844_s1 + $0x100] sm:$0xff]  }
   0xc   :  { %1690 = vmatpush3.bf16.msra.mxu0 %v2297_v10  ;;  %v2399_v27 = vld [vmem:[%s2844_s1 + $0xb0] sm:$0xff]   ;;  %v2423_v31 = vld [vmem:[%s2844_s1 + $0xb8] sm:$0xff]   ;;  %v2471_v44 = vld [vmem:[%s2844_s1 + $0x108] sm:$0xff]  }
   0xd   :  { %1724 = vmatpush3.bf16.msra.mxu1 %v2303_v11  ;;  %1691 = vmatprep.subr.bf16.mxu0 %v2309_v12  ;;  %v2125_v32 = vld [vmem:[%s2845_s0] ss:$20 sps:$4 sm:$0xff]   ;;  %v2127_v33 = vld [vmem:[%s2845_s0 + $0x4] ss:$20 sps:$4 sm:$0xff]   ;;  %v2128_v35 = vld [vmem:[%s2845_s0 + $0x8] ss:$20 sps:$4 sm:$0xff]  }
   0xe   :  { %1725 = vmatprep.subr.bf16.mxu1 %v2315_v13  ;;  %430 = vmatprep.mubr.bf16.mxu0 %v2127_v33  ;;  %v2133_v38 = vld [vmem:[%s2845_s0 + $0x34] ss:$20 sps:$4 sm:$0xff]   ;;  %v2136_v41 = vld [vmem:[%s2845_s0 + $0x30] ss:$20 sps:$4 sm:$0xff]   ;;  %v103_v43 = vld [vmem:[%s2845_s0 + $0x58] sm:$0x33] }
   0xf   :  { %v2135_v40 = vld [vmem:[%s2845_s0 + $0x28] ss:$20 sps:$4 sm:$0xff]   ;;  %v102_v42 = vld [vmem:[%s2845_s0 + $0x50] sm:$0x33]  ;;  %v1540_v46 = vcombine.high %v103_v43, %v103_v43  ;;  %v1539_v49 = vcombine.low %v103_v43, %v103_v43  ;;  %v2149_v53 = vld [vmem:[%s2845_s0 + $0x38] ss:$20 sps:$4 sm:$0xff]  }
  0x10   :  { %1692 = vmatpush3.bf16.msra.mxu0 %v2321_v14  ;;  %v1538_v45 = vcombine.high %v102_v42, %v102_v42  ;;  %v2479_v47 = vld [vmem:[%s2844_s1 + $0x110] sm:$0xff]   ;;  %v1537_v48 = vcombine.low %v102_v42, %v102_v42  ;;  %v2488_v50 = vld [vmem:[%s2844_s1 + $0x118] sm:$0xff]   ;;  %v2152_v57 = vld [vmem:[%s2845_s0 + $0x60] ss:$0 sps:$4 sm:$0x33]  }
  0x11   :  { %1726 = vmatpush3.bf16.msra.mxu1 %v2327_v15  ;;  %1693 = vmatprep.subr.bf16.mxu0 %v2333_v16  ;;  %v2148_v51 = vld [vmem:[%s2845_s0 + $0x68] ss:$20 sps:$4 sm:$0xff]   ;;  %v2145_v52 = vld [vmem:[%s2845_s0 + $0x10] ss:$20 sps:$4 sm:$0xff]   ;;  %v1593_v56 = vld [vmem:[%s2845_s0 + $0xb4] sm:$0x33] }
  0x12   :  { %1727 = vmatprep.subr.bf16.mxu1 %v2339_v17  ;;  %v2146_v54 = vld [vmem:[%s2845_s0 + $0x64] ss:$20 sps:$4 sm:$0xff]   ;;  %v2153_v58 = vld [vmem:[%s2845_s0 + $0x8c] ss:$20 sps:$4 sm:$0xff]   ;;  %v1607_v59 = vcombine.high %v1593_v56, %v1593_v56  ;;  %v1606_v61 = vcombine.low %v1593_v56, %v1593_v56  ;;  %v2159_v63 = vld [vmem:[%s2845_s0 + $0x74] ss:$20 sps:$4 sm:$0xff]  }
  0x13   :  { %v2150_v55 = vld [vmem:[%s2845_s0 + $0x90] ss:$20 sps:$4 sm:$0xff]   ;;  %v2156_v62 = vld [vmem:[%s2845_s0 + $0x6c] ss:$20 sps:$4 sm:$0xff]   ;;  %v2162_v33 = vld [vmem:[%s2845_s0 + $0x94] ss:$20 sps:$4 sm:$0xff]  }
  0x14   :  { %1694 = vmatpush3.bf16.msra.mxu0 %v2345_v18  ;;  %v2158_v60 = vld [vmem:[%s2845_s0 + $0x70] ss:$20 sps:$4 sm:$0xff]   ;;  %v2172_v42 = vld [vmem:[%s2845_s0 + $0xd4] ss:$20 sps:$4 sm:$0xff]  }
  0x15   :  { %1728 = vmatpush3.bf16.msra.mxu1 %v2351_v19  ;;  %1695 = vmatprep.subr.bf16.mxu0 %v2357_v20  ;;  %v2163_v36 = vld [vmem:[%s2845_s0 + $0x9c] ss:$20 sps:$4 sm:$0xff]  }
  0x16   :  { %1729 = vmatprep.subr.bf16.mxu1 %v2363_v21  ;;  %v2167_v43 = vld [vmem:[%s2845_s0 + $0xc8] ss:$20 sps:$4 sm:$0xff]  }
  0x18   :  { %1696 = vmatpush3.bf16.msra.mxu0 %v2369_v22 }
  0x19   :  { %1730 = vmatpush3.bf16.msra.mxu1 %v2375_v23  ;;  %1697 = vmatprep.subr.bf16.mxu0 %v2381_v24 }
  0x1a   :  { %1731 = vmatprep.subr.bf16.mxu1 %v2387_v25 }
  0x1c   :  { %1698 = vmatpush3.bf16.msra.mxu0 %v2393_v26 }
  0x1d   :  { %1732 = vmatpush3.bf16.msra.mxu1 %v2399_v27  ;;  %1699 = vmatprep.subr.bf16.mxu0 %v2405_v28 }
  0x1e   :  { %1733 = vmatprep.subr.bf16.mxu1 %v2411_v29 }
  0x20   :  { %1700 = vmatpush3.bf16.msra.mxu0 %v2417_v30 }
  0x21   :  { %1734 = vmatpush3.bf16.msra.mxu1 %v2423_v31  ;;  %1991 = vmatprep.subr.bf16.mxu0 %v2207_v34 }
  0x22   :  { %1760 = vmatprep.subr.bf16.mxu1 %v2238_v0 }
  0x23   :  { %431 = vmatmul.mubr.bf16.vlgmr.msra.gmra.mrb[0].mxu0 %v2125_v32  ;;  %v2160_v32 = vld [vmem:[%s2845_s0 + $0x98] ss:$20 sps:$4 sm:$0xff]  }
  0x24   :  { %487 = vmatmul.mubr.bf16.vlgmr.msra.gmra.mrb[0].mxu1 %v2128_v35  ;;  %438 = vmatprep.mubr.bf16.mxu0 %v2131_v37  ;;  %v1594_v35 = vld [vmem:[%s2845_s0 + $0xbc] sm:$0x33] }
  0x25   :  { %1761 = vmatpush3.bf16.msra.mxu1 %v2249_v2  ;;  %494 = vmatprep.mubr.bf16.mxu1 %v2133_v38  ;;  %v1609_v37 = vcombine.high %v1594_v35, %v1594_v35  ;;  %v1608_v38 = vcombine.low %v1594_v35, %v1594_v35 }
  0x26   :  { %1762 = vmatprep.subr.bf16.mxu1 %v2261_v4  ;;  %1992 = vmatpush3.bf16.msra.mxu0 %v2451_v39 }
  0x27   :  { %1993 = vmatprep.subr.bf16.mxu0 %v2207_v34 }
  0x29   :  { %1763 = vmatpush3.bf16.msra.mxu1 %v2273_v6 }
  0x2a   :  { %1764 = vmatprep.subr.bf16.mxu1 %v2285_v8  ;;  %1994 = vmatpush3.bf16.msra.mxu0 %v2471_v44 }
  0x2b   :  { %439 = vmatmul.mubr.bf16.gmra.mrb[4].mxu0 %v2135_v40  ;;  %1995 = vmatprep.subr.bf16.mxu0 %v2207_v34  ;;  %v2166_v40 = vld [vmem:[%s2845_s0 + $0xc4] ss:$0 sps:$4 sm:$0x33]  }
  0x2c   :  { %495 = vmatmul.mubr.bf16.gmra.mrb[4].mxu1 %v2136_v41  ;;  %446 = vmatprep.mubr.bf16.mxu0 %v1538_v45  ;;  %v2169_v41 = vld [vmem:[%s2845_s0 + $0xcc] ss:$20 sps:$4 sm:$0xff]   ;;  %v2170_v45 = vld [vmem:[%s2845_s0 + $0xd0] ss:$20 sps:$4 sm:$0xff]  }
  0x2d   :  { %1765 = vmatpush3.bf16.msra.mxu1 %v2297_v10  ;;  %502 = vmatprep.mubr.bf16.mxu1 %v1540_v46  ;;  %v2173_v46 = vld [vmem:[%s2845_s0 + $0xf4] ss:$20 sps:$4 sm:$0xff]  }
  0x2e   :  { %1766 = vmatprep.subr.bf16.mxu1 %v2309_v12  ;;  %1996 = vmatpush3.bf16.msra.mxu0 %v2479_v47 }
  0x2f   :  { %1997 = vmatprep.subr.bf16.mxu0 %v2207_v34 }
  0x31   :  { %1767 = vmatpush3.bf16.msra.mxu1 %v2321_v14 }
  0x32   :  { %1768 = vmatprep.subr.bf16.mxu1 %v2333_v16  ;;  %1998 = vmatpush3.bf16.msra.mxu0 %v2488_v50 }
  0x33   :  { %447 = vmatmul.mubr.bf16.gmra.mrb[8].mxu0 %v1537_v48  ;;  %1794 = vmatprep.subr.bf16.mxu0 %v2243_v1  ;;  %v2175_v48 = vld [vmem:[%s2845_s0 + $0xfc] ss:$20 sps:$4 sm:$0xff]  }
  0x34   :  { %503 = vmatmul.mubr.bf16.gmra.mrb[8].mxu1 %v1539_v49  ;;  %1999 = vmatprep.mubr.msk.bf16.mxu0 %vm2208_vm0, %v2207_v34  ;;  %v1626_v49 = vld [vmem:[%s2845_s0 + $0x118] sm:$0x33] }
  0x35   :  { %1769 = vmatpush3.bf16.msra.mxu1 %v2345_v18  ;;  %690 = vmatprep.mubr.bf16.mxu1 %v2148_v51  ;;  %v1627_v51 = vld [vmem:[%s2845_s0 + $0x120] sm:$0x33] }
  0x36   :  { %1770 = vmatprep.subr.bf16.mxu1 %v2357_v20 }
  0x39   :  { %1771 = vmatpush3.bf16.msra.mxu1 %v2369_v22 }
  0x3a   :  { %1772 = vmatprep.subr.bf16.mxu1 %v2381_v24 }
  0x3b   :  { %2000 = vmatmul.mubr.msk.bf16.vlgmr.msra.gmra.mrb[12].mxu0 %vm388_vm1, %v2145_v52  ;;  %v1640_v52 = vcombine.high %v1626_v49, %v1626_v49 }
  0x3c   :  { %1795 = vmatpush3.bf16.msra.mxu0 %v2255_v3  ;;  %2003 = vmatprep.mubr.msk.bf16.mxu0 %vm2208_vm0, %v2207_v34 }
  0x3d   :  { %1773 = vmatpush3.bf16.msra.mxu1 %v2393_v26  ;;  %1796 = vmatprep.subr.bf16.mxu0 %v2267_v5 }
  0x3e   :  { %1774 = vmatprep.subr.bf16.mxu1 %v2405_v28 }
  0x40   :  { %1797 = vmatpush3.bf16.msra.mxu0 %v2279_v7 }
  0x41   :  { %1775 = vmatpush3.bf16.msra.mxu1 %v2417_v30  ;;  %1798 = vmatprep.subr.bf16.mxu0 %v2291_v9 }
  0x42   :  { %2011 = vmatprep.subr.bf16.mxu1 %v2207_v34 }
  0x43   :  { %2004 = vmatmul.mubr.msk.bf16.gmra.mrb[16].mxu0 %vm388_vm1, %v2149_v53  ;;  %v1639_v53 = vcombine.low %v1626_v49, %v1626_v49 }
  0x44   :  { %691 = vmatmul.mubr.bf16.vlgmr.msra.gmra.mrb[12].mxu1 %v2146_v54  ;;  %1799 = vmatpush3.bf16.msra.mxu0 %v2303_v11 }
  0x45   :  { %1800 = vmatprep.subr.bf16.mxu0 %v2315_v13  ;;  %2007 = vmatprep.mubr.msk.bf16.mxu0 %vm2208_vm0, %v2207_v34 }
  0x46   :  { %698 = vmatprep.mubr.bf16.mxu1 %v2150_v55  ;;  %2012 = vmatpush3.bf16.msra.mxu1 %v2451_v39 }
  0x47   :  { %2013 = vmatprep.subr.bf16.mxu1 %v2207_v34 }
  0x48   :  { %1801 = vmatpush3.bf16.msra.mxu0 %v2327_v15 }
  0x49   :  { %1802 = vmatprep.subr.bf16.mxu0 %v2339_v17 }
  0x4a   :  { %2014 = vmatpush3.bf16.msra.mxu1 %v2471_v44 }
  0x4b   :  { %2008 = vmatmul.mubr.msk.bf16.gmra.mrb[20].mxu0 %vm388_vm1, %v2152_v57  ;;  %2015 = vmatprep.subr.bf16.mxu1 %v2207_v34 }
  0x4c   :  { %699 = vmatmul.mubr.bf16.gmra.mrb[16].mxu1 %v2153_v58  ;;  %1803 = vmatpush3.bf16.msra.mxu0 %v2351_v19 }
  0x4d   :  { %1804 = vmatprep.subr.bf16.mxu0 %v2363_v21  ;;  %706 = vmatprep.mubr.bf16.mxu1 %v1607_v59 }
  0x4e   :  { %2016 = vmatpush3.bf16.msra.mxu1 %v2479_v47  ;;  %746 = vmatprep.mubr.bf16.mxu0 %v2158_v60 }
  0x4f   :  { %2017 = vmatprep.subr.bf16.mxu1 %v2207_v34 }
  0x50   :  { %1805 = vmatpush3.bf16.msra.mxu0 %v2375_v23 }
  0x51   :  { %1806 = vmatprep.subr.bf16.mxu0 %v2387_v25 }
  0x52   :  { %2018 = vmatpush3.bf16.msra.mxu1 %v2488_v50 }
  0x53   :  { %1869 = vmatprep.subr.bf16.mxu1 %v2243_v1 }
  0x54   :  { %707 = vmatmul.mubr.bf16.gmra.mrb[20].mxu1 %v1606_v61  ;;  %1807 = vmatpush3.bf16.msra.mxu0 %v2399_v27 }
  0x55   :  { %1808 = vmatprep.subr.bf16.mxu0 %v2411_v29  ;;  %2019 = vmatprep.mubr.msk.bf16.mxu1 %vm2208_vm0, %v2207_v34 }
  0x58   :  { %1809 = vmatpush3.bf16.msra.mxu0 %v2423_v31 }
  0x59   :  { %1835 = vmatprep.subr.bf16.mxu0 %v2238_v0 }
  0x5b   :  { %747 = vmatmul.mubr.bf16.vlgmr.msra.gmra.mrb[24].mxu0 %v2156_v62 }
  0x5c   :  { %2020 = vmatmul.mubr.msk.bf16.vlgmr.msra.gmra.mrb[24].mxu1 %vm388_vm1, %v2159_v63  ;;  %1836 = vmatpush3.bf16.msra.mxu0 %v2249_v2 }
  0x5d   :  { %1870 = vmatpush3.bf16.msra.mxu1 %v2255_v3  ;;  %1837 = vmatprep.subr.bf16.mxu0 %v2261_v4 }
  0x5e   :  { %1871 = vmatprep.subr.bf16.mxu1 %v2267_v5  ;;  %754 = vmatprep.mubr.bf16.mxu0 %v2160_v32 }
  0x5f   :  { %2023 = vmatprep.mubr.msk.bf16.mxu1 %vm2208_vm0, %v2207_v34 }
  0x60   :  { %1838 = vmatpush3.bf16.msra.mxu0 %v2273_v6 }
  0x61   :  { %1872 = vmatpush3.bf16.msra.mxu1 %v2279_v7  ;;  %1839 = vmatprep.subr.bf16.mxu0 %v2285_v8 }
  0x62   :  { %1873 = vmatprep.subr.bf16.mxu1 %v2291_v9 }
  0x63   :  { %755 = vmatmul.mubr.bf16.gmra.mrb[28].mxu0 %v2162_v33 }
  0x64   :  { %1840 = vmatpush3.bf16.msra.mxu0 %v2297_v10  ;;  %2024 = vmatmul.mubr.msk.bf16.gmra.mrb[28].mxu1 %vm388_vm1, %v2163_v36 }
  0x65   :  { %1874 = vmatpush3.bf16.msra.mxu1 %v2303_v11  ;;  %1841 = vmatprep.subr.bf16.mxu0 %v2309_v12 }
  0x66   :  { %1875 = vmatprep.subr.bf16.mxu1 %v2315_v13  ;;  %762 = vmatprep.mubr.bf16.mxu0 %v1609_v37 }
  0x67   :  { %2027 = vmatprep.mubr.msk.bf16.mxu1 %vm2208_vm0, %v2207_v34 }
  0x68   :  { %1842 = vmatpush3.bf16.msra.mxu0 %v2321_v14 }
  0x69   :  { %1876 = vmatpush3.bf16.msra.mxu1 %v2327_v15  ;;  %1843 = vmatprep.subr.bf16.mxu0 %v2333_v16 }
  0x6a   :  { %1877 = vmatprep.subr.bf16.mxu1 %v2339_v17 }
  0x6b   :  { %763 = vmatmul.mubr.bf16.gmra.mrb[32].mxu0 %v1608_v38 }
  0x6c   :  { %1844 = vmatpush3.bf16.msra.mxu0 %v2345_v18  ;;  %2028 = vmatmul.mubr.msk.bf16.gmra.mrb[32].mxu1 %vm388_vm1, %v2166_v40 }
  0x6d   :  { %1878 = vmatpush3.bf16.msra.mxu1 %v2351_v19  ;;  %1845 = vmatprep.subr.bf16.mxu0 %v2357_v20 }
  0x6e   :  { %1879 = vmatprep.subr.bf16.mxu1 %v2363_v21  ;;  %950 = vmatprep.mubr.bf16.mxu0 %v2169_v41 }
  0x6f   :  { %1006 = vmatprep.mubr.bf16.mxu1 %v2172_v42 }
  0x70   :  { %1846 = vmatpush3.bf16.msra.mxu0 %v2369_v22 }
  0x71   :  { %1880 = vmatpush3.bf16.msra.mxu1 %v2375_v23  ;;  %1847 = vmatprep.subr.bf16.mxu0 %v2381_v24 }
  0x72   :  { %1881 = vmatprep.subr.bf16.mxu1 %v2387_v25 }
  0x74   :  { %1848 = vmatpush3.bf16.msra.mxu0 %v2393_v26 }
  0x75   :  { %1882 = vmatpush3.bf16.msra.mxu1 %v2399_v27  ;;  %1849 = vmatprep.subr.bf16.mxu0 %v2405_v28 }
  0x76   :  { %1883 = vmatprep.subr.bf16.mxu1 %v2411_v29 }
  0x78   :  { %1850 = vmatpush3.bf16.msra.mxu0 %v2417_v30 }
  0x79   :  { %1884 = vmatpush3.bf16.msra.mxu1 %v2423_v31  ;;  %2031 = vmatprep.subr.bf16.mxu0 %v2207_v34 }
  0x7a   :  { %1910 = vmatprep.subr.bf16.mxu1 %v2238_v0  ;;  %v2177_v0 = vld [vmem:[%s2845_s0 + $0xf0] ss:$20 sps:$4 sm:$0xff]  }
  0x7b   :  { %951 = vmatmul.mubr.bf16.vlgmr.msra.gmra.mrb[36].mxu0 %v2167_v43 }
  0x7c   :  { %1007 = vmatmul.mubr.bf16.vlgmr.msra.gmra.mrb[36].mxu1 %v2170_v45  ;;  %958 = vmatprep.mubr.bf16.mxu0 %v2173_v46 }
  0x7d   :  { %1911 = vmatpush3.bf16.msra.mxu1 %v2249_v2  ;;  %1014 = vmatprep.mubr.bf16.mxu1 %v2175_v48  ;;  %v2178_v2 = vld [vmem:[%s2845_s0 + $0xf8] ss:$20 sps:$4 sm:$0xff]  }
  0x7e   :  { %1912 = vmatprep.subr.bf16.mxu1 %v2261_v4  ;;  %2032 = vmatpush3.bf16.msra.mxu0 %v2451_v39  ;;  %v1642_v4 = vcombine.high %v1627_v51, %v1627_v51 }
  0x7f   :  { %2033 = vmatprep.subr.bf16.mxu0 %v2207_v34 }
  0x81   :  { %1913 = vmatpush3.bf16.msra.mxu1 %v2273_v6  ;;  %v1641_v6 = vcombine.low %v1627_v51, %v1627_v51 }
  0x82   :  { %1914 = vmatprep.subr.bf16.mxu1 %v2285_v8  ;;  %2034 = vmatpush3.bf16.msra.mxu0 %v2471_v44  ;;  %v2187_v8 = vld [vmem:[%s2845_s0 + $0x130] ss:$20 sps:$4 sm:$0xff]  }
  0x83   :  { %959 = vmatmul.mubr.bf16.gmra.mrb[40].mxu0 %v2177_v0  ;;  %2035 = vmatprep.subr.bf16.mxu0 %v2207_v34 }
  0x84   :  { %1015 = vmatmul.mubr.bf16.gmra.mrb[40].mxu1 %v2178_v2  ;;  %966 = vmatprep.mubr.bf16.mxu0 %v1640_v52 }
  0x85   :  { %1915 = vmatpush3.bf16.msra.mxu1 %v2297_v10  ;;  %1022 = vmatprep.mubr.bf16.mxu1 %v1642_v4  ;;  %v2183_v10 = vld [vmem:[%s2845_s0 + $0xd8] ss:$20 sps:$4 sm:$0xff]  }
  0x86   :  { %1916 = vmatprep.subr.bf16.mxu1 %v2309_v12  ;;  %2036 = vmatpush3.bf16.msra.mxu0 %v2479_v47  ;;  %v2185_v12 = vld [vmem:[%s2845_s0 + $0x12c] ss:$20 sps:$4 sm:$0xff]  }
  0x87   :  { %2037 = vmatprep.subr.bf16.mxu0 %v2207_v34 }
  0x89   :  { %1917 = vmatpush3.bf16.msra.mxu1 %v2321_v14 }
  0x8a   :  { %1918 = vmatprep.subr.bf16.mxu1 %v2333_v16  ;;  %2038 = vmatpush3.bf16.msra.mxu0 %v2488_v50  ;;  %v2197_v16 = vld [vmem:[%s2845_s0 + $0x13c] ss:$20 sps:$4 sm:$0xff]  }
  0x8b   :  { %967 = vmatmul.mubr.bf16.gmra.mrb[44].mxu0 %v1639_v53  ;;  %1944 = vmatprep.subr.bf16.mxu0 %v2243_v1  ;;  %v2184_v1 = vld [vmem:[%s2845_s0 + $0x100] ss:$20 sps:$4 sm:$0xff]  }
  0x8c   :  { %1023 = vmatmul.mubr.bf16.gmra.mrb[44].mxu1 %v1641_v6  ;;  %2039 = vmatprep.mubr.msk.bf16.mxu0 %vm2208_vm0, %v2207_v34 }
  0x8d   :  { %1919 = vmatpush3.bf16.msra.mxu1 %v2345_v18  ;;  %1210 = vmatprep.mubr.bf16.mxu1 %v2187_v8  ;;  %v1660_v18 = vld [vmem:[%s2845_s0 + $0x184] sm:$0x33] }
  0x8e   :  { %1920 = vmatprep.subr.bf16.mxu1 %v2357_v20  ;;  %v2201_v20 = vld [vmem:[%s2845_s0 + $0x164] ss:$20 sps:$4 sm:$0xff]  }
  0x91   :  { %1921 = vmatpush3.bf16.msra.mxu1 %v2369_v22  ;;  %v1674_v22 = vcombine.low %v1660_v18, %v1660_v18 }
  0x92   :  { %1922 = vmatprep.subr.bf16.mxu1 %v2381_v24 }
  0x93   :  { %2040 = vmatmul.mubr.msk.bf16.vlgmr.msra.gmra.mrb[48].mxu0 %vm388_vm1, %v2183_v10 }
  0x94   :  { %1945 = vmatpush3.bf16.msra.mxu0 %v2255_v3  ;;  %2043 = vmatprep.mubr.msk.bf16.mxu0 %vm2208_vm0, %v2207_v34  ;;  %v2189_v3 = vld [vmem:[%s2845_s0 + $0x158] ss:$20 sps:$4 sm:$0xff]  }
  0x95   :  { %1923 = vmatpush3.bf16.msra.mxu1 %v2393_v26  ;;  %1946 = vmatprep.subr.bf16.mxu0 %v2267_v5  ;;  %v1659_v5 = vld [vmem:[%s2845_s0 + $0x17c] sm:$0x33] }
  0x96   :  { %1924 = vmatprep.subr.bf16.mxu1 %v2405_v28  ;;  %v1672_v14 = vcombine.low %v1659_v5, %v1659_v5 }
  0x98   :  { %1947 = vmatpush3.bf16.msra.mxu0 %v2279_v7  ;;  %v2188_v7 = vld [vmem:[%s2845_s0 + $0x128] ss:$0 sps:$4 sm:$0x33]  }
  0x99   :  { %1925 = vmatpush3.bf16.msra.mxu1 %v2417_v30  ;;  %1948 = vmatprep.subr.bf16.mxu0 %v2291_v9  ;;  %v2191_v9 = vld [vmem:[%s2845_s0 + $0x154] ss:$20 sps:$4 sm:$0xff]  }
  0x9a   :  { %2051 = vmatprep.subr.bf16.mxu1 %v2207_v34 }
  0x9b   :  { %2044 = vmatmul.mubr.msk.bf16.gmra.mrb[52].mxu0 %vm388_vm1, %v2184_v1 }
  0x9c   :  { %1949 = vmatpush3.bf16.msra.mxu0 %v2303_v11  ;;  %1211 = vmatmul.mubr.bf16.vlgmr.msra.gmra.mrb[48].mxu1 %v2185_v12  ;;  %v1673_v11 = vcombine.high %v1659_v5, %v1659_v5 }
  0x9d   :  { %1950 = vmatprep.subr.bf16.mxu0 %v2315_v13  ;;  %2047 = vmatprep.mubr.msk.bf16.mxu0 %vm2208_vm0, %v2207_v34  ;;  %v2196_v13 = vld [vmem:[%s2845_s0 + $0x138] ss:$20 sps:$4 sm:$0xff]  }
  0x9e   :  { %1218 = vmatprep.mubr.bf16.mxu1 %v2189_v3  ;;  %2052 = vmatpush3.bf16.msra.mxu1 %v2451_v39 }
  0x9f   :  { %2053 = vmatprep.subr.bf16.mxu1 %v2207_v34 }
  0xa0   :  { %1951 = vmatpush3.bf16.msra.mxu0 %v2327_v15  ;;  %v2194_v15 = vld [vmem:[%s2845_s0 + $0x134] ss:$20 sps:$4 sm:$0xff]  }
  0xa1   :  { %1952 = vmatprep.subr.bf16.mxu0 %v2339_v17  ;;  %v2198_v17 = vld [vmem:[%s2845_s0 + $0x160] ss:$20 sps:$4 sm:$0xff]  }
  0xa2   :  { %2054 = vmatpush3.bf16.msra.mxu1 %v2471_v44 }
  0xa3   :  { %2048 = vmatmul.mubr.msk.bf16.gmra.mrb[56].mxu0 %vm388_vm1, %v2188_v7  ;;  %2055 = vmatprep.subr.bf16.mxu1 %v2207_v34 }
  0xa4   :  { %1953 = vmatpush3.bf16.msra.mxu0 %v2351_v19  ;;  %1219 = vmatmul.mubr.bf16.gmra.mrb[52].mxu1 %v2191_v9  ;;  %v2200_v19 = vld [vmem:[%s2845_s0 + $0x15c] ss:$20 sps:$4 sm:$0xff]  }
  0xa5   :  { %1954 = vmatprep.subr.bf16.mxu0 %v2363_v21  ;;  %1226 = vmatprep.mubr.bf16.mxu1 %v1673_v11  ;;  %v1675_v21 = vcombine.high %v1660_v18, %v1660_v18 }
  0xa6   :  { %2056 = vmatpush3.bf16.msra.mxu1 %v2479_v47  ;;  %1266 = vmatprep.mubr.bf16.mxu0 %v2196_v13 }
  0xa7   :  { %2057 = vmatprep.subr.bf16.mxu1 %v2207_v34 }
  0xa8   :  { %1955 = vmatpush3.bf16.msra.mxu0 %v2375_v23  ;;  %v2204_v23 = vld [vmem:[%s2845_s0 + $0x18c] ss:$0 sps:$4 sm:$0x33]  }
  0xa9   :  { %1956 = vmatprep.subr.bf16.mxu0 %v2387_v25 }
  0xaa   :  { %2058 = vmatpush3.bf16.msra.mxu1 %v2488_v50 }
  0xac   :  { %1957 = vmatpush3.bf16.msra.mxu0 %v2399_v27  ;;  %1227 = vmatmul.mubr.bf16.gmra.mrb[56].mxu1 %v1672_v14 }
  0xad   :  { %1958 = vmatprep.subr.bf16.mxu0 %v2411_v29  ;;  %2059 = vmatprep.mubr.msk.bf16.mxu1 %vm2208_vm0, %v2207_v34 }
  0xb0   :  { %1959 = vmatpush3.bf16.msra.mxu0 %v2423_v31 }
  0xb3   :  { %1267 = vmatmul.mubr.bf16.vlgmr.msra.gmra.mrb[60].mxu0 %v2194_v15 }
  0xb4   :  { %2060 = vmatmul.mubr.msk.bf16.vlgmr.msra.gmra.mrb[60].mxu1 %vm388_vm1, %v2197_v16  ;;  %1274 = vmatprep.mubr.bf16.mxu0 %v2198_v17 }
  0xb5   :  { %2063 = vmatprep.mubr.msk.bf16.mxu1 %vm2208_vm0, %v2207_v34 }
  0xbb   :  { %1275 = vmatmul.mubr.bf16.gmra.mrb[64].mxu0 %v2200_v19 }
  0xbc   :  { %2064 = vmatmul.mubr.msk.bf16.gmra.mrb[64].mxu1 %vm388_vm1, %v2201_v20  ;;  %1282 = vmatprep.mubr.bf16.mxu0 %v1675_v21 }
  0xbd   :  { %2067 = vmatprep.mubr.msk.bf16.mxu1 %vm2208_vm0, %v2207_v34 }
  0xc3   :  { %1283 = vmatmul.mubr.bf16.gmra.mrb[68].mxu0 %v1674_v22 }
  0xc4   :  { %2068 = vmatmul.mubr.msk.bf16.gmra.mrb[68].mxu1 %vm388_vm1, %v2204_v23  ;;  %2081 = vmatprep.mubr.msk.f32.mxu0 %vm2208_vm0, %v2207_v34 }
  0xf6   :  { %v1701_v24 = vpop.f32.mrb[0].mxu0 }
  0xf7   :  { %v1735_v25 = vpop.f32.mrb[0].mxu1  ;;  %v1702_v26 = vpop.f32.mrb[1].mxu0 }
  0xf8   :  { %v1703_v27 = vadd.f32 %v1702_v26, %v1701_v24  ;;  %v1736_v28 = vpop.f32.mrb[1].mxu1  ;;  %v1704_v29 = vpop.f32.mrb[2].mxu0 }
  0xf9   :  { %v1737_v30 = vadd.f32 %v1736_v28, %v1735_v25  ;;  %v1738_v31 = vpop.f32.mrb[2].mxu1  ;;  %v1705_v39 = vpop.f32.mrb[3].mxu0 }
  0xfa   :  { %v1706_v44 = vadd.f32 %v1705_v39, %v1704_v29  ;;  %v1739_v47 = vpop.f32.mrb[3].mxu1 }
  0xfb   :  { %v1740_v50 = vadd.f32 %v1739_v47, %v1738_v31  ;;  %v489_v54 = vadd.f32 %v1737_v30, %v1703_v27 }
  0xfd   :  { %v492_v55 = vadd.f32 %v1740_v50, %v1706_v44 }
  0xfe   :  { %v1707_v56 = vpop.f32.mrb[4].mxu0 }
  0xff   :  { %v1741_v57 = vpop.f32.mrb[4].mxu1  ;;  %v1708_v58 = vpop.f32.mrb[5].mxu0 }
 0x100   :  { %v1709_v59 = vadd.f32 %v1708_v58, %v1707_v56  ;;  %v1742_v60 = vpop.f32.mrb[5].mxu1  ;;  %v1710_v61 = vpop.f32.mrb[6].mxu0 }
 0x101   :  { %v1743_v62 = vadd.f32 %v1742_v60, %v1741_v57  ;;  %v1744_v63 = vpop.f32.mrb[6].mxu1  ;;  %v1711_v32 = vpop.f32.mrb[7].mxu0 }
 0x102   :  { %v1712_v33 = vadd.f32 %v1711_v32, %v1710_v61  ;;  %v1745_v35 = vpop.f32.mrb[7].mxu1 }
 0x103   :  { %v1746_v36 = vadd.f32 %v1745_v35, %v1744_v63  ;;  %v497_v37 = vadd.f32 %v1743_v62, %v1709_v59 }
 0x105   :  { %v500_v38 = vadd.f32 %v1746_v36, %v1712_v33 }
 0x106   :  { %v1713_v40 = vpop.f32.mrb[8].mxu0 }
 0x107   :  { %v1747_v41 = vpop.f32.mrb[8].mxu1  ;;  %v1714_v42 = vpop.f32.mrb[9].mxu0 }
 0x108   :  { %v1715_v43 = vadd.f32 %v1714_v42, %v1713_v40  ;;  %v1748_v45 = vpop.f32.mrb[9].mxu1  ;;  %v1716_v46 = vpop.f32.mrb[10].mxu0 }
 0x109   :  { %v1749_v48 = vadd.f32 %v1748_v45, %v1747_v41  ;;  %v1717_v49 = vpop.f32.mrb[11].mxu0  ;;  %v1750_v51 = vpop.f32.mrb[10].mxu1 }
 0x10a   :  { %v1751_v0 = vpop.f32.mrb[11].mxu1 }
 0x10b   :  { %v505_v2 = vadd.f32 %v1749_v48, %v1715_v43 }
 0x10e   :  { %v544_v52 = vpop.f32.mrb[12].mxu0 }
 0x10f   :  { %v2769_v4 = vadd.f32 %v544_v52, %v489_v54  ;;  %v2001_v53 = vpop.f32.mrb[13].mxu0 }
 0x110   :  { %v547_v6 = vpop.f32.mrb[14].mxu0 }
 0x111   :  { %v2771_v8 = vadd.f32 %v547_v6, %v492_v55  ;;  %v2002_v10 = vpop.f32.mrb[15].mxu0 }
 0x116   :  { %v552_v1 = vpop.f32.mrb[16].mxu0 }
 0x117   :  { %v2773_v12 = vadd.f32 %v552_v1, %v497_v37  ;;  %v2005_v3 = vpop.f32.mrb[17].mxu0  ;;  %v1776_v5 = vpop.f32.mrb[12].mxu1 }
 0x118   :  { %v555_v7 = vpop.f32.mrb[18].mxu0  ;;  %v1777_v9 = vpop.f32.mrb[13].mxu1 }
 0x119   :  { %v2775_v11 = vadd.f32 %v555_v7, %v500_v38  ;;  %v1778_v13 = vadd.f32 %v1777_v9, %v1776_v5  ;;  %v1779_v14 = vpop.f32.mrb[14].mxu1  ;;  %v2006_v15 = vpop.f32.mrb[19].mxu0 }
 0x11a   :  { %v1780_v16 = vpop.f32.mrb[15].mxu1 }
 0x11b   :  { %v1781_v17 = vadd.f32 %v1780_v16, %v1779_v14 }
 0x11e   :  { %v560_v18 = vpop.f32.mrb[20].mxu0 }
 0x11f   :  { %v2777_v19 = vadd.f32 %v560_v18, %v505_v2  ;;  %v1782_v20 = vpop.f32.mrb[16].mxu1  ;;  %v2009_v21 = vpop.f32.mrb[21].mxu0 }
 0x120   :  { %v1783_v22 = vpop.f32.mrb[17].mxu1  ;;  %v563_v23 = vpop.f32.mrb[22].mxu0 }
 0x121   :  { %v1784_v24 = vadd.f32 %v1783_v22, %v1782_v20  ;;  %v1785_v25 = vpop.f32.mrb[18].mxu1  ;;  %v2010_v26 = vpop.f32.mrb[23].mxu0 }
 0x122   :  { %v1786_v27 = vpop.f32.mrb[19].mxu1 }
 0x123   :  { %v1787_v28 = vadd.f32 %v1786_v27, %v1785_v25 }
 0x127   :  { %v1788_v29 = vpop.f32.mrb[20].mxu1 }
 0x128   :  { %v1789_v30 = vpop.f32.mrb[21].mxu1 }
 0x129   :  { %v1790_v31 = vadd.f32 %v1789_v30, %v1788_v29  ;;  %v1791_v39 = vpop.f32.mrb[22].mxu1 }
 0x12a   :  { %v1792_v44 = vpop.f32.mrb[23].mxu1 }
 0x12e   :  { %v1810_v47 = vpop.f32.mrb[24].mxu0 }
 0x12f   :  { %v1811_v50 = vpop.f32.mrb[25].mxu0  ;;  %v804_v54 = vpop.f32.mrb[24].mxu1 }
 0x130   :  { %v1812_v55 = vadd.f32 %v1811_v50, %v1810_v47  ;;  %v1813_v56 = vpop.f32.mrb[26].mxu0  ;;  %v2021_v57 = vpop.f32.mrb[25].mxu1 }
 0x131   :  { %v1814_v58 = vpop.f32.mrb[27].mxu0  ;;  %v807_v59 = vpop.f32.mrb[26].mxu1 }
 0x132   :  { %v749_v60 = vadd.f32 %v1812_v55, %v1778_v13  ;;  %v1815_v61 = vadd.f32 %v1814_v58, %v1813_v56  ;;  %v2022_v62 = vpop.f32.mrb[27].mxu1 }
 0x134   :  { %v2779_v63 = vadd.f32 %v804_v54, %v749_v60  ;;  %v752_v32 = vadd.f32 %v1815_v61, %v1781_v17 }
 0x136   :  { %v1346_v33 = vmax.f32 %v2769_v4, %v2779_v63  ;;  %v2783_v35 = vadd.f32 %v807_v59, %v752_v32  ;;  %v1816_v36 = vpop.f32.mrb[28].mxu0 }
 0x137   :  { %v1817_v37 = vpop.f32.mrb[29].mxu0  ;;  %v812_v38 = vpop.f32.mrb[28].mxu1 }
 0x138   :  { %v1347_v40 = vmax.f32 %v2771_v8, %v2783_v35  ;;  %v1818_v41 = vadd.f32 %v1817_v37, %v1816_v36  ;;  %v1819_v42 = vpop.f32.mrb[30].mxu0  ;;  %v2025_v43 = vpop.f32.mrb[29].mxu1 }
 0x139   :  { %v1820_v45 = vpop.f32.mrb[31].mxu0  ;;  %v815_v46 = vpop.f32.mrb[30].mxu1 }
 0x13a   :  { %v1821_v48 = vadd.f32 %v1820_v45, %v1819_v42  ;;  %v757_v49 = vadd.f32 %v1818_v41, %v1784_v24  ;;  %v2026_v51 = vpop.f32.mrb[31].mxu1 }
 0x13c   :  { %v2787_v0 = vadd.f32 %v812_v38, %v757_v49  ;;  %v760_v2 = vadd.f32 %v1821_v48, %v1787_v28 }
 0x13e   :  { %v1348_v52 = vmax.f32 %v2773_v12, %v2787_v0  ;;  %v2791_v53 = vadd.f32 %v815_v46, %v760_v2  ;;  %v1822_v6 = vpop.f32.mrb[32].mxu0  ;;  %v2209_v2 = vmov 0.0|0.0  }
 0x13f   :  { %v1823_v10 = vpop.f32.mrb[33].mxu0  ;;  %v820_v1 = vpop.f32.mrb[32].mxu1  ;;  %2084 = vmatprep.subr.bf16.mxu0 %v2209_v2 }
 0x140   :  { %v1349_v3 = vmax.f32 %v2775_v11, %v2791_v53  ;;  %v1824_v5 = vadd.f32 %v1823_v10, %v1822_v6  ;;  %v1825_v7 = vpop.f32.mrb[34].mxu0  ;;  %v2029_v9 = vpop.f32.mrb[33].mxu1 }
 0x141   :  { %v1826_v13 = vpop.f32.mrb[35].mxu0  ;;  %v823_v14 = vpop.f32.mrb[34].mxu1 }
 0x142   :  { %v765_v15 = vadd.f32 %v1824_v5, %v1790_v31  ;;  %v2030_v16 = vpop.f32.mrb[35].mxu1 }
 0x144   :  { %v2795_v17 = vadd.f32 %v820_v1, %v765_v15 }
 0x146   :  { %v1350_v18 = vmax.f32 %v2777_v19, %v2795_v17 }
 0x14e   :  { %v1851_v20 = vpop.f32.mrb[36].mxu0 }
 0x14f   :  { %v1885_v21 = vpop.f32.mrb[36].mxu1  ;;  %v1852_v22 = vpop.f32.mrb[37].mxu0 }
 0x150   :  { %v1853_v23 = vadd.f32 %v1852_v22, %v1851_v20  ;;  %v1886_v24 = vpop.f32.mrb[37].mxu1  ;;  %v1854_v25 = vpop.f32.mrb[38].mxu0 }
 0x151   :  { %v1887_v26 = vadd.f32 %v1886_v24, %v1885_v21  ;;  %v1888_v27 = vpop.f32.mrb[38].mxu1  ;;  %v1855_v28 = vpop.f32.mrb[39].mxu0 }
 0x152   :  { %v1856_v29 = vadd.f32 %v1855_v28, %v1854_v25  ;;  %v1889_v30 = vpop.f32.mrb[39].mxu1 }
 0x153   :  { %v1890_v39 = vadd.f32 %v1889_v30, %v1888_v27  ;;  %v1009_v44 = vadd.f32 %v1887_v26, %v1853_v23 }
 0x155   :  { %v1012_v31 = vadd.f32 %v1890_v39, %v1856_v29 }
 0x156   :  { %v1857_v47 = vpop.f32.mrb[40].mxu0 }
 0x157   :  { %v1891_v50 = vpop.f32.mrb[40].mxu1  ;;  %v1858_v54 = vpop.f32.mrb[41].mxu0 }
 0x158   :  { %v1859_v55 = vadd.f32 %v1858_v54, %v1857_v47  ;;  %v1892_v56 = vpop.f32.mrb[41].mxu1  ;;  %v1860_v57 = vpop.f32.mrb[42].mxu0 }
 0x159   :  { %v1893_v58 = vadd.f32 %v1892_v56, %v1891_v50  ;;  %v1894_v59 = vpop.f32.mrb[42].mxu1  ;;  %v1861_v60 = vpop.f32.mrb[43].mxu0 }
 0x15a   :  { %v1862_v61 = vadd.f32 %v1861_v60, %v1860_v57  ;;  %v1895_v62 = vpop.f32.mrb[43].mxu1 }
 0x15b   :  { %v1896_v32 = vadd.f32 %v1895_v62, %v1894_v59  ;;  %v1017_v36 = vadd.f32 %v1893_v58, %v1859_v55 }
 0x15d   :  { %v1020_v37 = vadd.f32 %v1896_v32, %v1862_v61 }
 0x15e   :  { %v1863_v38 = vpop.f32.mrb[44].mxu0 }
 0x15f   :  { %v1897_v41 = vpop.f32.mrb[44].mxu1  ;;  %v1864_v42 = vpop.f32.mrb[45].mxu0 }
 0x160   :  { %v1865_v43 = vadd.f32 %v1864_v42, %v1863_v38  ;;  %v1898_v45 = vpop.f32.mrb[45].mxu1  ;;  %v1866_v46 = vpop.f32.mrb[46].mxu0 }
 0x161   :  { %v1899_v48 = vadd.f32 %v1898_v45, %v1897_v41  ;;  %v1867_v49 = vpop.f32.mrb[47].mxu0  ;;  %v1900_v51 = vpop.f32.mrb[46].mxu1 }
 0x162   :  { %v1901_v6 = vpop.f32.mrb[47].mxu1 }
 0x163   :  { %v1025_v10 = vadd.f32 %v1899_v48, %v1865_v43 }
 0x166   :  { %v1064_v1 = vpop.f32.mrb[48].mxu0 }
 0x167   :  { %v1065_v5 = vadd.f32 %v1064_v1, %v1009_v44  ;;  %v2041_v7 = vpop.f32.mrb[49].mxu0 }
 0x168   :  { %v1067_v9 = vpop.f32.mrb[50].mxu0 }
 0x169   :  { %v1068_v13 = vadd.f32 %v1067_v9, %v1012_v31  ;;  %v2042_v14 = vpop.f32.mrb[51].mxu0 }
 0x16a   :  { %v1680_v14 = vld [vmem:[%s2846_s2] ss:$0 sm:$0xff] }
 0x16e   :  { %v1072_v15 = vpop.f32.mrb[52].mxu0 }
 0x16f   :  { %v2800_v16 = vadd.f32 %v1072_v15, %v1017_v36  ;;  %v2045_v20 = vpop.f32.mrb[53].mxu0  ;;  %v1926_v21 = vpop.f32.mrb[48].mxu1 }
 0x170   :  { %v1075_v22 = vpop.f32.mrb[54].mxu0  ;;  %v1927_v23 = vpop.f32.mrb[49].mxu1 }
 0x171   :  { %v2802_v24 = vadd.f32 %v1075_v22, %v1020_v37  ;;  %v1928_v25 = vadd.f32 %v1927_v23, %v1926_v21  ;;  %v1929_v26 = vpop.f32.mrb[50].mxu1  ;;  %v2046_v27 = vpop.f32.mrb[55].mxu0 }
 0x172   :  { %v1930_v28 = vpop.f32.mrb[51].mxu1 }
 0x173   :  { %v1931_v29 = vadd.f32 %v1930_v28, %v1929_v26 }
 0x176   :  { %v1080_v30 = vpop.f32.mrb[56].mxu0 }
 0x177   :  { %v2804_v39 = vadd.f32 %v1080_v30, %v1025_v10  ;;  %v1932_v44 = vpop.f32.mrb[52].mxu1  ;;  %v2049_v31 = vpop.f32.mrb[57].mxu0 }
 0x178   :  { %v1933_v47 = vpop.f32.mrb[53].mxu1  ;;  %v1083_v50 = vpop.f32.mrb[58].mxu0 }
 0x179   :  { %v1934_v54 = vadd.f32 %v1933_v47, %v1932_v44  ;;  %v1935_v55 = vpop.f32.mrb[54].mxu1  ;;  %v2050_v56 = vpop.f32.mrb[59].mxu0 }
 0x17a   :  { %v1936_v57 = vpop.f32.mrb[55].mxu1 }
 0x17b   :  { %v1937_v58 = vadd.f32 %v1936_v57, %v1935_v55 }
 0x17f   :  { %v1938_v59 = vpop.f32.mrb[56].mxu1 }
 0x180   :  { %v1939_v60 = vpop.f32.mrb[57].mxu1 }
 0x181   :  { %v1940_v61 = vadd.f32 %v1939_v60, %v1938_v59  ;;  %v1941_v62 = vpop.f32.mrb[58].mxu1 }
 0x182   :  { %v1942_v32 = vpop.f32.mrb[59].mxu1 }
 0x186   :  { %v1960_v36 = vpop.f32.mrb[60].mxu0 }
 0x187   :  { %v1961_v37 = vpop.f32.mrb[61].mxu0  ;;  %v1324_v38 = vpop.f32.mrb[60].mxu1 }
 0x188   :  { %v1962_v41 = vadd.f32 %v1961_v37, %v1960_v36  ;;  %v1963_v42 = vpop.f32.mrb[62].mxu0  ;;  %v2061_v43 = vpop.f32.mrb[61].mxu1 }
 0x189   :  { %v1964_v45 = vpop.f32.mrb[63].mxu0  ;;  %v1327_v46 = vpop.f32.mrb[62].mxu1 }
 0x18a   :  { %v1269_v48 = vadd.f32 %v1962_v41, %v1928_v25  ;;  %v1965_v49 = vadd.f32 %v1964_v45, %v1963_v42  ;;  %v2062_v51 = vpop.f32.mrb[63].mxu1 }
 0x18c   :  { %v1325_v6 = vadd.f32 %v1324_v38, %v1269_v48  ;;  %v1272_v10 = vadd.f32 %v1965_v49, %v1931_v29 }
 0x18e   :  { %v1351_v1 = vmax.f32 %v1065_v5, %v1325_v6  ;;  %v1328_v7 = vadd.f32 %v1327_v46, %v1272_v10  ;;  %v1966_v9 = vpop.f32.mrb[64].mxu0 }
 0x18f   :  { %v1967_v15 = vpop.f32.mrb[65].mxu0  ;;  %v1332_v20 = vpop.f32.mrb[64].mxu1 }
 0x190   :  { %v1356_v21 = vmax.f32 %v1346_v33, %v1351_v1  ;;  %v1352_v22 = vmax.f32 %v1068_v13, %v1328_v7  ;;  %v1968_v23 = vadd.f32 %v1967_v15, %v1966_v9  ;;  %v1969_v25 = vpop.f32.mrb[66].mxu0  ;;  %v2065_v26 = vpop.f32.mrb[65].mxu1 }
 0x191   :  { %v1970_v27 = vpop.f32.mrb[67].mxu0  ;;  %v1335_v28 = vpop.f32.mrb[66].mxu1 }
 0x192   :  { %v1366_v29 = vadd.f32 %v1680_v14, %v1356_v21  ;;  %v1357_v5 = vmax.f32 %v1347_v40, %v1352_v22  ;;  %v1277_v30 = vadd.f32 %v1968_v23, %v1934_v54  ;;  %v1971_v44 = vadd.f32 %v1970_v27, %v1969_v25  ;;  %v2066_v31 = vpop.f32.mrb[67].mxu1 }
 0x194   :  { %v1367_v47 = vadd.f32 %v1680_v14, %v1357_v5  ;;  %v1333_v50 = vadd.f32 %v1332_v20, %v1277_v30  ;;  %v1280_v55 = vadd.f32 %v1971_v44, %v1937_v58  ;;  %v1371_v56 = vmax.f32 %v1366_v29, 0.0 }
 0x196   :  { %v1372_v4 = vmax.f32 %v1367_v47, 0.0  ;;  %v1353_v63 = vmax.f32 %v2800_v16, %v1333_v50  ;;  %v1336_v33 = vadd.f32 %v1335_v28, %v1280_v55  ;;  %v1972_v13 = vpop.f32.mrb[68].mxu0 }
 0x197   :  { %v1973_v57 = vpop.f32.mrb[69].mxu0  ;;  %v1340_v59 = vpop.f32.mrb[68].mxu1 }
 0x198   :  { %v1378_v60 = vadd.f32 %v1372_v4, %v1371_v56  ;;  %v1358_v8 = vmax.f32 %v1348_v52, %v1353_v63  ;;  %v1354_v35 = vmax.f32 %v2802_v24, %v1336_v33  ;;  %v1974_v40 = vadd.f32 %v1973_v57, %v1972_v13  ;;  %v1975_v54 = vpop.f32.mrb[70].mxu0  ;;  %v2069_v62 = vpop.f32.mrb[69].mxu1  ;;  %v1682_v57 = vld [vmem:[%s2846_s2 + $0x2] ss:$0 sm:$0xff] }
 0x199   :  { %v1976_v32 = vpop.f32.mrb[71].mxu0  ;;  %v1343_v58 = vpop.f32.mrb[70].mxu1 }
 0x19a   :  { %v1368_v36 = vadd.f32 %v1680_v14, %v1358_v8  ;;  %v1359_v16 = vmax.f32 %v1349_v3, %v1354_v35  ;;  %v1285_v37 = vadd.f32 %v1974_v40, %v1940_v61  ;;  %v2070_v38 = vpop.f32.mrb[71].mxu1 }
 0x19c   :  { %v1373_v41 = vmax.f32 %v1368_v36, 0.0  ;;  %v1369_v42 = vadd.f32 %v1680_v14, %v1359_v16  ;;  %v1341_v43 = vadd.f32 %v1340_v59, %v1285_v37 }
 0x19e   :  { %v1379_v45 = vadd.f32 %v1378_v60, %v1373_v41  ;;  %v1374_v12 = vmax.f32 %v1369_v42, 0.0  ;;  %v1355_v0 = vmax.f32 %v2804_v39, %v1341_v43 }
 0x1a0   :  { %v1380_v52 = vadd.f32 %v1379_v45, %v1374_v12  ;;  %v1360_v24 = vmax.f32 %v1350_v18, %v1355_v0  ;;  %v1444_v0 = vld [vmem:[%s2847_s3] sm:$0xf] }
 0x1a2   :  { %v1370_v46 = vadd.f32 %v1680_v14, %v1360_v24 }
 0x1a4   :  { %v1375_v48 = vmax.f32 %v1370_v46, 0.0 }
 0x1a6   :  { %v1382_v11 = vsel %vm1381_vm2, %v1375_v48, 0.0 }
 0x1a7   :  { %v1383_v53 = vadd.f32 %v1382_v11, %v1380_v52 }
 0x1a9   :  { %v1384_v3 = vrot.slane %v1383_v53, 4 }
 0x1ab   :  { %v1385_v61 = vadd.f32 %v1384_v3, %v1383_v53 }
 0x1ad   :  { %v1386_v49 = vrot.slane %v1385_v61, 2 }
 0x1af   :  { %v1387_v51 = vadd.f32 %v1386_v49, %v1385_v61 }
 0x1b1   :  { %v1388_v6 = vrot.slane %v1387_v51, 1 }
 0x1b3   :  { %v1389_v10 = vadd.f32 %v1388_v6, %v1387_v51 }
 0x1b5   :  { %v1391_v1 = vmul.f32 0.027777778, %v1389_v10 }
 0x1b7   :  { %v1392_v7 = vsub.f32 %v1371_v56, %v1391_v1  ;;  %v1393_v39 = vsub.f32 %v1372_v4, %v1391_v1  ;;  %v1394_v9 = vsub.f32 %v1373_v41, %v1391_v1  ;;  %v1395_v15 = vsub.f32 %v1374_v12, %v1391_v1  ;;  %v1681_v56 = vld [vmem:[%s2846_s2 + $0x1] ss:$0 sm:$0xff] }
 0x1b8   :  { %v1396_v20 = vsub.f32 %v1375_v48, %v1391_v1 }
 0x1b9   :  { %v1397_v19 = vmul.f32 %v1392_v7, %v1392_v7  ;;  %v1398_v17 = vmul.f32 %v1393_v39, %v1393_v39  ;;  %v1399_v18 = vmul.f32 %v1394_v9, %v1394_v9  ;;  %v1400_v22 = vmul.f32 %v1395_v15, %v1395_v15 }
 0x1ba   :  { %v1401_v21 = vmul.f32 %v1396_v20, %v1396_v20 }
 0x1bb   :  { %v1402_v14 = vadd.f32 %v1398_v17, %v1397_v19 }
 0x1bc   :  { %v1405_v26 = vsel %vm1381_vm2, %v1401_v21, 0.0 }
 0x1bd   :  { %v1403_v23 = vadd.f32 %v1402_v14, %v1399_v18 }
 0x1bf   :  { %v1404_v25 = vadd.f32 %v1403_v23, %v1400_v22 }
 0x1c1   :  { %v1406_v27 = vadd.f32 %v1405_v26, %v1404_v25 }
 0x1c3   :  { %v1407_v28 = vrot.slane %v1406_v27, 4 }
 0x1c5   :  { %v1408_v29 = vadd.f32 %v1407_v28, %v1406_v27 }
 0x1c7   :  { %v1409_v5 = vrot.slane %v1408_v29, 2 }
 0x1c9   :  { %v1410_v30 = vadd.f32 %v1409_v5, %v1408_v29 }
 0x1cb   :  { %v1411_v44 = vrot.slane %v1410_v30, 1 }
 0x1cd   :  { %v1412_v31 = vadd.f32 %v1411_v44, %v1410_v30 }
 0x1cf   :  { %v1413_v47 = vmul.f32 0.027777778, %v1412_v31 }
 0x1d1   :  { %v1414_v50 = vadd.f32 1e-05, %v1413_v47 }
 0x1d3   :  { %2205 = vrsqrt.f32 %v1414_v50 }
 0x1dd   :  { %v2206_v55 = vpop.eup %2205 }
 0x1de   :  { %v1420_v4 = vmul.f32 %v2206_v55, %v1396_v20  ;;  %v1416_v63 = vmul.f32 %v2206_v55, %v1392_v7  ;;  %v1417_v33 = vmul.f32 %v2206_v55, %v1393_v39  ;;  %v1418_v13 = vmul.f32 %v2206_v55, %v1394_v9 }
 0x1df   :  { %v1419_v59 = vmul.f32 %v2206_v55, %v1395_v15 }
 0x1e0   :  { %v1425_v60 = vmul.f32 %v1681_v56, %v1416_v63  ;;  %v1426_v8 = vmul.f32 %v1681_v56, %v1417_v33  ;;  %v1427_v35 = vmul.f32 %v1681_v56, %v1418_v13  ;;  %v1429_v41 = vmul.f32 %v1681_v56, %v1420_v4 }
 0x1e1   :  { %v1428_v40 = vmul.f32 %v1681_v56, %v1419_v59 }
 0x1e2   :  { %v1434_v54 = vadd.f32 %v1682_v57, %v1425_v60  ;;  %v1435_v62 = vadd.f32 %v1682_v57, %v1426_v8  ;;  %v1436_v32 = vadd.f32 %v1682_v57, %v1427_v35  ;;  %v1438_v45 = vadd.f32 %v1682_v57, %v1429_v41 }
 0x1e3   :  { %v1437_v58 = vadd.f32 %v1682_v57, %v1428_v40 }
 0x1e4   :  { %v1439_v36 = vmax.f32 %v1434_v54, 0.0  ;;  %v1440_v16 = vmax.f32 %v1435_v62, 0.0  ;;  %v1441_v37 = vmax.f32 %v1436_v32, 0.0  ;;  %v1443_v12 = vmax.f32 %v1438_v45, 0.0 }
 0x1e5   :  { %v1442_v38 = vmax.f32 %v1437_v58, 0.0 }
 0x1e6   :  { %v2085_v42 = vpack.c.bf16 %v1440_v16, %v1439_v36 }
 0x1e7   :  { %v2088_v43 = vpack.c.bf16 %v1442_v38, %v1441_v37 }
 0x1e8   :  { %2086 = vmatpush3.bf16.msra.mxu0 %v2085_v42 }
 0x1e9   :  { %2087 = vmatprep.subr.bf16.mxu0 %v2209_v2 }
 0x1ec   :  { %2089 = vmatpush3.bf16.msra.mxu0 %v2088_v43 }
 0x1ed   :  { %2079 = vmatprep.subr.mxu0 %v2207_v34 }
 0x1f0   :  { %2080 = vmatpush3.msk.msra.mxu0 %vm1381_vm2, %v1443_v12 }
 0x1f1   :  { %2082 = vmatmul.mubr.msk.f32.vlgmr.msra.gmra.mrb[72].mxu0 %vm1445_vm3, %v1444_v0 }
 0x2c4   :  { %v1518_v52 = vpop.f32.mrb[72].mxu0 }
 0x2c5   :  { %1522 = vst [vmem:[%s2848_s4] sm:$0xf] %v1518_v52  ;;  %v2083_v24 = vpop.f32.mrb[73].mxu0 }

</bundles_post_ra>
